<compile_context>
chip_gen: v6e
topology: v6e:2x2x1
jax: 0.10.0
libtpu: 0.0.40
codegen_flags: <defaults>
</compile_context>

<pallas_src>
import functools
import numpy as np
import jax
import jax.numpy as jnp
from jax import lax
from jax.experimental import pallas as pl
from jax.experimental.pallas import tpu as pltpu

LEAKY_RATE = 0.1
SCALE = 1.0
FLOW_NEI = 32
FEAT_NEI = 16


def _round_up(x, m):
    return ((x + m - 1) // m) * m


# ----------------------------------------------------------------------------
# Pallas kernel 1: single dense layer (x @ W + b) + activation, K-tiled reduction
# ----------------------------------------------------------------------------
def _dense_kernel(x_ref, w_ref, b_ref, o_ref, acc_ref, *, act, nk):
    @pl.when(pl.program_id(1) == 0)
    def _():
        acc_ref[...] = jnp.zeros_like(acc_ref)

    acc_ref[...] += jnp.dot(x_ref[...], w_ref[...],
                            preferred_element_type=jnp.float32)

    @pl.when(pl.program_id(1) == nk - 1)
    def _():
        y = acc_ref[...] + b_ref[...]
        if act == "leaky":
            y = jnp.where(y > 0, y, LEAKY_RATE * y)
        elif act == "relu":
            y = jnp.maximum(y, 0.0)
        o_ref[...] = y


def dense(x, w, b, act="none", tile_m=512, tile_k=512):
    """x: (M, Cin), w: (Cin, Cout), b: (Cout,) -> (M, Cout) f32."""
    M, Cin = x.shape
    Cout = w.shape[1]
    Cout_p = _round_up(Cout, 128)
    if _round_up(Cin, 128) > 1024:
        Cin_p = _round_up(Cin, tile_k)
        tk = tile_k
    else:
        Cin_p = _round_up(Cin, 128)
        tk = Cin_p
    tm = min(tile_m, _round_up(M, 8))
    Mp = _round_up(M, tm)
    nk = Cin_p // tk

    xp = jnp.zeros((Mp, Cin_p), jnp.bfloat16).at[:M, :Cin].set(x.astype(jnp.bfloat16))
    wp = jnp.zeros((Cin_p, Cout_p), jnp.bfloat16).at[:Cin, :Cout].set(w.astype(jnp.bfloat16))
    bp = jnp.zeros((1, Cout_p), jnp.float32).at[0, :Cout].set(b)

    out = pl.pallas_call(
        functools.partial(_dense_kernel, act=act, nk=nk),
        out_shape=jax.ShapeDtypeStruct((Mp, Cout_p), jnp.float32),
        grid=(Mp // tm, nk),
        in_specs=[
            pl.BlockSpec((tm, tk), lambda i, k: (i, k)),
            pl.BlockSpec((tk, Cout_p), lambda i, k: (k, 0)),
            pl.BlockSpec((1, Cout_p), lambda i, k: (0, 0)),
        ],
        out_specs=pl.BlockSpec((tm, Cout_p), lambda i, k: (i, 0)),
        scratch_shapes=[pltpu.VMEM((tm, Cout_p), jnp.float32)],
        compiler_params=pltpu.CompilerParams(
            dimension_semantics=("parallel", "arbitrary")),
    )(xp, wp, bp)
    return out[:M, :Cout]


def dense_nd(x, w, b, act="none"):
    shp = x.shape
    y = dense(x.reshape(-1, shp[-1]), w, b, act=act)
    return y.reshape(shp[:-1] + (w.shape[1],))


# ----------------------------------------------------------------------------
# Pallas kernel 2: fused chain of dense layers (intermediates stay in VMEM)
# ----------------------------------------------------------------------------
def _dense_chain_kernel(*refs, acts):
    nl = len(acts)
    x_ref = refs[0]
    o_ref = refs[1 + 2 * nl]
    y = x_ref[...]
    for li in range(nl):
        w = refs[1 + 2 * li][...]
        b = refs[2 + 2 * li][...]
        y = jnp.dot(y, w, preferred_element_type=jnp.float32) + b
        a = acts[li]
        if a == "leaky":
            y = jnp.where(y > 0, y, LEAKY_RATE * y)
        elif a == "relu":
            y = jnp.maximum(y, 0.0)
        if li < nl - 1:
            y = y.astype(jnp.bfloat16)
    o_ref[...] = y


def dense_chain(x, layers, acts, tile_m=1024):
    """x: (M, Cin); layers: list of {'w','b'}; acts: per-layer activation."""
    M, Cin = x.shape
    dims = [Cin] + [l["w"].shape[1] for l in layers]
    dims_p = [_round_up(d, 128) for d in dims]
    tm = min(tile_m, _round_up(M, 8))
    Mp = _round_up(M, tm)

    xp = jnp.zeros((Mp, dims_p[0]), jnp.bfloat16).at[:M, :Cin].set(x.astype(jnp.bfloat16))
    args = [xp]
    in_specs = [pl.BlockSpec((tm, dims_p[0]), lambda i: (i, 0))]
    for li, l in enumerate(layers):
        cin, cout = dims[li], dims[li + 1]
        cin_p, cout_p = dims_p[li], dims_p[li + 1]
        wp = jnp.zeros((cin_p, cout_p), jnp.bfloat16).at[:cin, :cout].set(
            l["w"].astype(jnp.bfloat16))
        bp = jnp.zeros((1, cout_p), jnp.float32).at[0, :cout].set(l["b"])
        args += [wp, bp]
        in_specs += [pl.BlockSpec((cin_p, cout_p), lambda i: (0, 0)),
                     pl.BlockSpec((1, cout_p), lambda i: (0, 0))]

    out = pl.pallas_call(
        functools.partial(_dense_chain_kernel, acts=tuple(acts)),
        out_shape=jax.ShapeDtypeStruct((Mp, dims_p[-1]), jnp.float32),
        grid=(Mp // tm,),
        in_specs=in_specs,
        out_specs=pl.BlockSpec((tm, dims_p[-1]), lambda i: (i, 0)),
        compiler_params=pltpu.CompilerParams(dimension_semantics=("parallel",)),
    )(*args)
    return out[:M, :dims[-1]]


# ----------------------------------------------------------------------------
# Pallas kernel 3: fused 3-layer WeightNet (3 -> h1 -> h2 -> out, ReLU each)
#   The 3-channel input is NOT padded to 128; layer 1 runs on the VPU via lane
#   broadcasts, layers 2/3 use aligned (128-padded) bf16 MXU matmuls in VMEM.
# ----------------------------------------------------------------------------
def _weightnet_kernel(x_ref, w1_ref, b1_ref, w2_ref, b2_ref, w3_ref, b3_ref, o_ref):
    x = x_ref[...]                                      # (tm, 3) f32
    w1 = w1_ref[...]                                    # (8, h1p) f32
    y = (x[:, 0:1] * w1[0:1, :]
         + x[:, 1:2] * w1[1:2, :]
         + x[:, 2:3] * w1[2:3, :]) + b1_ref[...]
    y = jnp.maximum(y, 0.0)
    y = jnp.dot(y.astype(jnp.bfloat16), w2_ref[...],
                preferred_element_type=jnp.float32) + b2_ref[...]
    y = jnp.maximum(y, 0.0)
    y = jnp.dot(y.astype(jnp.bfloat16), w3_ref[...],
                preferred_element_type=jnp.float32) + b3_ref[...]
    y = jnp.maximum(y, 0.0)
    o_ref[...] = y


def weightnet_fused(x3, wn, tile_m=1024):
    """x3: (M, 3) f32 offsets; wn: 3 layer params (3->h1->h2->out)."""
    M = x3.shape[0]
    h1 = wn[0]["w"].shape[1]
    h2 = wn[1]["w"].shape[1]
    cout = wn[2]["w"].shape[1]
    h1p, h2p, coutp = _round_up(h1, 128), _round_up(h2, 128), _round_up(cout, 128)
    tm = min(tile_m, _round_up(M, 8))
    Mp = _round_up(M, tm)

    xp = jnp.zeros((Mp, 3), jnp.float32).at[:M].set(x3)
    w1p = jnp.zeros((8, h1p), jnp.float32).at[:3, :h1].set(wn[0]["w"])
    b1p = jnp.zeros((1, h1p), jnp.float32).at[0, :h1].set(wn[0]["b"])
    w2p = jnp.zeros((h1p, h2p), jnp.bfloat16).at[:h1, :h2].set(wn[1]["w"].astype(jnp.bfloat16))
    b2p = jnp.zeros((1, h2p), jnp.float32).at[0, :h2].set(wn[1]["b"])
    w3p = jnp.zeros((h2p, coutp), jnp.bfloat16).at[:h2, :cout].set(wn[2]["w"].astype(jnp.bfloat16))
    b3p = jnp.zeros((1, coutp), jnp.float32).at[0, :cout].set(wn[2]["b"])

    out = pl.pallas_call(
        _weightnet_kernel,
        out_shape=jax.ShapeDtypeStruct((Mp, coutp), jnp.float32),
        grid=(Mp // tm,),
        in_specs=[
            pl.BlockSpec((tm, 3), lambda i: (i, 0)),
            pl.BlockSpec((8, h1p), lambda i: (0, 0)),
            pl.BlockSpec((1, h1p), lambda i: (0, 0)),
            pl.BlockSpec((h1p, h2p), lambda i: (0, 0)),
            pl.BlockSpec((1, h2p), lambda i: (0, 0)),
            pl.BlockSpec((h2p, coutp), lambda i: (0, 0)),
            pl.BlockSpec((1, coutp), lambda i: (0, 0)),
        ],
        out_specs=pl.BlockSpec((tm, coutp), lambda i: (i, 0)),
        compiler_params=pltpu.CompilerParams(dimension_semantics=("parallel",)),
    )(xp, w1p, b1p, w2p, b2p, w3p, b3p)
    return out[:M, :cout]


# ----------------------------------------------------------------------------
# Pallas kernel 4: pairwise squared distances, tiled over query rows
# ----------------------------------------------------------------------------
def _sqdist_kernel(q_ref, r_ref, o_ref):
    q = q_ref[0]                                    # (tq, 3)
    r = r_ref[0]                                    # (Mp, 3)
    qq = jnp.sum(q * q, axis=-1, keepdims=True)     # (tq, 1)
    rr = jnp.sum(r * r, axis=-1)[None, :]           # (1, Mp)
    cross = lax.dot_general(q, r, (((1,), (1,)), ((), ())),
                            preferred_element_type=jnp.float32)
    o_ref[0] = qq + rr - 2.0 * cross


def pairwise_sqdist(query, ref, tile_q=128):
    """query: (B, N, 3), ref: (B, M, 3) -> (B, N, M) squared distances."""
    B, N, D = query.shape
    M = ref.shape[1]
    tq = min(tile_q, _round_up(N, 8))
    Np = _round_up(N, tq)
    Mp = _round_up(M, 128) if M >= 128 else _round_up(M, 8)
    qp = jnp.zeros((B, Np, D), jnp.float32).at[:, :N].set(query)
    rp = jnp.zeros((B, Mp, D), jnp.float32).at[:, :M].set(ref)
    out = pl.pallas_call(
        _sqdist_kernel,
        out_shape=jax.ShapeDtypeStruct((B, Np, Mp), jnp.float32),
        grid=(B, Np // tq),
        in_specs=[
            pl.BlockSpec((1, tq, D), lambda b, i: (b, i, 0)),
            pl.BlockSpec((1, Mp, D), lambda b, i: (b, 0, 0)),
        ],
        out_specs=pl.BlockSpec((1, tq, Mp), lambda b, i: (b, i, 0)),
        compiler_params=pltpu.CompilerParams(
            dimension_semantics=("parallel", "parallel")),
    )(qp, rp)
    return out[:, :N, :M]


# ----------------------------------------------------------------------------
# Plain-JAX glue (gathers, k-NN selection, FPS)
# ----------------------------------------------------------------------------
def knn_point(nsample, xyz_ref, xyz_query):
    d = pairwise_sqdist(xyz_query, xyz_ref)
    _, idx = lax.top_k(-d, nsample)
    return idx


def index_points_group(points, idx):
    return jax.vmap(lambda p, i: p[i])(points, idx)


def index_points_gather(points, idx):
    return jax.vmap(lambda p, i: p[i])(points, idx)


def farthest_point_sample(xyz, npoint):
    """xyz: (B, N, 3) -> (B, npoint) int32."""
    # TODO(synk): FPS is an inherently sequential argmax loop; kept in lax.fori_loop.
    B, N, _ = xyz.shape

    def one(x):
        def body(i, state):
            dist, farthest, idxs = state
            idxs = idxs.at[i].set(farthest)
            centroid = x[farthest]
            d = jnp.sum((x - centroid) ** 2, axis=-1)
            dist = jnp.minimum(dist, d)
            farthest = jnp.argmax(dist).astype(jnp.int32)
            return dist, farthest, idxs

        dist0 = jnp.full((N,), 1e10, jnp.float32)
        idxs0 = jnp.zeros((npoint,), jnp.int32)
        _, _, idxs = lax.fori_loop(0, npoint, body, (dist0, jnp.int32(0), idxs0))
        return idxs

    return jax.vmap(one)(xyz)


# ----------------------------------------------------------------------------
# Module equivalents (channels-last)
# ----------------------------------------------------------------------------
def conv1d_apply(p, x, act="leaky"):
    return dense_nd(x, p["w"], p["b"], act=act)


def conv1d_chain(p_list, x, act="leaky"):
    sh = x.shape
    y = dense_chain(x.reshape(-1, sh[-1]), p_list, [act] * len(p_list))
    return y.reshape(sh[:-1] + (p_list[-1]["w"].shape[1],))


def pointconvd_apply(p, npoint, nsample, xyz, points):
    """PointConvD: FPS downsample + PointConv. xyz (B,N,3), points (B,N,C)."""
    # TODO(synk): full fusion of gather + WeightNet + K-contraction + lin into one
    # PrefetchScalarGridSpec kernel is future work; gathers/einsum remain in XLA.
    B = xyz.shape[0]
    fps_idx = farthest_point_sample(xyz, npoint)
    new_xyz = index_points_gather(xyz, fps_idx)                  # (B, S, 3)
    knn_idx = knn_point(nsample, xyz, new_xyz)                   # (B, S, K)
    grouped_xyz = index_points_group(xyz, knn_idx)               # (B, S, K, 3)
    grouped_xyz_norm = grouped_xyz - new_xyz[:, :, None, :]
    grouped_points = index_points_group(points, knn_idx)         # (B, S, K, C)
    new_points = jnp.concatenate([grouped_xyz_norm, grouped_points], axis=-1)
    weights = weightnet_fused(grouped_xyz_norm.reshape(-1, 3), p["wn"])
    weights = weights.reshape(B, npoint, nsample, -1)
    fused = jnp.einsum("bskc,bskw->bscw", new_points, weights)
    fused = fused.reshape(B, npoint, -1)
    out = dense_nd(fused, p["lin"]["w"], p["lin"]["b"], act="leaky")
    return new_xyz, out, fps_idx


def pointconv_apply(p, nsample, xyz, points):
    """PointConv (bn=True, eval-mode BN with default stats), no downsampling."""
    B, N, _ = xyz.shape
    knn_idx = knn_point(nsample, xyz, xyz)
    grouped_xyz = index_points_group(xyz, knn_idx)
    grouped_xyz_norm = grouped_xyz - xyz[:, :, None, :]
    grouped_points = index_points_group(points, knn_idx)
    new_points = jnp.concatenate([grouped_xyz_norm, grouped_points], axis=-1)
    weights = weightnet_fused(grouped_xyz_norm.reshape(-1, 3), p["wn"])
    weights = weights.reshape(B, N, nsample, -1)
    fused = jnp.einsum("bskc,bskw->bscw", new_points, weights).reshape(B, N, -1)
    out = dense_nd(fused, p["lin"]["w"], p["lin"]["b"], act="none")
    # eval-mode BatchNorm1d with default running stats (mean=0, var=1, affine=id)
    out = out * (1.0 / np.sqrt(1.0 + 1e-5))
    out = jnp.where(out > 0, out, LEAKY_RATE * out)
    return out


def pointconvflow_apply(p, nsample, xyz1, xyz2, points1, points2):
    """Cost volume. Returns (B, N1, mlp[-1])."""
    B, N1, _ = xyz1.shape
    D1 = points1.shape[-1]
    # point-to-patch cost
    knn_idx = knn_point(nsample, xyz2, xyz1)
    neighbor_xyz = index_points_group(xyz2, knn_idx)
    direction_xyz = neighbor_xyz - xyz1[:, :, None, :]
    grouped_points2 = index_points_group(points2, knn_idx)
    grouped_points1 = jnp.broadcast_to(points1[:, :, None, :], (B, N1, nsample, D1))
    new_points = jnp.concatenate(
        [grouped_points1, grouped_points2, direction_xyz], axis=-1)
    cin = new_points.shape[-1]
    new_points = dense_chain(new_points.reshape(-1, cin), p["mlp"],
                             ["leaky"] * len(p["mlp"]))
    clast = p["mlp"][-1]["w"].shape[1]
    new_points = new_points.reshape(B, N1, nsample, clast)
    weights = weightnet_fused(direction_xyz.reshape(-1, 3), p["wn1"])
    weights = weights.reshape(B, N1, nsample, -1)
    point_to_patch = jnp.sum(weights * new_points, axis=2)        # (B, N1, C)
    # patch-to-patch cost
    knn_idx = knn_point(nsample, xyz1, xyz1)
    neighbor_xyz = index_points_group(xyz1, knn_idx)
    direction_xyz = neighbor_xyz - xyz1[:, :, None, :]
    weights = weightnet_fused(direction_xyz.reshape(-1, 3), p["wn2"])
    weights = weights.reshape(B, N1, nsample, -1)
    grouped_cost = index_points_group(point_to_patch, knn_idx)
    patch_to_patch = jnp.sum(weights * grouped_cost, axis=2)
    return patch_to_patch


def sceneflow_apply(p, xyz, feats, cost, flow=None):
    if flow is None:
        x = jnp.concatenate([feats, cost], axis=-1)
    else:
        x = jnp.concatenate([feats, cost, flow], axis=-1)
    for pc in p["pointconvs"]:
        x = pointconv_apply(pc, 9, xyz, x)
    sh = x.shape
    x = dense_chain(x.reshape(-1, sh[-1]), p["mlp"], ["leaky"] * len(p["mlp"]))
    x = x.reshape(sh[0], sh[1], -1)
    flow_out = dense_nd(x, p["fc"]["w"], p["fc"]["b"], act="none")
    flow_out = jnp.clip(flow_out, -200.0, 200.0)
    return x, flow_out


def upsample_flow(xyz, sparse_xyz, sparse_flow):
    knn_idx = knn_point(3, sparse_xyz, xyz)
    grouped_xyz = index_points_group(sparse_xyz, knn_idx)
    diff = grouped_xyz - xyz[:, :, None, :]
    dist = jnp.maximum(jnp.sqrt(jnp.sum(diff * diff, axis=-1)), 1e-10)
    inv = 1.0 / dist
    weight = inv / jnp.sum(inv, axis=-1, keepdims=True)
    grouped_flow = index_points_group(sparse_flow, knn_idx)
    return jnp.sum(weight[..., None] * grouped_flow, axis=2)


def point_warping(pc1, pc2, flow):
    if flow is None:
        return pc2
    pc1_to_2 = pc1 + flow
    knn_idx = knn_point(3, pc1_to_2, pc2)
    grouped = index_points_group(pc1_to_2, knn_idx)
    diff = grouped - pc2[:, :, None, :]
    dist = jnp.maximum(jnp.sqrt(jnp.sum(diff * diff, axis=-1)), 1e-10)
    inv = 1.0 / dist
    weight = inv / jnp.sum(inv, axis=-1, keepdims=True)
    grouped_flow = index_points_group(flow, knn_idx)
    interp_flow = jnp.sum(weight[..., None] * grouped_flow, axis=2)
    return pc2 - interp_flow


# ----------------------------------------------------------------------------
# Deterministic parameter initialization
# ----------------------------------------------------------------------------
class KeyGen:
    def __init__(self, seed):
        self.key = jax.random.PRNGKey(seed)

    def __call__(self):
        self.key, sub = jax.random.split(self.key)
        return sub


def init_linear(kg, cin, cout):
    w = jax.random.normal(kg(), (cin, cout), jnp.float32) * (1.0 / np.sqrt(cin))
    b = jax.random.normal(kg(), (cout,), jnp.float32) * 0.01
    return {"w": w, "b": b}


def init_weightnet(kg, cout, hidden=(8, 8)):
    chans = (3,) + tuple(hidden) + (cout,)
    return [init_linear(kg, chans[i], chans[i + 1]) for i in range(len(chans) - 1)]


def init_pointconv(kg, in_channel, out_channel, weightnet=16):
    return {"wn": init_weightnet(kg, weightnet),
            "lin": init_linear(kg, weightnet * in_channel, out_channel)}


def init_pointconvflow(kg, in_channel, mlp):
    last = in_channel
    convs = []
    for out in mlp:
        convs.append(init_linear(kg, last, out))
        last = out
    return {"mlp": convs,
            "wn1": init_weightnet(kg, last),
            "wn2": init_weightnet(kg, last)}


def init_sceneflow(kg, feat_ch, cost_ch, flow_ch=3, channels=(128, 128), mlp=(128, 64)):
    last = feat_ch + cost_ch + flow_ch
    pcs = []
    for out in channels:
        pcs.append(init_pointconv(kg, last + 3, out))
        last = out
    convs = []
    for out in mlp:
        convs.append(init_linear(kg, last, out))
        last = out
    fc = init_linear(kg, last, 3)
    return {"pointconvs": pcs, "mlp": convs, "fc": fc}


def init_pointpwc(kg):
    p = {}
    p["level0"] = init_linear(kg, 3, 32)
    p["level0_1"] = init_linear(kg, 32, 32)
    p["cost0"] = init_pointconvflow(kg, 32 + 32 + 32 + 32 + 3, [32, 32])
    p["flow0"] = init_sceneflow(kg, 32 + 64, 32)
    p["level0_2"] = init_linear(kg, 32, 64)
    p["level1"] = init_pointconv(kg, 64 + 3, 64)
    p["cost1"] = init_pointconvflow(kg, 64 + 32 + 64 + 32 + 3, [64, 64])
    p["flow1"] = init_sceneflow(kg, 64 + 64, 64)
    p["level1_0"] = init_linear(kg, 64, 64)
    p["level1_1"] = init_linear(kg, 64, 128)
    p["level2"] = init_pointconv(kg, 128 + 3, 128)
    p["cost2"] = init_pointconvflow(kg, 128 + 64 + 128 + 64 + 3, [128, 128])
    p["flow2"] = init_sceneflow(kg, 128 + 64, 128)
    p["level2_0"] = init_linear(kg, 128, 128)
    p["level2_1"] = init_linear(kg, 128, 256)
    p["level3"] = init_pointconv(kg, 256 + 3, 256)
    p["cost3"] = init_pointconvflow(kg, 256 + 64 + 256 + 64 + 3, [256, 256])
    p["flow3"] = init_sceneflow(kg, 256, 256, flow_ch=0)
    p["level3_0"] = init_linear(kg, 256, 256)
    p["level3_1"] = init_linear(kg, 256, 512)
    p["level4"] = init_pointconv(kg, 512 + 3, 256)
    p["deconv4_3"] = init_linear(kg, 256, 64)
    p["deconv3_2"] = init_linear(kg, 256, 64)
    p["deconv2_1"] = init_linear(kg, 128, 32)
    p["deconv1_0"] = init_linear(kg, 64, 32)
    return p


# ----------------------------------------------------------------------------
# PointPWC forward (mirrors the PyTorch forward, channels-last internally).
# The pc1 and pc2 feature pyramids share weights, so both clouds are stacked on
# the batch axis and run through each shared layer ONCE.
# ----------------------------------------------------------------------------
def pointpwc_forward(p, npoints, xyz1, xyz2, color1, color2):
    B = xyz1.shape[0]
    pc1_l0, pc2_l0 = xyz1, xyz2

    pc_l0 = jnp.concatenate([xyz1, xyz2], axis=0)            # (2B, N, 3)
    color = jnp.concatenate([color1, color2], axis=0)

    feat_l0 = conv1d_chain([p["level0"], p["level0_1"]], color)       # (2B,N,32)
    feat_l0_1 = conv1d_apply(p["level0_2"], feat_l0)                  # (2B,N,64)

    pc_l1, feat_l1, fps_l1 = pointconvd_apply(p["level1"], npoints[0], FEAT_NEI, pc_l0, feat_l0_1)
    feat_l1_2 = conv1d_chain([p["level1_0"], p["level1_1"]], feat_l1)

    pc_l2, feat_l2, fps_l2 = pointconvd_apply(p["level2"], npoints[1], FEAT_NEI, pc_l1, feat_l1_2)
    feat_l2_3 = conv1d_chain([p["level2_0"], p["level2_1"]], feat_l2)

    pc_l3, feat_l3, fps_l3 = pointconvd_apply(p["level3"], npoints[2], FEAT_NEI, pc_l2, feat_l2_3)
    feat_l3_4 = conv1d_chain([p["level3_0"], p["level3_1"]], feat_l3)

    pc_l4, feat_l4, _ = pointconvd_apply(p["level4"], npoints[3], FEAT_NEI, pc_l3, feat_l3_4)
    feat_l4_3 = conv1d_apply(p["deconv4_3"], upsample_flow(pc_l3, pc_l4, feat_l4))
    c_feat_l3 = jnp.concatenate([feat_l3, feat_l4_3], axis=-1)

    feat_l3_2 = conv1d_apply(p["deconv3_2"], upsample_flow(pc_l2, pc_l3, feat_l3))
    c_feat_l2 = jnp.concatenate([feat_l2, feat_l3_2], axis=-1)

    feat_l2_1 = conv1d_apply(p["deconv2_1"], upsample_flow(pc_l1, pc_l2, feat_l2))
    c_feat_l1 = jnp.concatenate([feat_l1, feat_l2_1], axis=-1)

    feat_l1_0 = conv1d_apply(p["deconv1_0"], upsample_flow(pc_l0, pc_l1, feat_l1))
    c_feat_l0 = jnp.concatenate([feat_l0, feat_l1_0], axis=-1)

    split = lambda t: (t[:B], t[B:])
    pc1_l1, pc2_l1 = split(pc_l1)
    pc1_l2, pc2_l2 = split(pc_l2)
    pc1_l3, pc2_l3 = split(pc_l3)
    feat1_l0, _ = split(feat_l0)
    feat1_l1, _ = split(feat_l1)
    feat1_l2, _ = split(feat_l2)
    feat1_l3, _ = split(feat_l3)
    c_feat1_l3, c_feat2_l3 = split(c_feat_l3)
    c_feat1_l2, c_feat2_l2 = split(c_feat_l2)
    c_feat1_l1, c_feat2_l1 = split(c_feat_l1)
    c_feat1_l0, c_feat2_l0 = split(c_feat_l0)
    fps_pc1_l1, fps_pc2_l1 = split(fps_l1)
    fps_pc1_l2, fps_pc2_l2 = split(fps_l2)
    fps_pc1_l3, fps_pc2_l3 = split(fps_l3)

    # coarse-to-fine flow estimation
    cost3 = pointconvflow_apply(p["cost3"], FLOW_NEI, pc1_l3, pc2_l3, c_feat1_l3, c_feat2_l3)
    feat3, flow3 = sceneflow_apply(p["flow3"], pc1_l3, feat1_l3, cost3, None)

    up_flow2 = upsample_flow(pc1_l2, pc1_l3, SCALE * flow3)
    pc2_l2_warp = point_warping(pc1_l2, pc2_l2, up_flow2)
    cost2 = pointconvflow_apply(p["cost2"], FLOW_NEI, pc1_l2, pc2_l2_warp, c_feat1_l2, c_feat2_l2)
    feat3_up = upsample_flow(pc1_l2, pc1_l3, feat3)
    new_feat1_l2 = jnp.concatenate([feat1_l2, feat3_up], axis=-1)
    feat2, flow2 = sceneflow_apply(p["flow2"], pc1_l2, new_feat1_l2, cost2, up_flow2)

    up_flow1 = upsample_flow(pc1_l1, pc1_l2, SCALE * flow2)
    pc2_l1_warp = point_warping(pc1_l1, pc2_l1, up_flow1)
    cost1 = pointconvflow_apply(p["cost1"], FLOW_NEI, pc1_l1, pc2_l1_warp, c_feat1_l1, c_feat2_l1)
    feat2_up = upsample_flow(pc1_l1, pc1_l2, feat2)
    new_feat1_l1 = jnp.concatenate([feat1_l1, feat2_up], axis=-1)
    feat1, flow1 = sceneflow_apply(p["flow1"], pc1_l1, new_feat1_l1, cost1, up_flow1)

    up_flow0 = upsample_flow(pc1_l0, pc1_l1, SCALE * flow1)
    pc2_l0_warp = point_warping(pc1_l0, pc2_l0, up_flow0)
    cost0 = pointconvflow_apply(p["cost0"], FLOW_NEI, pc1_l0, pc2_l0_warp, c_feat1_l0, c_feat2_l0)
    feat1_up = upsample_flow(pc1_l0, pc1_l1, feat1)
    new_feat1_l0 = jnp.concatenate([feat1_l0, feat1_up], axis=-1)
    _, flow0 = sceneflow_apply(p["flow0"], pc1_l0, new_feat1_l0, cost0, up_flow0)

    to_ncw = lambda t: jnp.transpose(t, (0, 2, 1))   # back to PyTorch (B, C, N)
    flows = [to_ncw(flow0), to_ncw(flow1), to_ncw(flow2), to_ncw(flow3)]
    pc1 = [to_ncw(pc1_l0), to_ncw(pc1_l1), to_ncw(pc1_l2), to_ncw(pc1_l3)]
    pc2 = [to_ncw(pc2_l0), to_ncw(pc2_l1), to_ncw(pc2_l2), to_ncw(pc2_l3)]
    fps_pc1_idxs = [fps_pc1_l1, fps_pc1_l2, fps_pc1_l3]
    fps_pc2_idxs = [fps_pc2_l1, fps_pc2_l2, fps_pc2_l3]
    return flows, fps_pc1_idxs, fps_pc2_idxs, pc1, pc2


# ----------------------------------------------------------------------------
if __name__ == "__main__":
    B, N = 2, 256
    # Downsampling sizes scaled from the original (2048, 512, 256, 64) @ N=8192
    # to keep the small-shape run valid (every knn needs >= nsample points).
    NPOINTS = (128, 64, 32, 16)

    key = jax.random.PRNGKey(0)
    k1, k2, k3, k4 = jax.random.split(key, 4)
    xyz1 = jax.random.normal(k1, (B, N, 3), jnp.float32)
    xyz2 = xyz1 + 0.05 * jax.random.normal(k2, (B, N, 3), jnp.float32)
    color1 = jax.random.uniform(k3, (B, N, 3), jnp.float32)
    color2 = jax.random.uniform(k4, (B, N, 3), jnp.float32)

    params = init_pointpwc(KeyGen(42))

    flows, fps1, fps2, pc1, pc2 = pointpwc_forward(
        params, NPOINTS, xyz1, xyz2, color1, color2)
    jax.block_until_ready((flows, fps1, fps2, pc1, pc2))

    # sanity checks on output shapes (PyTorch (B, C, N) convention)
    assert flows[0].shape == (B, 3, N)
    assert flows[1].shape == (B, 3, NPOINTS[0])
    assert flows[2].shape == (B, 3, NPOINTS[1])
    assert flows[3].shape == (B, 3, NPOINTS[2])
    assert pc1[3].shape == (B, 3, NPOINTS[2])
    assert fps1[0].shape == (B, NPOINTS[0])
    assert all(np.isfinite(np.asarray(f)).all() for f in flows)

    print("KERNEL_OK")
</pallas_src>

<mosaic_0001>
module attributes {stable_mosaic.version = 11 : i64} {
  func.func @_dense_chain_kernel(%arg0: i32, %arg1: memref<1024x128xbf16, #tpu.memory_space<vmem>>, %arg2: memref<128x128xbf16, #tpu.memory_space<vmem>>, %arg3: memref<1x128xf32, #tpu.memory_space<vmem>>, %arg4: memref<128x128xbf16, #tpu.memory_space<vmem>>, %arg5: memref<1x128xf32, #tpu.memory_space<vmem>>, %arg6: memref<1024x128xf32, #tpu.memory_space<vmem>>) attributes {dimension_semantics = [#tpu.dimension_semantics<parallel>], iteration_bounds = array<i64: 1>, scalar_prefetch = 0 : i64, scratch_operands = 0 : i64, tpu.core_type = #tpu.core_type<tc>, window_params = [{transform_indices = @transform_0, window_bounds = array<i64: 1024, 128>}, {pipeline_mode = #tpu.pipeline_mode<synchronous>, transform_indices = @transform_1, window_bounds = array<i64: 128, 128>}, {pipeline_mode = #tpu.pipeline_mode<synchronous>, transform_indices = @transform_2, window_bounds = array<i64: 1, 128>}, {pipeline_mode = #tpu.pipeline_mode<synchronous>, transform_indices = @transform_3, window_bounds = array<i64: 128, 128>}, {pipeline_mode = #tpu.pipeline_mode<synchronous>, transform_indices = @transform_4, window_bounds = array<i64: 1, 128>}, {transform_indices = @transform_5, window_bounds = array<i64: 1024, 128>}]} {
    %c0 = arith.constant 0 : index
    %c0_0 = arith.constant 0 : index
    %0 = vector.load %arg1[%c0, %c0_0] : memref<1024x128xbf16, #tpu.memory_space<vmem>>, vector<1024x128xbf16>
    %c0_1 = arith.constant 0 : index
    %c0_2 = arith.constant 0 : index
    %1 = vector.load %arg2[%c0_1, %c0_2] : memref<128x128xbf16, #tpu.memory_space<vmem>>, vector<128x128xbf16>
    %c0_3 = arith.constant 0 : index
    %c0_4 = arith.constant 0 : index
    %2 = vector.load %arg3[%c0_3, %c0_4] : memref<1x128xf32, #tpu.memory_space<vmem>>, vector<1x128xf32>
    %cst = arith.constant dense<0.000000e+00> : vector<1024x128xf32>
    %3 = tpu.matmul %0, %1, %cst {dimension_numbers = #tpu.dot_dimension_numbers<[1], [0], [0], [1], [0, 0, 1, 1], [], []>} : vector<1024x128xbf16>, vector<128x128xbf16>, vector<1024x128xf32> -> vector<1024x128xf32>
    %4 = vector.broadcast %2 : vector<1x128xf32> to vector<1024x128xf32>
    %5 = arith.addf %3, %4 : vector<1024x128xf32>
    %cst_5 = arith.constant 0.000000e+00 : f32
    %6 = vector.broadcast %cst_5 : f32 to vector<1024x128xf32>
    %7 = arith.cmpf ogt, %5, %6 : vector<1024x128xf32>
    %cst_6 = arith.constant 1.000000e-01 : f32
    %8 = vector.broadcast %cst_6 : f32 to vector<1024x128xf32>
    %9 = arith.mulf %8, %5 : vector<1024x128xf32>
    %10 = arith.select %7, %5, %9 : vector<1024x128xi1>, vector<1024x128xf32>
    %11 = arith.truncf %10 : vector<1024x128xf32> to vector<1024x128xbf16>
    %c0_7 = arith.constant 0 : index
    %c0_8 = arith.constant 0 : index
    %12 = vector.load %arg4[%c0_7, %c0_8] : memref<128x128xbf16, #tpu.memory_space<vmem>>, vector<128x128xbf16>
    %c0_9 = arith.constant 0 : index
    %c0_10 = arith.constant 0 : index
    %13 = vector.load %arg5[%c0_9, %c0_10] : memref<1x128xf32, #tpu.memory_space<vmem>>, vector<1x128xf32>
    %cst_11 = arith.constant dense<0.000000e+00> : vector<1024x128xf32>
    %14 = tpu.matmul %11, %12, %cst_11 {dimension_numbers = #tpu.dot_dimension_numbers<[1], [0], [0], [1], [0, 0, 1, 1], [], []>} : vector<1024x128xbf16>, vector<128x128xbf16>, vector<1024x128xf32> -> vector<1024x128xf32>
    %15 = vector.broadcast %13 : vector<1x128xf32> to vector<1024x128xf32>
    %16 = arith.addf %14, %15 : vector<1024x128xf32>
    %cst_12 = arith.constant 0.000000e+00 : f32
    %17 = vector.broadcast %cst_12 : f32 to vector<1024x128xf32>
    %18 = arith.cmpf ogt, %16, %17 : vector<1024x128xf32>
    %cst_13 = arith.constant 1.000000e-01 : f32
    %19 = vector.broadcast %cst_13 : f32 to vector<1024x128xf32>
    %20 = arith.mulf %19, %16 : vector<1024x128xf32>
    %21 = arith.select %18, %16, %20 : vector<1024x128xi1>, vector<1024x128xf32>
    %c0_14 = arith.constant 0 : index
    %c0_15 = arith.constant 0 : index
    %22 = vector.load %arg6[%c0_14, %c0_15] : memref<1024x128xf32, #tpu.memory_space<vmem>>, vector<1024x128xf32>
    tpu.vector_store %arg6[%c0_14, %c0_15], %21 {strides = array<i32>} : memref<1024x128xf32, #tpu.memory_space<vmem>>, vector<1024x128xf32>,
    return
  }
  func.func @transform_0(%arg0: i32) -> (i32, i32) {
    %c0_i32 = arith.constant 0 : i32
    %c0_i32_0 = arith.constant 0 : i32
    return %arg0, %c0_i32 : i32, i32
  }
  func.func @transform_1(%arg0: i32) -> (i32, i32) {
    %c0_i32 = arith.constant 0 : i32
    %c0_i32_0 = arith.constant 0 : i32
    %c0_i32_1 = arith.constant 0 : i32
    return %c0_i32, %c0_i32_0 : i32, i32
  }
  func.func @transform_2(%arg0: i32) -> (i32, i32) {
    %c0_i32 = arith.constant 0 : i32
    %c0_i32_0 = arith.constant 0 : i32
    %c0_i32_1 = arith.constant 0 : i32
    return %c0_i32, %c0_i32_0 : i32, i32
  }
  func.func @transform_3(%arg0: i32) -> (i32, i32) {
    %c0_i32 = arith.constant 0 : i32
    %c0_i32_0 = arith.constant 0 : i32
    %c0_i32_1 = arith.constant 0 : i32
    return %c0_i32, %c0_i32_0 : i32, i32
  }
  func.func @transform_4(%arg0: i32) -> (i32, i32) {
    %c0_i32 = arith.constant 0 : i32
    %c0_i32_0 = arith.constant 0 : i32
    %c0_i32_1 = arith.constant 0 : i32
    return %c0_i32, %c0_i32_0 : i32, i32
  }
  func.func @transform_5(%arg0: i32) -> (i32, i32) {
    %c0_i32 = arith.constant 0 : i32
    %c0_i32_0 = arith.constant 0 : i32
    return %arg0, %c0_i32 : i32, i32
  }
}

</mosaic_0001>

<bundles_post_ra>
// kernel: tpu_custom_call.1
= control target key start
LH: loop header
LB: loop body
LE: loop exit
PB: predicated region body
PF: predicated region fallthrough
CT: control target
= control target key end

     0   :  { %10 = vsyncpa [#allocation3], 0  ;;  %s3880_s0 = inlined_call_operand.hbm [shape: bf16[1024,128], index: 0, kind: input, shape index: {}]   ;;  %s3881_s1 = inlined_call_operand.hbm [shape: bf16[128,128], index: 1, kind: input, shape index: {}]   ;;  %s3882_s2 = inlined_call_operand.vmem [shape: f32[1,128], index: 2, kind: input, shape index: {}]   ;;  %s3883_s3 = inlined_call_operand.hbm [shape: bf16[128,128], index: 3, kind: input, shape index: {}]   ;;  %s3884_s4 = inlined_call_operand.vmem [shape: f32[1,128], index: 4, kind: input, shape index: {}]   ;;  %s3885_s5 = inlined_call_operand.hbm [shape: f32[1024,128], index: 5, kind: output, shape index: {}]  }
   0x1   :  { %11 = vsyncpa [#allocation6], 0 }
   0x2   :  { %12 = vsyncpa [#allocation4], 0  ;;  %s3475_s18 = smov [#allocation5]   ;;  %s3476_s20 = smov [#allocation2]  }
   0x3   :  { %s30_s19 = sshll.u32 %s3475_s18, 4  ;;  %s18_s21 = sshll.u32 %s3476_s20, 4  ;;  %s31_s19 = int_to_ptr.vmem [resolvable:$true] %s30_s19  ;;  %s19_s21 = int_to_ptr.vmem [resolvable:$true] %s18_s21 }
   0x4   :  { %s3397_s22 = scalar_lea.vmem %s31_s19, 1024  ;;  %p3402_p1 = scmp.lt.s32.totalorder %s31_s19, %s31_s19 }
   0x5   :  { %p3398_p0 = scmp.ne.s32.totalorder %s31_s19, %s3397_s22  ;;  %p3403_p2 = scmp.lt.s32.totalorder %s3397_s22, %s3397_s22 }
   0x7   :  { %p3404_p3 = por %p3403_p2, %p3402_p1 }
   0x9   :  { %p3405_p4 = pnand %p3404_p3, %p3398_p0 }
   0xb   :  { %3408 = shalt.err (!%p3405_p4)
}
   0xc   :  { %s3477_s23 = smov 64   ;;  %s3478_s24 = smov 4  }
   0xd   :  { %36 = dma.hbm_to_vmem [thread:$0]  %s3881_s1, 1024, %s31_s19, [#allocation6], %s3477_s23, %s3477_s23, %s3478_s24  }
   0xe   :  { %s3417_s27 = scalar_lea.vmem %s19_s21, 8192  ;;  %p3422_p6 = scmp.lt.s32.totalorder %s19_s21, %s19_s21 }
   0xf   :  { %p3418_p5 = scmp.ne.s32.totalorder %s19_s21, %s3417_s27  ;;  %p3423_p7 = scmp.lt.s32.totalorder %s3417_s27, %s3417_s27 }
  0x11   :  { %p3424_p8 = por %p3423_p7, %p3422_p6 }
  0x13   :  { %p3425_p9 = pnand %p3424_p8, %p3418_p5 }
  0x15   :  { %3428 = shalt.err (!%p3425_p9)
}
  0x16   :  { %24 = dma.hbm_to_vmem [thread:$0]  %s3880_s0, 8192, %s19_s21, [#allocation3], %s3477_s23, %s3477_s23, %s3478_s24  }
  0x17   :  { %s3479_s30 = smov [#allocation7]  }
  0x18   :  { %s44_s6 = sshll.u32 %s3479_s30, 4  ;;  %s45_s6 = int_to_ptr.vmem [resolvable:$true] %s44_s6 }
  0x19   :  { %s3437_s7 = scalar_lea.vmem %s45_s6, 1024  ;;  %p3442_p11 = scmp.lt.s32.totalorder %s45_s6, %s45_s6 }
  0x1a   :  { %p3438_p10 = scmp.ne.s32.totalorder %s45_s6, %s3437_s7  ;;  %p3443_p12 = scmp.lt.s32.totalorder %s3437_s7, %s3437_s7 }
  0x1c   :  { %p3444_p13 = por %p3443_p12, %p3442_p11 }
  0x1e   :  { %p3445_p0 = pnand %p3444_p13, %p3438_p10 }
  0x20   :  { %3448 = shalt.err (!%p3445_p0)
}
  0x21   :  { %50 = dma.hbm_to_vmem [thread:$0]  %s3883_s3, 1024, %s45_s6, [#allocation6], %s3477_s23, %s3477_s23, %s3478_s24  }
  0x22   :  { %3469 = dma.done.wait [#allocation3], 8192  }
  0x23   :  { %3470 = vsyncadd [#allocation3], 4294959104 }
  0x24   :  { %3471 = dma.done.wait [#allocation6], 2048  }
  0x25   :  { %3472 = vsyncadd [#allocation6], 4294965248  ;;  %v3307_v0 = vld [vmem:[#allocation5 + $0x38] sm:$0xff]   ;;  %v3308_v1 = vld [vmem:[#allocation5 + $0x30] sm:$0xff]  }
  0x26   :  { %3011 = vmatprep.subr.bf16.mxu0 %v3307_v0  ;;  %v3309_v2 = vld [vmem:[#allocation5 + $0x28] sm:$0xff]   ;;  %v3310_v3 = vld [vmem:[#allocation5 + $0x20] sm:$0xff]   ;;  %v3311_v5 = vld [vmem:[#allocation5 + $0x18] sm:$0xff]  }
  0x27   :  { %3012 = vmatpush3.bf16.msra.mxu0 %v3307_v0  ;;  %v3315_v4 = vld [vmem:[#allocation2] sm:$0xff]   ;;  %v3312_v6 = vld [vmem:[#allocation5 + $0x10] sm:$0xff]   ;;  %v3313_v7 = vld [vmem:[#allocation5 + $0x8] sm:$0xff]  }
  0x28   :  { %3013 = vmatprep.subr.bf16.mxu0 %v3308_v1  ;;  %3027 = vmatprep.mubr.bf16.mxu0 %v3315_v4  ;;  %v3314_v8 = vld [vmem:[#allocation5] sm:$0xff]   ;;  %v3316_v9 = vld [vmem:[#allocation2 + $0x8] sm:$0xff]   ;;  %v3317_v10 = vld [vmem:[#allocation2 + $0x10] sm:$0xff]  }
  0x29   :  { %v3318_v11 = vld [vmem:[#allocation2 + $0x18] sm:$0xff]   ;;  %v3319_v12 = vld [vmem:[#allocation2 + $0x20] sm:$0xff]   ;;  %v3320_v13 = vld [vmem:[#allocation2 + $0x28] sm:$0xff]  }
  0x2a   :  { %v3321_v14 = vld [vmem:[#allocation2 + $0x30] sm:$0xff]   ;;  %v3322_v15 = vld [vmem:[#allocation2 + $0x38] sm:$0xff]   ;;  %v3323_v16 = vld [vmem:[#allocation2 + $0x40] sm:$0xff]  }
  0x2b   :  { %3014 = vmatpush3.bf16.msra.mxu0 %v3308_v1  ;;  %v3324_v17 = vld [vmem:[#allocation2 + $0x48] sm:$0xff]   ;;  %v3325_v18 = vld [vmem:[#allocation2 + $0x50] sm:$0xff]   ;;  %v3326_v19 = vld [vmem:[#allocation2 + $0x58] sm:$0xff]  }
  0x2c   :  { %3015 = vmatprep.subr.bf16.mxu0 %v3309_v2  ;;  %v3327_v20 = vld [vmem:[#allocation2 + $0x60] sm:$0xff]   ;;  %v3360_v21 = vld [vmem:[#allocation7 + $0x38] sm:$0xff]   ;;  %v3328_v22 = vld [vmem:[#allocation2 + $0x68] sm:$0xff]  }
  0x2d   :  { %3155 = vmatprep.subr.bf16.mxu1 %v3360_v21  ;;  %v3329_v23 = vld [vmem:[#allocation2 + $0x70] sm:$0xff]   ;;  %v3364_v25 = vld [vmem:[#allocation7 + $0x28] sm:$0xff]   ;;  %v3330_v26 = vld [vmem:[#allocation2 + $0x78] sm:$0xff]  }
  0x2e   :  { %3156 = vmatpush3.bf16.msra.mxu1 %v3360_v21  ;;  %v3362_v24 = vld [vmem:[#allocation7 + $0x30] sm:$0xff]   ;;  %v3331_v27 = vld [vmem:[#allocation2 + $0x80] sm:$0xff]   ;;  %v3368_v29 = vld [vmem:[#allocation7 + $0x18] sm:$0xff]  }
  0x2f   :  { %3016 = vmatpush3.bf16.msra.mxu0 %v3309_v2  ;;  %3157 = vmatprep.subr.bf16.mxu1 %v3362_v24  ;;  %v3366_v28 = vld [vmem:[#allocation7 + $0x20] sm:$0xff]   ;;  %v3332_v30 = vld [vmem:[#allocation2 + $0x88] sm:$0xff]   ;;  %v3333_v31 = vld [vmem:[#allocation2 + $0x90] sm:$0xff]  }
  0x30   :  { %3017 = vmatprep.subr.bf16.mxu0 %v3310_v3  ;;  %v3370_v32 = vld [vmem:[#allocation7 + $0x10] sm:$0xff]   ;;  %v3334_v33 = vld [vmem:[#allocation2 + $0x98] sm:$0xff]   ;;  %v3335_v34 = vld [vmem:[#allocation2 + $0xa0] sm:$0xff]  }
  0x31   :  { %v3372_v35 = vld [vmem:[#allocation7 + $0x8] sm:$0xff]   ;;  %v3374_v36 = vld [vmem:[#allocation7] sm:$0xff]   ;;  %v3337_v38 = vld [vmem:[#allocation2 + $0xb0] sm:$0xff]  }
  0x32   :  { %3158 = vmatpush3.bf16.msra.mxu1 %v3362_v24  ;;  %v3336_v37 = vld [vmem:[#allocation2 + $0xa8] sm:$0xff]   ;;  %v3338_v39 = vld [vmem:[#allocation2 + $0xb8] sm:$0xff]   ;;  %v3339_v40 = vld [vmem:[#allocation2 + $0xc0] sm:$0xff]  }
  0x33   :  { %3018 = vmatpush3.bf16.msra.mxu0 %v3310_v3  ;;  %3159 = vmatprep.subr.bf16.mxu1 %v3364_v25  ;;  %v3340_v41 = vld [vmem:[#allocation2 + $0xc8] sm:$0xff]   ;;  %v3341_v42 = vld [vmem:[#allocation2 + $0xd0] sm:$0xff]   ;;  %v3342_v43 = vld [vmem:[#allocation2 + $0xd8] sm:$0xff]  }
  0x34   :  { %3019 = vmatprep.subr.bf16.mxu0 %v3311_v5  ;;  %v3343_v44 = vld [vmem:[#allocation2 + $0xe0] sm:$0xff]   ;;  %v3344_v45 = vld [vmem:[#allocation2 + $0xe8] sm:$0xff]   ;;  %v3345_v46 = vld [vmem:[#allocation2 + $0xf0] sm:$0xff]  }
  0x35   :  { %v3346_v47 = vld [vmem:[#allocation2 + $0xf8] sm:$0xff]   ;;  %v3347_v48 = vld [vmem:[#allocation2 + $0x100] sm:$0xff]   ;;  %v3348_v49 = vld [vmem:[#allocation2 + $0x108] sm:$0xff]  }
  0x36   :  { %3160 = vmatpush3.bf16.msra.mxu1 %v3364_v25  ;;  %v3349_v50 = vld [vmem:[#allocation2 + $0x110] sm:$0xff]   ;;  %v3350_v51 = vld [vmem:[#allocation2 + $0x118] sm:$0xff]   ;;  %v3351_v52 = vld [vmem:[#allocation2 + $0x120] sm:$0xff]  }
  0x37   :  { %3020 = vmatpush3.bf16.msra.mxu0 %v3311_v5  ;;  %3161 = vmatprep.subr.bf16.mxu1 %v3366_v28  ;;  %v3352_v53 = vld [vmem:[#allocation2 + $0x128] sm:$0xff]   ;;  %v3353_v54 = vld [vmem:[#allocation2 + $0x130] sm:$0xff]   ;;  %v3354_v55 = vld [vmem:[#allocation2 + $0x138] sm:$0xff]  }
  0x38   :  { %3021 = vmatprep.subr.bf16.mxu0 %v3312_v6  ;;  %v3355_v56 = vld [vmem:[#allocation2 + $0x140] sm:$0xff]   ;;  %v3356_v57 = vld [vmem:[#allocation2 + $0x148] sm:$0xff]   ;;  %v3357_v58 = vld [vmem:[#allocation2 + $0x150] sm:$0xff]  }
  0x39   :  { %v3358_v59 = vld [vmem:[#allocation2 + $0x158] sm:$0xff]   ;;  %v3359_v60 = vld [vmem:[#allocation2 + $0x160] sm:$0xff]   ;;  %v3361_v61 = vld [vmem:[#allocation2 + $0x168] sm:$0xff]  }
  0x3a   :  { %3162 = vmatpush3.bf16.msra.mxu1 %v3366_v28  ;;  %v3363_v62 = vld [vmem:[#allocation2 + $0x170] sm:$0xff]   ;;  %v3365_v63 = vld [vmem:[#allocation2 + $0x178] sm:$0xff]   ;;  %v3367_v0 = vld [vmem:[#allocation2 + $0x180] sm:$0xff]  }
  0x3b   :  { %3022 = vmatpush3.bf16.msra.mxu0 %v3312_v6  ;;  %3163 = vmatprep.subr.bf16.mxu1 %v3368_v29  ;;  %v3369_v1 = vld [vmem:[#allocation2 + $0x188] sm:$0xff]   ;;  %v3371_v2 = vld [vmem:[#allocation2 + $0x190] sm:$0xff]   ;;  %v3525_v4 = vld [vmem:[%s3882_s2] ss:$0 sm:$0xff] }
  0x3c   :  { %3023 = vmatprep.subr.bf16.mxu0 %v3313_v7  ;;  %v3376_v28 = vld [vmem:[#allocation2 + $0x1a8] sm:$0xff]  }
  0x3e   :  { %3164 = vmatpush3.bf16.msra.mxu1 %v3368_v29 }
  0x3f   :  { %3024 = vmatpush3.bf16.msra.mxu0 %v3313_v7  ;;  %3165 = vmatprep.subr.bf16.mxu1 %v3370_v32 }
  0x40   :  { %3025 = vmatprep.subr.bf16.mxu0 %v3314_v8 }
  0x42   :  { %3166 = vmatpush3.bf16.msra.mxu1 %v3370_v32 }
  0x43   :  { %3026 = vmatpush3.bf16.msra.mxu0 %v3314_v8  ;;  %3167 = vmatprep.subr.bf16.mxu1 %v3372_v35 }
  0x46   :  { %3028 = vmatmul.mubr.bf16.vlgmr.msra.gmra.mxu0 %v3316_v9  ;;  %3168 = vmatpush3.bf16.msra.mxu1 %v3372_v35  ;;  %v3373_v9 = vld [vmem:[#allocation2 + $0x198] sm:$0xff]  }
  0x47   :  { %3031 = vmatprep.mubr.bf16.mxu0 %v3317_v10  ;;  %3169 = vmatprep.subr.bf16.mxu1 %v3374_v36 }
  0x4a   :  { %3170 = vmatpush3.bf16.msra.mxu1 %v3374_v36 }
  0x4e   :  { %3032 = vmatmul.mubr.bf16.gmra.mxu0 %v3318_v11  ;;  %v3375_v11 = vld [vmem:[#allocation2 + $0x1a0] sm:$0xff]  }
  0x4f   :  { %3035 = vmatprep.mubr.bf16.mxu0 %v3319_v12 }
  0x56   :  { %3036 = vmatmul.mubr.bf16.gmra.mxu0 %v3320_v13 }
  0x57   :  { %3039 = vmatprep.mubr.bf16.mxu0 %v3321_v14 }
  0x5e   :  { %3040 = vmatmul.mubr.bf16.gmra.mxu0 %v3322_v15 }
  0x5f   :  { %3043 = vmatprep.mubr.bf16.mxu0 %v3323_v16 }
  0x66   :  { %3044 = vmatmul.mubr.bf16.gmra.mxu0 %v3324_v17 }
  0x67   :  { %3047 = vmatprep.mubr.bf16.mxu0 %v3325_v18 }
  0x6e   :  { %3048 = vmatmul.mubr.bf16.gmra.mxu0 %v3326_v19 }
  0x6f   :  { %3051 = vmatprep.mubr.bf16.mxu0 %v3327_v20 }
  0x76   :  { %3052 = vmatmul.mubr.bf16.gmra.mxu0 %v3328_v22 }
  0x77   :  { %3055 = vmatprep.mubr.bf16.mxu0 %v3329_v23 }
  0x7e   :  { %3056 = vmatmul.mubr.bf16.gmra.mxu0 %v3330_v26 }
  0x7f   :  { %3059 = vmatprep.mubr.bf16.mxu0 %v3331_v27 }
  0x86   :  { %3060 = vmatmul.mubr.bf16.gmra.mxu0 %v3332_v30 }
  0x87   :  { %3063 = vmatprep.mubr.bf16.mxu0 %v3333_v31  ;;  %v3377_v31 = vld [vmem:[#allocation2 + $0x1b0] sm:$0xff]  }
  0x8e   :  { %3064 = vmatmul.mubr.bf16.gmra.mxu0 %v3334_v33 }
  0x8f   :  { %3067 = vmatprep.mubr.bf16.mxu0 %v3335_v34 }
  0x96   :  { %3068 = vmatmul.mubr.bf16.gmra.mxu0 %v3336_v37 }
  0x97   :  { %3071 = vmatprep.mubr.bf16.mxu0 %v3337_v38 }
  0x9e   :  { %3072 = vmatmul.mubr.bf16.gmra.mxu0 %v3338_v39 }
  0x9f   :  { %3075 = vmatprep.mubr.bf16.mxu0 %v3339_v40 }
  0xa6   :  { %3076 = vmatmul.mubr.bf16.gmra.mxu0 %v3340_v41 }
  0xa7   :  { %3079 = vmatprep.mubr.bf16.mxu0 %v3341_v42 }
  0xae   :  { %3080 = vmatmul.mubr.bf16.gmra.mxu0 %v3342_v43 }
  0xaf   :  { %3083 = vmatprep.mubr.bf16.mxu0 %v3343_v44 }
  0xb6   :  { %3084 = vmatmul.mubr.bf16.gmra.mxu0 %v3344_v45 }
  0xb7   :  { %3087 = vmatprep.mubr.bf16.mxu0 %v3345_v46 }
  0xbe   :  { %3088 = vmatmul.mubr.bf16.gmra.mxu0 %v3346_v47 }
  0xbf   :  { %3091 = vmatprep.mubr.bf16.mxu0 %v3347_v48  ;;  %v3378_v48 = vld [vmem:[#allocation2 + $0x1b8] sm:$0xff]  }
  0xc6   :  { %3092 = vmatmul.mubr.bf16.gmra.mxu0 %v3348_v49 }
  0xc7   :  { %3095 = vmatprep.mubr.bf16.mxu0 %v3349_v50 }
  0xce   :  { %3096 = vmatmul.mubr.bf16.gmra.mxu0 %v3350_v51  ;;  %v3379_v51 = vld [vmem:[#allocation2 + $0x1c0] sm:$0xff]  }
  0xcf   :  { %3099 = vmatprep.mubr.bf16.mxu0 %v3351_v52 }
  0xd6   :  { %3100 = vmatmul.mubr.bf16.gmra.mxu0 %v3352_v53 }
  0xd7   :  { %3103 = vmatprep.mubr.bf16.mxu0 %v3353_v54 }
  0xde   :  { %3104 = vmatmul.mubr.bf16.gmra.mxu0 %v3354_v55 }
  0xdf   :  { %3107 = vmatprep.mubr.bf16.mxu0 %v3355_v56 }
  0xe6   :  { %3108 = vmatmul.mubr.bf16.gmra.mxu0 %v3356_v57 }
  0xe7   :  { %3111 = vmatprep.mubr.bf16.mxu0 %v3357_v58 }
  0xee   :  { %3112 = vmatmul.mubr.bf16.gmra.mxu0 %v3358_v59 }
  0xef   :  { %3115 = vmatprep.mubr.bf16.mxu0 %v3359_v60 }
  0xf6   :  { %3116 = vmatmul.mubr.bf16.gmra.mxu0 %v3361_v61 }
  0xf7   :  { %3119 = vmatprep.mubr.bf16.mxu0 %v3363_v62 }
  0xfe   :  { %3120 = vmatmul.mubr.bf16.gmra.mxu0 %v3365_v63 }
  0xff   :  { %3123 = vmatprep.mubr.bf16.mxu0 %v3367_v0 }
 0x106   :  { %v3029_v3 = vpop.f32.mrf.mxu0  ;;  %3124 = vmatmul.mubr.bf16.gmra.mxu0 %v3369_v1 }
 0x107   :  { %3127 = vmatprep.mubr.bf16.mxu0 %v3371_v2  ;;  %v689_v7 = vadd.f32 %v3029_v3, %v3525_v4 }
 0x108   :  { %v680_v5 = vpop.f32.mrf.mxu0 }
 0x109   :  { %v681_v6 = vadd.f32 %v3525_v4, %v680_v5  ;;  %v1321_v16 = vmul.f32 0.1, %v689_v7  ;;  %vm1193_vm2 = vcmp.gt.f32.partialorder %v689_v7, 0.0  ;;  %v3380_v5 = vld [vmem:[#allocation2 + $0x1c8] sm:$0xff]  }
 0x10a   :  { %v3030_v8 = vpop.f32.mrf.mxu0 }
 0x10b   :  { %v692_v10 = vadd.f32 %v3030_v8, %v3525_v4  ;;  %v1319_v13 = vmul.f32 0.1, %v681_v6  ;;  %vm1191_vm1 = vcmp.gt.f32.partialorder %v681_v6, 0.0  ;;  %v1449_v27 = vsel %vm1193_vm2, %v689_v7, %v1321_v16  ;;  %v3381_v8 = vld [vmem:[#allocation2 + $0x1d0] sm:$0xff]  }
 0x10c   :  { %v683_v12 = vpop.f32.mrf.mxu0 }
 0x10d   :  { %vm1194_vm0 = vcmp.gt.f32.partialorder %v692_v10, 0.0  ;;  %v1322_v14 = vmul.f32 0.1, %v692_v10  ;;  %v684_v15 = vadd.f32 %v3525_v4, %v683_v12  ;;  %v1447_v22 = vsel %vm1191_vm1, %v681_v6, %v1319_v13 }
 0x10e   :  { %v3033_v17 = vpop.f32.mrf.mxu0  ;;  %3128 = vmatmul.mubr.bf16.gmra.mxu0 %v3373_v9 }
 0x10f   :  { %vm1192_vm3 = vcmp.gt.f32.partialorder %v684_v15, 0.0  ;;  %v1320_v18 = vmul.f32 0.1, %v684_v15  ;;  %3131 = vmatprep.mubr.bf16.mxu0 %v3375_v11  ;;  %v1450_v20 = vsel %vm1194_vm0, %v692_v10, %v1322_v14  ;;  %v705_v24 = vadd.f32 %v3033_v17, %v3525_v4 }
 0x110   :  { %v696_v19 = vpop.f32.mrf.mxu0  ;;  %v1576_v30 = vpack.c.bf16 %v1450_v20, %v1449_v27 }
 0x111   :  { %v697_v21 = vadd.f32 %v3525_v4, %v696_v19  ;;  %v1448_v23 = vsel %vm1192_vm3, %v684_v15, %v1320_v18  ;;  %v1325_v36 = vmul.f32 0.1, %v705_v24  ;;  %vm1197_vm6 = vcmp.gt.f32.partialorder %v705_v24, 0.0 }
 0x112   :  { %v3034_v25 = vpop.f32.mrf.mxu0  ;;  %v1575_v26 = vpack.c.bf16 %v1448_v23, %v1447_v22 }
 0x113   :  { %v708_v29 = vadd.f32 %v3034_v25, %v3525_v4  ;;  %v1323_v33 = vmul.f32 0.1, %v697_v21  ;;  %vm1195_vm5 = vcmp.gt.f32.partialorder %v697_v21, 0.0  ;;  %v1453_v47 = vsel %vm1197_vm6, %v705_v24, %v1325_v36  ;;  %v3382_v25 = vld [vmem:[#allocation2 + $0x1d8] sm:$0xff]  }
 0x114   :  { %v699_v32 = vpop.f32.mrf.mxu0  ;;  %3171 = vmatprep.mubr.bf16.mxu1 %v1575_v26 }
 0x115   :  { %vm1198_vm4 = vcmp.gt.f32.partialorder %v708_v29, 0.0  ;;  %v1326_v34 = vmul.f32 0.1, %v708_v29  ;;  %v700_v35 = vadd.f32 %v3525_v4, %v699_v32  ;;  %3172 = vmatmul.mubr.bf16.vlgmr.msra.gmra.mxu1 %v1576_v30  ;;  %v1451_v42 = vsel %vm1195_vm5, %v697_v21, %v1323_v33 }
 0x116   :  { %v3037_v37 = vpop.f32.mrf.mxu0  ;;  %3132 = vmatmul.mubr.bf16.gmra.mxu0 %v3376_v28  ;;  %v3383_v28 = vld [vmem:[#allocation2 + $0x1e0] sm:$0xff]  }
 0x117   :  { %vm1196_vm7 = vcmp.gt.f32.partialorder %v700_v35, 0.0  ;;  %v1324_v38 = vmul.f32 0.1, %v700_v35  ;;  %3135 = vmatprep.mubr.bf16.mxu0 %v3377_v31  ;;  %v1454_v40 = vsel %vm1198_vm4, %v708_v29, %v1326_v34  ;;  %v721_v44 = vadd.f32 %v3037_v37, %v3525_v4 }
 0x118   :  { %v712_v39 = vpop.f32.mrf.mxu0  ;;  %v1578_v50 = vpack.c.bf16 %v1454_v40, %v1453_v47 }
 0x119   :  { %v713_v41 = vadd.f32 %v3525_v4, %v712_v39  ;;  %v1452_v43 = vsel %vm1196_vm7, %v700_v35, %v1324_v38  ;;  %v1329_v56 = vmul.f32 0.1, %v721_v44  ;;  %vm1201_vm10 = vcmp.gt.f32.partialorder %v721_v44, 0.0 }
 0x11a   :  { %v3038_v45 = vpop.f32.mrf.mxu0  ;;  %v1577_v46 = vpack.c.bf16 %v1452_v43, %v1451_v42 }
 0x11b   :  { %v724_v49 = vadd.f32 %v3038_v45, %v3525_v4  ;;  %v1327_v53 = vmul.f32 0.1, %v713_v41  ;;  %vm1199_vm9 = vcmp.gt.f32.partialorder %v713_v41, 0.0  ;;  %v1457_v3 = vsel %vm1201_vm10, %v721_v44, %v1329_v56  ;;  %v3384_v45 = vld [vmem:[#allocation2 + $0x1e8] sm:$0xff]  }
 0x11c   :  { %v715_v52 = vpop.f32.mrf.mxu0  ;;  %3175 = vmatprep.mubr.bf16.mxu1 %v1577_v46 }
 0x11d   :  { %vm1202_vm8 = vcmp.gt.f32.partialorder %v724_v49, 0.0  ;;  %v1330_v54 = vmul.f32 0.1, %v724_v49  ;;  %v716_v55 = vadd.f32 %v3525_v4, %v715_v52  ;;  %3176 = vmatmul.mubr.bf16.gmra.mxu1 %v1578_v50  ;;  %v1455_v62 = vsel %vm1199_vm9, %v713_v41, %v1327_v53 }
 0x11e   :  { %v3041_v57 = vpop.f32.mrf.mxu0  ;;  %3136 = vmatmul.mubr.bf16.gmra.mxu0 %v3378_v48  ;;  %v3385_v48 = vld [vmem:[#allocation2 + $0x1f0] sm:$0xff]  }
 0x11f   :  { %vm1200_vm11 = vcmp.gt.f32.partialorder %v716_v55, 0.0  ;;  %v1328_v58 = vmul.f32 0.1, %v716_v55  ;;  %3139 = vmatprep.mubr.bf16.mxu0 %v3379_v51  ;;  %v1458_v60 = vsel %vm1202_vm8, %v724_v49, %v1330_v54  ;;  %v737_v0 = vadd.f32 %v3041_v57, %v3525_v4 }
 0x120   :  { %v728_v59 = vpop.f32.mrf.mxu0  ;;  %v1580_v7 = vpack.c.bf16 %v1458_v60, %v1457_v3 }
 0x121   :  { %v729_v61 = vadd.f32 %v3525_v4, %v728_v59  ;;  %v1456_v63 = vsel %vm1200_vm11, %v716_v55, %v1328_v58  ;;  %v1333_v13 = vmul.f32 0.1, %v737_v0  ;;  %vm1205_vm14 = vcmp.gt.f32.partialorder %v737_v0, 0.0 }
 0x122   :  { %v3042_v1 = vpop.f32.mrf.mxu0  ;;  %v1579_v2 = vpack.c.bf16 %v1456_v63, %v1455_v62 }
 0x123   :  { %v740_v6 = vadd.f32 %v3042_v1, %v3525_v4  ;;  %v1331_v10 = vmul.f32 0.1, %v729_v61  ;;  %vm1203_vm13 = vcmp.gt.f32.partialorder %v729_v61, 0.0  ;;  %v1461_v24 = vsel %vm1205_vm14, %v737_v0, %v1333_v13  ;;  %v3386_v1 = vld [vmem:[#allocation2 + $0x1f8] sm:$0xff]  }
 0x124   :  { %v731_v9 = vpop.f32.mrf.mxu0  ;;  %3179 = vmatprep.mubr.bf16.mxu1 %v1579_v2 }
 0x125   :  { %vm1206_vm12 = vcmp.gt.f32.partialorder %v740_v6, 0.0  ;;  %v1334_v11 = vmul.f32 0.1, %v740_v6  ;;  %v732_v12 = vadd.f32 %v3525_v4, %v731_v9  ;;  %3180 = vmatmul.mubr.bf16.gmra.mxu1 %v1580_v7  ;;  %v1459_v19 = vsel %vm1203_vm13, %v729_v61, %v1331_v10 }
 0x126   :  { %v3045_v14 = vpop.f32.mrf.mxu0  ;;  %3140 = vmatmul.mubr.bf16.gmra.mxu0 %v3380_v5 }
 0x127   :  { %vm1204_vm15 = vcmp.gt.f32.partialorder %v732_v12, 0.0  ;;  %v1332_v15 = vmul.f32 0.1, %v732_v12  ;;  %3143 = vmatprep.mubr.bf16.mxu0 %v3381_v8  ;;  %v1462_v17 = vsel %vm1206_vm12, %v740_v6, %v1334_v11  ;;  %v753_v21 = vadd.f32 %v3045_v14, %v3525_v4 }
 0x128   :  { %v744_v16 = vpop.f32.mrf.mxu0  ;;  %v1582_v27 = vpack.c.bf16 %v1462_v17, %v1461_v24 }
 0x129   :  { %v745_v18 = vadd.f32 %v3525_v4, %v744_v16  ;;  %v1460_v20 = vsel %vm1204_vm15, %v732_v12, %v1332_v15  ;;  %v1337_v33 = vmul.f32 0.1, %v753_v21  ;;  %vm1209_vm2 = vcmp.gt.f32.partialorder %v753_v21, 0.0 }
 0x12a   :  { %v3046_v22 = vpop.f32.mrf.mxu0  ;;  %v1581_v23 = vpack.c.bf16 %v1460_v20, %v1459_v19 }
 0x12b   :  { %v756_v26 = vadd.f32 %v3046_v22, %v3525_v4  ;;  %v1335_v30 = vmul.f32 0.1, %v745_v18  ;;  %vm1207_vm1 = vcmp.gt.f32.partialorder %v745_v18, 0.0  ;;  %v1465_v44 = vsel %vm1209_vm2, %v753_v21, %v1337_v33 }
 0x12c   :  { %v747_v29 = vpop.f32.mrf.mxu0  ;;  %3183 = vmatprep.mubr.bf16.mxu1 %v1581_v23 }
 0x12d   :  { %vm1210_vm0 = vcmp.gt.f32.partialorder %v756_v26, 0.0  ;;  %v1338_v31 = vmul.f32 0.1, %v756_v26  ;;  %v748_v32 = vadd.f32 %v3525_v4, %v747_v29  ;;  %3184 = vmatmul.mubr.bf16.gmra.mxu1 %v1582_v27  ;;  %v1463_v39 = vsel %vm1207_vm1, %v745_v18, %v1335_v30 }
 0x12e   :  { %v3049_v34 = vpop.f32.mrf.mxu0  ;;  %3144 = vmatmul.mubr.bf16.gmra.mxu0 %v3382_v25 }
 0x12f   :  { %vm1208_vm3 = vcmp.gt.f32.partialorder %v748_v32, 0.0  ;;  %v1336_v35 = vmul.f32 0.1, %v748_v32  ;;  %3147 = vmatprep.mubr.bf16.mxu0 %v3383_v28  ;;  %v1466_v37 = vsel %vm1210_vm0, %v756_v26, %v1338_v31  ;;  %v769_v41 = vadd.f32 %v3049_v34, %v3525_v4 }
 0x130   :  { %v760_v36 = vpop.f32.mrf.mxu0  ;;  %v1584_v47 = vpack.c.bf16 %v1466_v37, %v1465_v44 }
 0x131   :  { %v761_v38 = vadd.f32 %v3525_v4, %v760_v36  ;;  %v1464_v40 = vsel %vm1208_vm3, %v748_v32, %v1336_v35  ;;  %v1341_v53 = vmul.f32 0.1, %v769_v41  ;;  %vm1213_vm6 = vcmp.gt.f32.partialorder %v769_v41, 0.0 }
 0x132   :  { %v3050_v42 = vpop.f32.mrf.mxu0  ;;  %v1583_v43 = vpack.c.bf16 %v1464_v40, %v1463_v39 }
 0x133   :  { %v772_v46 = vadd.f32 %v3050_v42, %v3525_v4  ;;  %v1339_v50 = vmul.f32 0.1, %v761_v38  ;;  %vm1211_vm5 = vcmp.gt.f32.partialorder %v761_v38, 0.0  ;;  %v1469_v0 = vsel %vm1213_vm6, %v769_v41, %v1341_v53 }
 0x134   :  { %v763_v49 = vpop.f32.mrf.mxu0  ;;  %3187 = vmatprep.mubr.bf16.mxu1 %v1583_v43 }
 0x135   :  { %vm1214_vm4 = vcmp.gt.f32.partialorder %v772_v46, 0.0  ;;  %v1342_v51 = vmul.f32 0.1, %v772_v46  ;;  %v764_v52 = vadd.f32 %v3525_v4, %v763_v49  ;;  %3188 = vmatmul.mubr.bf16.gmra.mxu1 %v1584_v47  ;;  %v1467_v59 = vsel %vm1211_vm5, %v761_v38, %v1339_v50 }
 0x136   :  { %v3053_v54 = vpop.f32.mrf.mxu0  ;;  %3148 = vmatmul.mubr.bf16.gmra.mxu0 %v3384_v45 }
 0x137   :  { %vm1212_vm7 = vcmp.gt.f32.partialorder %v764_v52, 0.0  ;;  %v1340_v55 = vmul.f32 0.1, %v764_v52  ;;  %3151 = vmatprep.mubr.bf16.mxu0 %v3385_v48  ;;  %v1470_v57 = vsel %vm1214_vm4, %v772_v46, %v1342_v51  ;;  %v785_v61 = vadd.f32 %v3053_v54, %v3525_v4 }
 0x138   :  { %v776_v56 = vpop.f32.mrf.mxu0  ;;  %v1586_v3 = vpack.c.bf16 %v1470_v57, %v1469_v0 }
 0x139   :  { %v777_v58 = vadd.f32 %v3525_v4, %v776_v56  ;;  %v1468_v60 = vsel %vm1212_vm7, %v764_v52, %v1340_v55  ;;  %v1345_v9 = vmul.f32 0.1, %v785_v61  ;;  %vm1217_vm10 = vcmp.gt.f32.partialorder %v785_v61, 0.0 }
 0x13a   :  { %v3054_v62 = vpop.f32.mrf.mxu0  ;;  %v1585_v63 = vpack.c.bf16 %v1468_v60, %v1467_v59 }
 0x13b   :  { %v788_v2 = vadd.f32 %v3054_v62, %v3525_v4  ;;  %v1343_v6 = vmul.f32 0.1, %v777_v58  ;;  %vm1215_vm9 = vcmp.gt.f32.partialorder %v777_v58, 0.0  ;;  %v1473_v20 = vsel %vm1217_vm10, %v785_v61, %v1345_v9 }
 0x13c   :  { %v779_v5 = vpop.f32.mrf.mxu0  ;;  %3191 = vmatprep.mubr.bf16.mxu1 %v1585_v63 }
 0x13d   :  { %vm1218_vm8 = vcmp.gt.f32.partialorder %v788_v2, 0.0  ;;  %v1346_v7 = vmul.f32 0.1, %v788_v2  ;;  %v780_v8 = vadd.f32 %v3525_v4, %v779_v5  ;;  %3192 = vmatmul.mubr.bf16.gmra.mxu1 %v1586_v3  ;;  %v1471_v15 = vsel %vm1215_vm9, %v777_v58, %v1343_v6 }
 0x13e   :  { %v3057_v10 = vpop.f32.mrf.mxu0  ;;  %3152 = vmatmul.mubr.bf16.gmra.mxu0 %v3386_v1 }
 0x13f   :  { %vm1216_vm11 = vcmp.gt.f32.partialorder %v780_v8, 0.0  ;;  %v1344_v11 = vmul.f32 0.1, %v780_v8  ;;  %v1474_v13 = vsel %vm1218_vm8, %v788_v2, %v1346_v7  ;;  %v801_v17 = vadd.f32 %v3057_v10, %v3525_v4 }
 0x140   :  { %v792_v12 = vpop.f32.mrf.mxu0  ;;  %v1588_v22 = vpack.c.bf16 %v1474_v13, %v1473_v20 }
 0x141   :  { %v793_v14 = vadd.f32 %v3525_v4, %v792_v12  ;;  %v1472_v16 = vsel %vm1216_vm11, %v780_v8, %v1344_v11  ;;  %v1349_v27 = vmul.f32 0.1, %v801_v17  ;;  %vm1221_vm14 = vcmp.gt.f32.partialorder %v801_v17, 0.0 }
 0x142   :  { %v3058_v18 = vpop.f32.mrf.mxu0  ;;  %v1587_v19 = vpack.c.bf16 %v1472_v16, %v1471_v15 }
 0x143   :  { %v804_v21 = vadd.f32 %v3058_v18, %v3525_v4  ;;  %v1347_v24 = vmul.f32 0.1, %v793_v14  ;;  %vm1219_vm13 = vcmp.gt.f32.partialorder %v793_v14, 0.0  ;;  %v1477_v38 = vsel %vm1221_vm14, %v801_v17, %v1349_v27 }
 0x144   :  { %v795_v23 = vpop.f32.mrf.mxu0  ;;  %3195 = vmatprep.mubr.bf16.mxu1 %v1587_v19 }
 0x145   :  { %vm1222_vm12 = vcmp.gt.f32.partialorder %v804_v21, 0.0  ;;  %v1350_v25 = vmul.f32 0.1, %v804_v21  ;;  %v796_v26 = vadd.f32 %v3525_v4, %v795_v23  ;;  %3196 = vmatmul.mubr.bf16.gmra.mxu1 %v1588_v22  ;;  %v1475_v33 = vsel %vm1219_vm13, %v793_v14, %v1347_v24 }
 0x146   :  { %v3061_v28 = vpop.f32.mrf.mxu0 }
 0x147   :  { %vm1220_vm15 = vcmp.gt.f32.partialorder %v796_v26, 0.0  ;;  %v1348_v29 = vmul.f32 0.1, %v796_v26  ;;  %v1478_v31 = vsel %vm1222_vm12, %v804_v21, %v1350_v25  ;;  %v817_v35 = vadd.f32 %v3061_v28, %v3525_v4 }
 0x148   :  { %v808_v30 = vpop.f32.mrf.mxu0  ;;  %v1590_v40 = vpack.c.bf16 %v1478_v31, %v1477_v38 }
 0x149   :  { %v809_v32 = vadd.f32 %v3525_v4, %v808_v30  ;;  %v1476_v34 = vsel %vm1220_vm15, %v796_v26, %v1348_v29  ;;  %v1353_v45 = vmul.f32 0.1, %v817_v35  ;;  %vm1225_vm2 = vcmp.gt.f32.partialorder %v817_v35, 0.0 }
 0x14a   :  { %v3062_v36 = vpop.f32.mrf.mxu0  ;;  %v1589_v37 = vpack.c.bf16 %v1476_v34, %v1475_v33 }
 0x14b   :  { %v820_v39 = vadd.f32 %v3062_v36, %v3525_v4  ;;  %v1351_v42 = vmul.f32 0.1, %v809_v32  ;;  %vm1223_vm1 = vcmp.gt.f32.partialorder %v809_v32, 0.0  ;;  %v1481_v56 = vsel %vm1225_vm2, %v817_v35, %v1353_v45 }
 0x14c   :  { %v811_v41 = vpop.f32.mrf.mxu0  ;;  %3199 = vmatprep.mubr.bf16.mxu1 %v1589_v37 }
 0x14d   :  { %vm1226_vm0 = vcmp.gt.f32.partialorder %v820_v39, 0.0  ;;  %v1354_v43 = vmul.f32 0.1, %v820_v39  ;;  %v812_v44 = vadd.f32 %v3525_v4, %v811_v41  ;;  %3200 = vmatmul.mubr.bf16.gmra.mxu1 %v1590_v40  ;;  %v1479_v51 = vsel %vm1223_vm1, %v809_v32, %v1351_v42 }
 0x14e   :  { %v3065_v46 = vpop.f32.mrf.mxu0 }
 0x14f   :  { %vm1224_vm3 = vcmp.gt.f32.partialorder %v812_v44, 0.0  ;;  %v1352_v47 = vmul.f32 0.1, %v812_v44  ;;  %v1482_v49 = vsel %vm1226_vm0, %v820_v39, %v1354_v43  ;;  %v833_v53 = vadd.f32 %v3065_v46, %v3525_v4 }
 0x150   :  { %v824_v48 = vpop.f32.mrf.mxu0  ;;  %v1592_v58 = vpack.c.bf16 %v1482_v49, %v1481_v56 }
 0x151   :  { %v825_v50 = vadd.f32 %v3525_v4, %v824_v48  ;;  %v1480_v52 = vsel %vm1224_vm3, %v812_v44, %v1352_v47  ;;  %v1357_v63 = vmul.f32 0.1, %v833_v53  ;;  %vm1229_vm6 = vcmp.gt.f32.partialorder %v833_v53, 0.0 }
 0x152   :  { %v3066_v54 = vpop.f32.mrf.mxu0  ;;  %v1591_v55 = vpack.c.bf16 %v1480_v52, %v1479_v51 }
 0x153   :  { %v836_v57 = vadd.f32 %v3066_v54, %v3525_v4  ;;  %v1355_v60 = vmul.f32 0.1, %v825_v50  ;;  %vm1227_vm5 = vcmp.gt.f32.partialorder %v825_v50, 0.0  ;;  %v1485_v11 = vsel %vm1229_vm6, %v833_v53, %v1357_v63 }
 0x154   :  { %v827_v59 = vpop.f32.mrf.mxu0  ;;  %3203 = vmatprep.mubr.bf16.mxu1 %v1591_v55 }
 0x155   :  { %vm1230_vm4 = vcmp.gt.f32.partialorder %v836_v57, 0.0  ;;  %v1358_v61 = vmul.f32 0.1, %v836_v57  ;;  %v828_v62 = vadd.f32 %v3525_v4, %v827_v59  ;;  %3204 = vmatmul.mubr.bf16.gmra.mxu1 %v1592_v58  ;;  %v1483_v6 = vsel %vm1227_vm5, %v825_v50, %v1355_v60 }
 0x156   :  { %v3069_v0 = vpop.f32.mrf.mxu0 }
 0x157   :  { %vm1228_vm7 = vcmp.gt.f32.partialorder %v828_v62, 0.0  ;;  %v1356_v1 = vmul.f32 0.1, %v828_v62  ;;  %v1486_v3 = vsel %vm1230_vm4, %v836_v57, %v1358_v61  ;;  %v849_v8 = vadd.f32 %v3069_v0, %v3525_v4 }
 0x158   :  { %v840_v2 = vpop.f32.mrf.mxu0  ;;  %v1594_v13 = vpack.c.bf16 %v1486_v3, %v1485_v11 }
 0x159   :  { %v841_v5 = vadd.f32 %v3525_v4, %v840_v2  ;;  %v1484_v7 = vsel %vm1228_vm7, %v828_v62, %v1356_v1  ;;  %v1361_v18 = vmul.f32 0.1, %v849_v8  ;;  %vm1233_vm10 = vcmp.gt.f32.partialorder %v849_v8, 0.0 }
 0x15a   :  { %v3070_v9 = vpop.f32.mrf.mxu0  ;;  %v1593_v10 = vpack.c.bf16 %v1484_v7, %v1483_v6 }
 0x15b   :  { %v852_v12 = vadd.f32 %v3070_v9, %v3525_v4  ;;  %v1359_v15 = vmul.f32 0.1, %v841_v5  ;;  %vm1231_vm9 = vcmp.gt.f32.partialorder %v841_v5, 0.0  ;;  %v1489_v29 = vsel %vm1233_vm10, %v849_v8, %v1361_v18 }
 0x15c   :  { %v843_v14 = vpop.f32.mrf.mxu0  ;;  %3207 = vmatprep.mubr.bf16.mxu1 %v1593_v10 }
 0x15d   :  { %vm1234_vm8 = vcmp.gt.f32.partialorder %v852_v12, 0.0  ;;  %v1362_v16 = vmul.f32 0.1, %v852_v12  ;;  %v844_v17 = vadd.f32 %v3525_v4, %v843_v14  ;;  %3208 = vmatmul.mubr.bf16.gmra.mxu1 %v1594_v13  ;;  %v1487_v24 = vsel %vm1231_vm9, %v841_v5, %v1359_v15 }
 0x15e   :  { %v3073_v19 = vpop.f32.mrf.mxu0 }
 0x15f   :  { %vm1232_vm11 = vcmp.gt.f32.partialorder %v844_v17, 0.0  ;;  %v1360_v20 = vmul.f32 0.1, %v844_v17  ;;  %v1490_v22 = vsel %vm1234_vm8, %v852_v12, %v1362_v16  ;;  %v865_v26 = vadd.f32 %v3073_v19, %v3525_v4 }
 0x160   :  { %v856_v21 = vpop.f32.mrf.mxu0  ;;  %v1596_v31 = vpack.c.bf16 %v1490_v22, %v1489_v29 }
 0x161   :  { %v857_v23 = vadd.f32 %v3525_v4, %v856_v21  ;;  %v1488_v25 = vsel %vm1232_vm11, %v844_v17, %v1360_v20  ;;  %v1365_v36 = vmul.f32 0.1, %v865_v26  ;;  %vm1237_vm14 = vcmp.gt.f32.partialorder %v865_v26, 0.0 }
 0x162   :  { %v3074_v27 = vpop.f32.mrf.mxu0  ;;  %v1595_v28 = vpack.c.bf16 %v1488_v25, %v1487_v24 }
 0x163   :  { %v868_v30 = vadd.f32 %v3074_v27, %v3525_v4  ;;  %v1363_v33 = vmul.f32 0.1, %v857_v23  ;;  %vm1235_vm13 = vcmp.gt.f32.partialorder %v857_v23, 0.0  ;;  %v1493_v47 = vsel %vm1237_vm14, %v865_v26, %v1365_v36 }
 0x164   :  { %v859_v32 = vpop.f32.mrf.mxu0  ;;  %3211 = vmatprep.mubr.bf16.mxu1 %v1595_v28 }
 0x165   :  { %vm1238_vm12 = vcmp.gt.f32.partialorder %v868_v30, 0.0  ;;  %v1366_v34 = vmul.f32 0.1, %v868_v30  ;;  %v860_v35 = vadd.f32 %v3525_v4, %v859_v32  ;;  %3212 = vmatmul.mubr.bf16.gmra.mxu1 %v1596_v31  ;;  %v1491_v42 = vsel %vm1235_vm13, %v857_v23, %v1363_v33 }
 0x166   :  { %v3077_v37 = vpop.f32.mrf.mxu0 }
 0x167   :  { %vm1236_vm15 = vcmp.gt.f32.partialorder %v860_v35, 0.0  ;;  %v1364_v38 = vmul.f32 0.1, %v860_v35  ;;  %v1494_v40 = vsel %vm1238_vm12, %v868_v30, %v1366_v34  ;;  %v881_v44 = vadd.f32 %v3077_v37, %v3525_v4 }
 0x168   :  { %v872_v39 = vpop.f32.mrf.mxu0  ;;  %v1598_v49 = vpack.c.bf16 %v1494_v40, %v1493_v47 }
 0x169   :  { %v873_v41 = vadd.f32 %v3525_v4, %v872_v39  ;;  %v1492_v43 = vsel %vm1236_vm15, %v860_v35, %v1364_v38  ;;  %v1369_v54 = vmul.f32 0.1, %v881_v44  ;;  %vm1241_vm2 = vcmp.gt.f32.partialorder %v881_v44, 0.0 }
 0x16a   :  { %v3078_v45 = vpop.f32.mrf.mxu0  ;;  %v1597_v46 = vpack.c.bf16 %v1492_v43, %v1491_v42 }
 0x16b   :  { %v884_v48 = vadd.f32 %v3078_v45, %v3525_v4  ;;  %v1367_v51 = vmul.f32 0.1, %v873_v41  ;;  %vm1239_vm1 = vcmp.gt.f32.partialorder %v873_v41, 0.0  ;;  %v1497_v1 = vsel %vm1241_vm2, %v881_v44, %v1369_v54 }
 0x16c   :  { %v875_v50 = vpop.f32.mrf.mxu0  ;;  %3215 = vmatprep.mubr.bf16.mxu1 %v1597_v46 }
 0x16d   :  { %vm1242_vm0 = vcmp.gt.f32.partialorder %v884_v48, 0.0  ;;  %v1370_v52 = vmul.f32 0.1, %v884_v48  ;;  %v876_v53 = vadd.f32 %v3525_v4, %v875_v50  ;;  %3216 = vmatmul.mubr.bf16.gmra.mxu1 %v1598_v49  ;;  %v1495_v60 = vsel %vm1239_vm1, %v873_v41, %v1367_v51 }
 0x16e   :  { %v3081_v55 = vpop.f32.mrf.mxu0 }
 0x16f   :  { %vm1240_vm3 = vcmp.gt.f32.partialorder %v876_v53, 0.0  ;;  %v1368_v56 = vmul.f32 0.1, %v876_v53  ;;  %v1498_v58 = vsel %vm1242_vm0, %v884_v48, %v1370_v52  ;;  %v897_v62 = vadd.f32 %v3081_v55, %v3525_v4 }
 0x170   :  { %v888_v57 = vpop.f32.mrf.mxu0  ;;  %v1600_v3 = vpack.c.bf16 %v1498_v58, %v1497_v1 }
 0x171   :  { %v889_v59 = vadd.f32 %v3525_v4, %v888_v57  ;;  %v1496_v61 = vsel %vm1240_vm3, %v876_v53, %v1368_v56  ;;  %v1373_v9 = vmul.f32 0.1, %v897_v62  ;;  %vm1245_vm6 = vcmp.gt.f32.partialorder %v897_v62, 0.0 }
 0x172   :  { %v3082_v63 = vpop.f32.mrf.mxu0  ;;  %v1599_v0 = vpack.c.bf16 %v1496_v61, %v1495_v60 }
 0x173   :  { %v900_v2 = vadd.f32 %v3082_v63, %v3525_v4  ;;  %v1371_v6 = vmul.f32 0.1, %v889_v59  ;;  %vm1243_vm5 = vcmp.gt.f32.partialorder %v889_v59, 0.0  ;;  %v1501_v20 = vsel %vm1245_vm6, %v897_v62, %v1373_v9 }
 0x174   :  { %v891_v5 = vpop.f32.mrf.mxu0  ;;  %3219 = vmatprep.mubr.bf16.mxu1 %v1599_v0 }
 0x175   :  { %vm1246_vm4 = vcmp.gt.f32.partialorder %v900_v2, 0.0  ;;  %v1374_v7 = vmul.f32 0.1, %v900_v2  ;;  %v892_v8 = vadd.f32 %v3525_v4, %v891_v5  ;;  %3220 = vmatmul.mubr.bf16.gmra.mxu1 %v1600_v3  ;;  %v1499_v15 = vsel %vm1243_vm5, %v889_v59, %v1371_v6 }
 0x176   :  { %v3085_v10 = vpop.f32.mrf.mxu0 }
 0x177   :  { %vm1244_vm7 = vcmp.gt.f32.partialorder %v892_v8, 0.0  ;;  %v1372_v11 = vmul.f32 0.1, %v892_v8  ;;  %v1502_v13 = vsel %vm1246_vm4, %v900_v2, %v1374_v7  ;;  %v913_v17 = vadd.f32 %v3085_v10, %v3525_v4 }
 0x178   :  { %v904_v12 = vpop.f32.mrf.mxu0  ;;  %v1602_v22 = vpack.c.bf16 %v1502_v13, %v1501_v20 }
 0x179   :  { %v905_v14 = vadd.f32 %v3525_v4, %v904_v12  ;;  %v1500_v16 = vsel %vm1244_vm7, %v892_v8, %v1372_v11  ;;  %v1377_v27 = vmul.f32 0.1, %v913_v17  ;;  %vm1249_vm10 = vcmp.gt.f32.partialorder %v913_v17, 0.0 }
 0x17a   :  { %v3086_v18 = vpop.f32.mrf.mxu0  ;;  %v1601_v19 = vpack.c.bf16 %v1500_v16, %v1499_v15 }
 0x17b   :  { %v916_v21 = vadd.f32 %v3086_v18, %v3525_v4  ;;  %v1375_v24 = vmul.f32 0.1, %v905_v14  ;;  %vm1247_vm9 = vcmp.gt.f32.partialorder %v905_v14, 0.0  ;;  %v1505_v38 = vsel %vm1249_vm10, %v913_v17, %v1377_v27 }
 0x17c   :  { %v907_v23 = vpop.f32.mrf.mxu0  ;;  %3223 = vmatprep.mubr.bf16.mxu1 %v1601_v19 }
 0x17d   :  { %vm1250_vm8 = vcmp.gt.f32.partialorder %v916_v21, 0.0  ;;  %v1378_v25 = vmul.f32 0.1, %v916_v21  ;;  %v908_v26 = vadd.f32 %v3525_v4, %v907_v23  ;;  %3224 = vmatmul.mubr.bf16.gmra.mxu1 %v1602_v22  ;;  %v1503_v33 = vsel %vm1247_vm9, %v905_v14, %v1375_v24 }
 0x17e   :  { %v3089_v28 = vpop.f32.mrf.mxu0 }
 0x17f   :  { %vm1248_vm11 = vcmp.gt.f32.partialorder %v908_v26, 0.0  ;;  %v1376_v29 = vmul.f32 0.1, %v908_v26  ;;  %v1506_v31 = vsel %vm1250_vm8, %v916_v21, %v1378_v25  ;;  %v929_v35 = vadd.f32 %v3089_v28, %v3525_v4 }
 0x180   :  { %v920_v30 = vpop.f32.mrf.mxu0  ;;  %v1604_v40 = vpack.c.bf16 %v1506_v31, %v1505_v38 }
 0x181   :  { %v921_v32 = vadd.f32 %v3525_v4, %v920_v30  ;;  %v1504_v34 = vsel %vm1248_vm11, %v908_v26, %v1376_v29  ;;  %v1381_v45 = vmul.f32 0.1, %v929_v35  ;;  %vm1253_vm14 = vcmp.gt.f32.partialorder %v929_v35, 0.0 }
 0x182   :  { %v3090_v36 = vpop.f32.mrf.mxu0  ;;  %v1603_v37 = vpack.c.bf16 %v1504_v34, %v1503_v33 }
 0x183   :  { %v932_v39 = vadd.f32 %v3090_v36, %v3525_v4  ;;  %v1379_v42 = vmul.f32 0.1, %v921_v32  ;;  %vm1251_vm13 = vcmp.gt.f32.partialorder %v921_v32, 0.0  ;;  %v1509_v56 = vsel %vm1253_vm14, %v929_v35, %v1381_v45 }
 0x184   :  { %v923_v41 = vpop.f32.mrf.mxu0  ;;  %3227 = vmatprep.mubr.bf16.mxu1 %v1603_v37 }
 0x185   :  { %vm1254_vm12 = vcmp.gt.f32.partialorder %v932_v39, 0.0  ;;  %v1382_v43 = vmul.f32 0.1, %v932_v39  ;;  %v924_v44 = vadd.f32 %v3525_v4, %v923_v41  ;;  %3228 = vmatmul.mubr.bf16.gmra.mxu1 %v1604_v40  ;;  %v1507_v51 = vsel %vm1251_vm13, %v921_v32, %v1379_v42 }
 0x186   :  { %v3093_v46 = vpop.f32.mrf.mxu0 }
 0x187   :  { %vm1252_vm15 = vcmp.gt.f32.partialorder %v924_v44, 0.0  ;;  %v1380_v47 = vmul.f32 0.1, %v924_v44  ;;  %v1510_v49 = vsel %vm1254_vm12, %v932_v39, %v1382_v43  ;;  %v945_v53 = vadd.f32 %v3093_v46, %v3525_v4 }
 0x188   :  { %v936_v48 = vpop.f32.mrf.mxu0  ;;  %v1606_v58 = vpack.c.bf16 %v1510_v49, %v1509_v56 }
 0x189   :  { %v937_v50 = vadd.f32 %v3525_v4, %v936_v48  ;;  %v1508_v52 = vsel %vm1252_vm15, %v924_v44, %v1380_v47  ;;  %v1385_v63 = vmul.f32 0.1, %v945_v53  ;;  %vm1257_vm2 = vcmp.gt.f32.partialorder %v945_v53, 0.0 }
 0x18a   :  { %v3094_v54 = vpop.f32.mrf.mxu0  ;;  %v1605_v55 = vpack.c.bf16 %v1508_v52, %v1507_v51 }
 0x18b   :  { %v948_v57 = vadd.f32 %v3094_v54, %v3525_v4  ;;  %v1383_v60 = vmul.f32 0.1, %v937_v50  ;;  %vm1255_vm1 = vcmp.gt.f32.partialorder %v937_v50, 0.0  ;;  %v1513_v11 = vsel %vm1257_vm2, %v945_v53, %v1385_v63 }
 0x18c   :  { %v939_v59 = vpop.f32.mrf.mxu0  ;;  %3231 = vmatprep.mubr.bf16.mxu1 %v1605_v55 }
 0x18d   :  { %vm1258_vm0 = vcmp.gt.f32.partialorder %v948_v57, 0.0  ;;  %v1386_v61 = vmul.f32 0.1, %v948_v57  ;;  %v940_v62 = vadd.f32 %v3525_v4, %v939_v59  ;;  %3232 = vmatmul.mubr.bf16.gmra.mxu1 %v1606_v58  ;;  %v1511_v6 = vsel %vm1255_vm1, %v937_v50, %v1383_v60 }
 0x18e   :  { %v3097_v0 = vpop.f32.mrf.mxu0 }
 0x18f   :  { %vm1256_vm3 = vcmp.gt.f32.partialorder %v940_v62, 0.0  ;;  %v1384_v1 = vmul.f32 0.1, %v940_v62  ;;  %v1514_v3 = vsel %vm1258_vm0, %v948_v57, %v1386_v61  ;;  %v961_v8 = vadd.f32 %v3097_v0, %v3525_v4 }
 0x190   :  { %v952_v2 = vpop.f32.mrf.mxu0  ;;  %v1608_v13 = vpack.c.bf16 %v1514_v3, %v1513_v11 }
 0x191   :  { %v953_v5 = vadd.f32 %v3525_v4, %v952_v2  ;;  %v1512_v7 = vsel %vm1256_vm3, %v940_v62, %v1384_v1  ;;  %v1389_v18 = vmul.f32 0.1, %v961_v8  ;;  %vm1261_vm6 = vcmp.gt.f32.partialorder %v961_v8, 0.0 }
 0x192   :  { %v3098_v9 = vpop.f32.mrf.mxu0  ;;  %v1607_v10 = vpack.c.bf16 %v1512_v7, %v1511_v6 }
 0x193   :  { %v964_v12 = vadd.f32 %v3098_v9, %v3525_v4  ;;  %v1387_v15 = vmul.f32 0.1, %v953_v5  ;;  %vm1259_vm5 = vcmp.gt.f32.partialorder %v953_v5, 0.0  ;;  %v1517_v29 = vsel %vm1261_vm6, %v961_v8, %v1389_v18  ;;  %v3613_v8 = vld [vmem:[%s3882_s2] ss:$0 sm:$0xff] }
 0x194   :  { %v955_v14 = vpop.f32.mrf.mxu0  ;;  %3235 = vmatprep.mubr.bf16.mxu1 %v1607_v10 }
 0x195   :  { %vm1262_vm4 = vcmp.gt.f32.partialorder %v964_v12, 0.0  ;;  %v1390_v16 = vmul.f32 0.1, %v964_v12  ;;  %v956_v17 = vadd.f32 %v3525_v4, %v955_v14  ;;  %3236 = vmatmul.mubr.bf16.gmra.mxu1 %v1608_v13  ;;  %v1515_v24 = vsel %vm1259_vm5, %v953_v5, %v1387_v15 }
 0x196   :  { %v3101_v19 = vpop.f32.mrf.mxu0 }
 0x197   :  { %vm1260_vm7 = vcmp.gt.f32.partialorder %v956_v17, 0.0  ;;  %v1388_v20 = vmul.f32 0.1, %v956_v17  ;;  %v1518_v22 = vsel %vm1262_vm4, %v964_v12, %v1390_v16  ;;  %v977_v26 = vadd.f32 %v3101_v19, %v3525_v4 }
 0x198   :  { %v968_v21 = vpop.f32.mrf.mxu0  ;;  %v1610_v31 = vpack.c.bf16 %v1518_v22, %v1517_v29 }
 0x199   :  { %v969_v23 = vadd.f32 %v3525_v4, %v968_v21  ;;  %v1516_v25 = vsel %vm1260_vm7, %v956_v17, %v1388_v20  ;;  %v1393_v36 = vmul.f32 0.1, %v977_v26  ;;  %vm1265_vm10 = vcmp.gt.f32.partialorder %v977_v26, 0.0 }
 0x19a   :  { %v3102_v27 = vpop.f32.mrf.mxu0  ;;  %v1609_v28 = vpack.c.bf16 %v1516_v25, %v1515_v24 }
 0x19b   :  { %v980_v30 = vadd.f32 %v3102_v27, %v3525_v4  ;;  %v1391_v33 = vmul.f32 0.1, %v969_v23  ;;  %vm1263_vm9 = vcmp.gt.f32.partialorder %v969_v23, 0.0  ;;  %v1521_v47 = vsel %vm1265_vm10, %v977_v26, %v1393_v36 }
 0x19c   :  { %v971_v32 = vpop.f32.mrf.mxu0  ;;  %3239 = vmatprep.mubr.bf16.mxu1 %v1609_v28 }
 0x19d   :  { %vm1266_vm8 = vcmp.gt.f32.partialorder %v980_v30, 0.0  ;;  %v1394_v34 = vmul.f32 0.1, %v980_v30  ;;  %v972_v35 = vadd.f32 %v3525_v4, %v971_v32  ;;  %3240 = vmatmul.mubr.bf16.gmra.mxu1 %v1610_v31  ;;  %v1519_v42 = vsel %vm1263_vm9, %v969_v23, %v1391_v33 }
 0x19e   :  { %v3105_v37 = vpop.f32.mrf.mxu0 }
 0x19f   :  { %vm1264_vm11 = vcmp.gt.f32.partialorder %v972_v35, 0.0  ;;  %v1392_v38 = vmul.f32 0.1, %v972_v35  ;;  %v1522_v40 = vsel %vm1266_vm8, %v980_v30, %v1394_v34  ;;  %v993_v44 = vadd.f32 %v3105_v37, %v3525_v4 }
 0x1a0   :  { %v984_v39 = vpop.f32.mrf.mxu0  ;;  %v1612_v49 = vpack.c.bf16 %v1522_v40, %v1521_v47 }
 0x1a1   :  { %v985_v41 = vadd.f32 %v3525_v4, %v984_v39  ;;  %v1520_v43 = vsel %vm1264_vm11, %v972_v35, %v1392_v38  ;;  %v1397_v54 = vmul.f32 0.1, %v993_v44  ;;  %vm1269_vm14 = vcmp.gt.f32.partialorder %v993_v44, 0.0 }
 0x1a2   :  { %v3106_v45 = vpop.f32.mrf.mxu0  ;;  %v1611_v46 = vpack.c.bf16 %v1520_v43, %v1519_v42 }
 0x1a3   :  { %v996_v48 = vadd.f32 %v3106_v45, %v3525_v4  ;;  %v1395_v51 = vmul.f32 0.1, %v985_v41  ;;  %vm1267_vm13 = vcmp.gt.f32.partialorder %v985_v41, 0.0  ;;  %v1525_v1 = vsel %vm1269_vm14, %v993_v44, %v1397_v54 }
 0x1a4   :  { %v987_v50 = vpop.f32.mrf.mxu0  ;;  %3243 = vmatprep.mubr.bf16.mxu1 %v1611_v46 }
 0x1a5   :  { %vm1270_vm12 = vcmp.gt.f32.partialorder %v996_v48, 0.0  ;;  %v1398_v52 = vmul.f32 0.1, %v996_v48  ;;  %v988_v53 = vadd.f32 %v3525_v4, %v987_v50  ;;  %3244 = vmatmul.mubr.bf16.gmra.mxu1 %v1612_v49  ;;  %v1523_v60 = vsel %vm1267_vm13, %v985_v41, %v1395_v51 }
 0x1a6   :  { %v3109_v55 = vpop.f32.mrf.mxu0 }
 0x1a7   :  { %vm1268_vm15 = vcmp.gt.f32.partialorder %v988_v53, 0.0  ;;  %v1396_v56 = vmul.f32 0.1, %v988_v53  ;;  %v1526_v58 = vsel %vm1270_vm12, %v996_v48, %v1398_v52  ;;  %v1009_v62 = vadd.f32 %v3109_v55, %v3525_v4 }
 0x1a8   :  { %v1000_v57 = vpop.f32.mrf.mxu0  ;;  %v1614_v3 = vpack.c.bf16 %v1526_v58, %v1525_v1 }
 0x1a9   :  { %v1001_v59 = vadd.f32 %v3525_v4, %v1000_v57  ;;  %v1524_v61 = vsel %vm1268_vm15, %v988_v53, %v1396_v56  ;;  %v1401_v10 = vmul.f32 0.1, %v1009_v62  ;;  %vm1273_vm2 = vcmp.gt.f32.partialorder %v1009_v62, 0.0 }
 0x1aa   :  { %v3110_v63 = vpop.f32.mrf.mxu0  ;;  %v1613_v0 = vpack.c.bf16 %v1524_v61, %v1523_v60 }
 0x1ab   :  { %v1012_v2 = vadd.f32 %v3110_v63, %v3525_v4  ;;  %v1399_v6 = vmul.f32 0.1, %v1001_v59  ;;  %vm1271_vm1 = vcmp.gt.f32.partialorder %v1001_v59, 0.0  ;;  %v1529_v20 = vsel %vm1273_vm2, %v1009_v62, %v1401_v10 }
 0x1ac   :  { %v1003_v5 = vpop.f32.mrf.mxu0  ;;  %3247 = vmatprep.mubr.bf16.mxu1 %v1613_v0 }
 0x1ad   :  { %vm1274_vm0 = vcmp.gt.f32.partialorder %v1012_v2, 0.0  ;;  %v1402_v7 = vmul.f32 0.1, %v1012_v2  ;;  %v1004_v9 = vadd.f32 %v3613_v8, %v1003_v5  ;;  %3248 = vmatmul.mubr.bf16.gmra.mxu1 %v1614_v3  ;;  %v1527_v15 = vsel %vm1271_vm1, %v1001_v59, %v1399_v6 }
 0x1ae   :  { %v3113_v11 = vpop.f32.mrf.mxu0 }
 0x1af   :  { %vm1272_vm3 = vcmp.gt.f32.partialorder %v1004_v9, 0.0  ;;  %v1400_v4 = vmul.f32 0.1, %v1004_v9  ;;  %v1530_v13 = vsel %vm1274_vm0, %v1012_v2, %v1402_v7  ;;  %v1025_v17 = vadd.f32 %v3613_v8, %v3113_v11 }
 0x1b0   :  { %v1016_v12 = vpop.f32.mrf.mxu0  ;;  %v1616_v22 = vpack.c.bf16 %v1530_v13, %v1529_v20 }
 0x1b1   :  { %v1017_v14 = vadd.f32 %v3613_v8, %v1016_v12  ;;  %v1528_v16 = vsel %vm1272_vm3, %v1004_v9, %v1400_v4  ;;  %v1405_v27 = vmul.f32 0.1, %v1025_v17  ;;  %vm1277_vm6 = vcmp.gt.f32.partialorder %v1025_v17, 0.0 }
 0x1b2   :  { %v3114_v18 = vpop.f32.mrf.mxu0  ;;  %v1615_v19 = vpack.c.bf16 %v1528_v16, %v1527_v15 }
 0x1b3   :  { %v1028_v21 = vadd.f32 %v3613_v8, %v3114_v18  ;;  %v1403_v24 = vmul.f32 0.1, %v1017_v14  ;;  %vm1275_vm5 = vcmp.gt.f32.partialorder %v1017_v14, 0.0  ;;  %v1533_v38 = vsel %vm1277_vm6, %v1025_v17, %v1405_v27 }
 0x1b4   :  { %v1019_v23 = vpop.f32.mrf.mxu0  ;;  %3251 = vmatprep.mubr.bf16.mxu1 %v1615_v19 }
 0x1b5   :  { %vm1278_vm4 = vcmp.gt.f32.partialorder %v1028_v21, 0.0  ;;  %v1406_v25 = vmul.f32 0.1, %v1028_v21  ;;  %v1020_v26 = vadd.f32 %v3613_v8, %v1019_v23  ;;  %3252 = vmatmul.mubr.bf16.gmra.mxu1 %v1616_v22  ;;  %v1531_v33 = vsel %vm1275_vm5, %v1017_v14, %v1403_v24 }
 0x1b6   :  { %v3117_v28 = vpop.f32.mrf.mxu0 }
 0x1b7   :  { %vm1276_vm7 = vcmp.gt.f32.partialorder %v1020_v26, 0.0  ;;  %v1404_v29 = vmul.f32 0.1, %v1020_v26  ;;  %v1534_v31 = vsel %vm1278_vm4, %v1028_v21, %v1406_v25  ;;  %v1041_v35 = vadd.f32 %v3613_v8, %v3117_v28 }
 0x1b8   :  { %v1032_v30 = vpop.f32.mrf.mxu0  ;;  %v1618_v40 = vpack.c.bf16 %v1534_v31, %v1533_v38  ;;  %v3638_v31 = vld [vmem:[%s3884_s4] ss:$0 sm:$0xff] }
 0x1b9   :  { %v1033_v32 = vadd.f32 %v3613_v8, %v1032_v30  ;;  %v1532_v34 = vsel %vm1276_vm7, %v1020_v26, %v1404_v29  ;;  %v1409_v45 = vmul.f32 0.1, %v1041_v35  ;;  %vm1281_vm10 = vcmp.gt.f32.partialorder %v1041_v35, 0.0 }
 0x1ba   :  { %v3118_v36 = vpop.f32.mrf.mxu0  ;;  %v1617_v37 = vpack.c.bf16 %v1532_v34, %v1531_v33 }
 0x1bb   :  { %v1044_v39 = vadd.f32 %v3613_v8, %v3118_v36  ;;  %v1407_v42 = vmul.f32 0.1, %v1033_v32  ;;  %vm1279_vm9 = vcmp.gt.f32.partialorder %v1033_v32, 0.0  ;;  %v1537_v56 = vsel %vm1281_vm10, %v1041_v35, %v1409_v45 }
 0x1bc   :  { %v1035_v41 = vpop.f32.mrf.mxu0  ;;  %3255 = vmatprep.mubr.bf16.mxu1 %v1617_v37 }
 0x1bd   :  { %vm1282_vm8 = vcmp.gt.f32.partialorder %v1044_v39, 0.0  ;;  %v1410_v43 = vmul.f32 0.1, %v1044_v39  ;;  %v1036_v44 = vadd.f32 %v3613_v8, %v1035_v41  ;;  %3256 = vmatmul.mubr.bf16.gmra.mxu1 %v1618_v40  ;;  %v1535_v51 = vsel %vm1279_vm9, %v1033_v32, %v1407_v42 }
 0x1be   :  { %v3121_v46 = vpop.f32.mrf.mxu0 }
 0x1bf   :  { %vm1280_vm11 = vcmp.gt.f32.partialorder %v1036_v44, 0.0  ;;  %v1408_v47 = vmul.f32 0.1, %v1036_v44  ;;  %v1538_v49 = vsel %vm1282_vm8, %v1044_v39, %v1410_v43  ;;  %v1057_v53 = vadd.f32 %v3613_v8, %v3121_v46 }
 0x1c0   :  { %v1048_v48 = vpop.f32.mrf.mxu0  ;;  %v1620_v58 = vpack.c.bf16 %v1538_v49, %v1537_v56 }
 0x1c1   :  { %v1049_v50 = vadd.f32 %v3613_v8, %v1048_v48  ;;  %v1536_v52 = vsel %vm1280_vm11, %v1036_v44, %v1408_v47  ;;  %v1413_v63 = vmul.f32 0.1, %v1057_v53  ;;  %vm1285_vm14 = vcmp.gt.f32.partialorder %v1057_v53, 0.0 }
 0x1c2   :  { %v3122_v54 = vpop.f32.mrf.mxu0  ;;  %v1619_v55 = vpack.c.bf16 %v1536_v52, %v1535_v51 }
 0x1c3   :  { %v1060_v57 = vadd.f32 %v3613_v8, %v3122_v54  ;;  %v1411_v60 = vmul.f32 0.1, %v1049_v50  ;;  %vm1283_vm13 = vcmp.gt.f32.partialorder %v1049_v50, 0.0  ;;  %v1541_v4 = vsel %vm1285_vm14, %v1057_v53, %v1413_v63 }
 0x1c4   :  { %v1051_v59 = vpop.f32.mrf.mxu0  ;;  %3259 = vmatprep.mubr.bf16.mxu1 %v1619_v55 }
 0x1c5   :  { %vm1286_vm12 = vcmp.gt.f32.partialorder %v1060_v57, 0.0  ;;  %v1414_v61 = vmul.f32 0.1, %v1060_v57  ;;  %v1052_v62 = vadd.f32 %v3613_v8, %v1051_v59  ;;  %3260 = vmatmul.mubr.bf16.gmra.mxu1 %v1620_v58  ;;  %v1539_v6 = vsel %vm1283_vm13, %v1049_v50, %v1411_v60 }
 0x1c6   :  { %v3125_v0 = vpop.f32.mrf.mxu0 }
 0x1c7   :  { %vm1284_vm15 = vcmp.gt.f32.partialorder %v1052_v62, 0.0  ;;  %v1412_v1 = vmul.f32 0.1, %v1052_v62  ;;  %v1542_v3 = vsel %vm1286_vm12, %v1060_v57, %v1414_v61  ;;  %v1073_v9 = vadd.f32 %v3613_v8, %v3125_v0 }
 0x1c8   :  { %v1064_v2 = vpop.f32.mrf.mxu0  ;;  %v1622_v13 = vpack.c.bf16 %v1542_v3, %v1541_v4 }
 0x1c9   :  { %v1065_v5 = vadd.f32 %v3613_v8, %v1064_v2  ;;  %v1540_v7 = vsel %vm1284_vm15, %v1052_v62, %v1412_v1  ;;  %v1417_v18 = vmul.f32 0.1, %v1073_v9  ;;  %vm1289_vm2 = vcmp.gt.f32.partialorder %v1073_v9, 0.0 }
 0x1ca   :  { %v3126_v10 = vpop.f32.mrf.mxu0  ;;  %v1621_v11 = vpack.c.bf16 %v1540_v7, %v1539_v6 }
 0x1cb   :  { %v1076_v12 = vadd.f32 %v3613_v8, %v3126_v10  ;;  %v1415_v15 = vmul.f32 0.1, %v1065_v5  ;;  %vm1287_vm1 = vcmp.gt.f32.partialorder %v1065_v5, 0.0  ;;  %v1545_v29 = vsel %vm1289_vm2, %v1073_v9, %v1417_v18 }
 0x1cc   :  { %v1067_v14 = vpop.f32.mrf.mxu0  ;;  %3263 = vmatprep.mubr.bf16.mxu1 %v1621_v11 }
 0x1cd   :  { %vm1290_vm0 = vcmp.gt.f32.partialorder %v1076_v12, 0.0  ;;  %v1418_v16 = vmul.f32 0.1, %v1076_v12  ;;  %v1068_v17 = vadd.f32 %v3613_v8, %v1067_v14  ;;  %3264 = vmatmul.mubr.bf16.gmra.mxu1 %v1622_v13  ;;  %v1543_v25 = vsel %vm1287_vm1, %v1065_v5, %v1415_v15 }
 0x1ce   :  { %v3129_v19 = vpop.f32.mrf.mxu0 }
 0x1cf   :  { %vm1288_vm3 = vcmp.gt.f32.partialorder %v1068_v17, 0.0  ;;  %v1416_v20 = vmul.f32 0.1, %v1068_v17  ;;  %v1089_v21 = vadd.f32 %v3613_v8, %v3129_v19  ;;  %v1546_v23 = vsel %vm1290_vm0, %v1076_v12, %v1418_v16 }
 0x1d0   :  { %v1080_v22 = vpop.f32.mrf.mxu0  ;;  %v1624_v32 = vpack.c.bf16 %v1546_v23, %v1545_v29 }
 0x1d1   :  { %v1081_v24 = vadd.f32 %v3613_v8, %v1080_v22  ;;  %v1544_v26 = vsel %vm1288_vm3, %v1068_v17, %v1416_v20  ;;  %v1421_v33 = vmul.f32 0.1, %v1089_v21  ;;  %vm1293_vm5 = vcmp.gt.f32.partialorder %v1089_v21, 0.0 }
 0x1d2   :  { %v3130_v27 = vpop.f32.mrf.mxu0  ;;  %v1623_v28 = vpack.c.bf16 %v1544_v26, %v1543_v25 }
 0x1d3   :  { %v1092_v30 = vadd.f32 %v3613_v8, %v3130_v27  ;;  %v1419_v35 = vmul.f32 0.1, %v1081_v24  ;;  %vm1291_vm6 = vcmp.gt.f32.partialorder %v1081_v24, 0.0  ;;  %v1549_v52 = vsel %vm1293_vm5, %v1089_v21, %v1421_v33 }
 0x1d4   :  { %v1083_v34 = vpop.f32.mrf.mxu0  ;;  %3267 = vmatprep.mubr.bf16.mxu1 %v1623_v28 }
 0x1d5   :  { %vm1294_vm4 = vcmp.gt.f32.partialorder %v1092_v30, 0.0  ;;  %v1422_v36 = vmul.f32 0.1, %v1092_v30  ;;  %v1084_v37 = vadd.f32 %v3613_v8, %v1083_v34  ;;  %v3173_v38 = vpop.f32.mrf.mxu1  ;;  %3268 = vmatmul.mubr.bf16.gmra.mxu1 %v1624_v32  ;;  %v1547_v50 = vsel %vm1291_vm6, %v1081_v24, %v1419_v35 }
 0x1d6   :  { %v1753_v39 = vadd.f32 %v3173_v38, %v3638_v31  ;;  %v3133_v40 = vpop.f32.mrf.mxu0 }
 0x1d7   :  { %vm1292_vm7 = vcmp.gt.f32.partialorder %v1084_v37, 0.0  ;;  %v1420_v41 = vmul.f32 0.1, %v1084_v37  ;;  %v3643_v42 = vadd.f32 %v3613_v8, %v3133_v40  ;;  %v1744_v43 = vpop.f32.mrf.mxu1  ;;  %v1550_v47 = vsel %vm1294_vm4, %v1092_v30, %v1422_v36 }
 0x1d8   :  { %vm2257_vm8 = vcmp.gt.f32.partialorder %v1753_v39, 0.0  ;;  %v2385_v44 = vmul.f32 0.1, %v1753_v39  ;;  %v1745_v45 = vadd.f32 %v3638_v31, %v1744_v43  ;;  %v1096_v46 = vpop.f32.mrf.mxu0  ;;  %v1626_v60 = vpack.c.bf16 %v1550_v47, %v1549_v52 }
 0x1d9   :  { %v1097_v48 = vadd.f32 %v3613_v8, %v1096_v46  ;;  %v3174_v49 = vpop.f32.mrf.mxu1  ;;  %v1548_v51 = vsel %vm1292_vm7, %v1084_v37, %v1420_v41  ;;  %vm1297_vm10 = vcmp.gt.f32.partialorder %v3643_v42, 0.0  ;;  %v1425_v1 = vmul.f32 0.1, %v3643_v42 }
 0x1da   :  { %v2513_v53 = vsel %vm2257_vm8, %v1753_v39, %v2385_v44  ;;  %vm2255_vm9 = vcmp.gt.f32.partialorder %v1745_v45, 0.0  ;;  %v2383_v54 = vmul.f32 0.1, %v1745_v45  ;;  %v1756_v55 = vadd.f32 %v3174_v49, %v3638_v31  ;;  %v3134_v56 = vpop.f32.mrf.mxu0 }
 0x1db   :  { %2641 = vst [vmem:[#allocation8 + $0x10] sm:$0xff] %v2513_v53  ;;  %v1108_v57 = vadd.f32 %v3613_v8, %v3134_v56  ;;  %v1747_v58 = vpop.f32.mrf.mxu1  ;;  %v1625_v59 = vpack.c.bf16 %v1548_v51, %v1547_v50  ;;  %vm1295_vm12 = vcmp.gt.f32.partialorder %v1097_v48, 0.0  ;;  %v1423_v2 = vmul.f32 0.1, %v1097_v48 }
 0x1dc   :  { %v2511_v61 = vsel %vm2255_vm9, %v1745_v45, %v2383_v54  ;;  %vm2258_vm11 = vcmp.gt.f32.partialorder %v1756_v55, 0.0  ;;  %v2386_v62 = vmul.f32 0.1, %v1756_v55  ;;  %v1748_v63 = vadd.f32 %v3638_v31, %v1747_v58  ;;  %v1099_v0 = vpop.f32.mrf.mxu0 }
 0x1dd   :  { %2639 = vst [vmem:[#allocation8] sm:$0xff] %v2511_v61  ;;  %v1100_v3 = vadd.f32 %v3613_v8, %v1099_v0  ;;  %3271 = vmatprep.mubr.bf16.mxu1 %v1625_v59  ;;  %v3177_v5 = vpop.f32.mrf.mxu1  ;;  %vm1298_vm14 = vcmp.gt.f32.partialorder %v1108_v57, 0.0  ;;  %v1426_v11 = vmul.f32 0.1, %v1108_v57  ;;  %v1551_v20 = vsel %vm1295_vm12, %v1097_v48, %v1423_v2 }
 0x1de   :  { %v2514_v6 = vsel %vm2258_vm11, %v1756_v55, %v2386_v62  ;;  %vm2256_vm13 = vcmp.gt.f32.partialorder %v1748_v63, 0.0  ;;  %v2384_v7 = vmul.f32 0.1, %v1748_v63  ;;  %v1769_v9 = vadd.f32 %v3177_v5, %v3638_v31  ;;  %3272 = vmatmul.mubr.bf16.gmra.mxu1 %v1626_v60  ;;  %v3137_v10 = vpop.f32.mrf.mxu0 }
 0x1df   :  { %2642 = vst [vmem:[#allocation8 + $0x18] sm:$0xff] %v2514_v6  ;;  %vm1296_vm15 = vcmp.gt.f32.partialorder %v1100_v3, 0.0  ;;  %v1424_v4 = vmul.f32 0.1, %v1100_v3  ;;  %v1760_v12 = vpop.f32.mrf.mxu1  ;;  %v3658_v17 = vadd.f32 %v3613_v8, %v3137_v10  ;;  %v1553_v29 = vsel %vm1297_vm10, %v3643_v42, %v1425_v1 }
 0x1e0   :  { %v2512_v13 = vsel %vm2256_vm13, %v1748_v63, %v2384_v7  ;;  %vm2261_vm0 = vcmp.gt.f32.partialorder %v1769_v9, 0.0  ;;  %v2389_v14 = vmul.f32 0.1, %v1769_v9  ;;  %v1761_v15 = vadd.f32 %v3638_v31, %v1760_v12  ;;  %v1112_v16 = vpop.f32.mrf.mxu0 }
 0x1e1   :  { %2640 = vst [vmem:[#allocation8 + $0x8] sm:$0xff] %v2512_v13  ;;  %v1113_v18 = vadd.f32 %v3613_v8, %v1112_v16  ;;  %v3178_v19 = vpop.f32.mrf.mxu1  ;;  %v1552_v21 = vsel %vm1296_vm15, %v1100_v3, %v1424_v4  ;;  %vm1301_vm3 = vcmp.gt.f32.partialorder %v3658_v17, 0.0  ;;  %v3672_v35 = vmul.f32 0.1, %v3658_v17 }
 0x1e2   :  { %v2517_v22 = vsel %vm2261_vm0, %v1769_v9, %v2389_v14  ;;  %vm2259_vm1 = vcmp.gt.f32.partialorder %v1761_v15, 0.0  ;;  %v2387_v23 = vmul.f32 0.1, %v1761_v15  ;;  %v1772_v24 = vadd.f32 %v3178_v19, %v3638_v31  ;;  %v3138_v25 = vpop.f32.mrf.mxu0 }
 0x1e3   :  { %2645 = vst [vmem:[#allocation8 + $0x30] sm:$0xff] %v2517_v22  ;;  %v3664_v26 = vadd.f32 %v3613_v8, %v3138_v25  ;;  %v1763_v27 = vpop.f32.mrf.mxu1  ;;  %v1627_v28 = vpack.c.bf16 %v1552_v21, %v1551_v20  ;;  %vm1299_vm4 = vcmp.gt.f32.partialorder %v1113_v18, 0.0  ;;  %v1554_v38 = vsel %vm1298_vm14, %v1108_v57, %v1426_v11 }
 0x1e4   :  { %v2515_v30 = vsel %vm2259_vm1, %v1761_v15, %v2387_v23  ;;  %vm2262_vm2 = vcmp.gt.f32.partialorder %v1772_v24, 0.0  ;;  %v2390_v32 = vmul.f32 0.1, %v1772_v24  ;;  %v1764_v33 = vadd.f32 %v3638_v31, %v1763_v27  ;;  %v1115_v34 = vpop.f32.mrf.mxu0 }
 0x1e5   :  { %2643 = vst [vmem:[#allocation8 + $0x20] sm:$0xff] %v2515_v30  ;;  %v1116_v36 = vadd.f32 %v3613_v8, %v1115_v34  ;;  %3275 = vmatprep.mubr.bf16.mxu1 %v1627_v28  ;;  %v3181_v37 = vpop.f32.mrf.mxu1  ;;  %v1427_v43 = vmul.f32 0.1, %v1113_v18  ;;  %vm1302_vm6 = vcmp.gt.f32.partialorder %v3664_v26, 0.0  ;;  %v1628_v44 = vpack.c.bf16 %v1554_v38, %v1553_v29 }
 0x1e6   :  { %v2518_v39 = vsel %vm2262_vm2, %v1772_v24, %v2390_v32  ;;  %vm2260_vm5 = vcmp.gt.f32.partialorder %v1764_v33, 0.0  ;;  %v2388_v40 = vmul.f32 0.1, %v1764_v33  ;;  %v1785_v41 = vadd.f32 %v3181_v37, %v3638_v31  ;;  %v3141_v42 = vpop.f32.mrf.mxu0 }
 0x1e7   :  { %2646 = vst [vmem:[#allocation8 + $0x38] sm:$0xff] %v2518_v39  ;;  %v1137_v45 = vadd.f32 %v3613_v8, %v3141_v42  ;;  %v1776_v46 = vpop.f32.mrf.mxu1  ;;  %v1430_v51 = vmul.f32 0.1, %v3664_v26  ;;  %vm1300_vm8 = vcmp.gt.f32.partialorder %v1116_v36, 0.0  ;;  %v1428_v52 = vmul.f32 0.1, %v1116_v36  ;;  %3276 = vmatmul.mubr.bf16.gmra.mxu1 %v1628_v44 }
 0x1e8   :  { %v2516_v47 = vsel %vm2260_vm5, %v1764_v33, %v2388_v40  ;;  %vm2265_vm7 = vcmp.gt.f32.partialorder %v1785_v41, 0.0  ;;  %v2393_v48 = vmul.f32 0.1, %v1785_v41  ;;  %v1777_v49 = vadd.f32 %v3638_v31, %v1776_v46  ;;  %v1128_v50 = vpop.f32.mrf.mxu0 }
 0x1e9   :  { %2644 = vst [vmem:[#allocation8 + $0x28] sm:$0xff] %v2516_v47  ;;  %vm1305_vm9 = vcmp.gt.f32.partialorder %v1137_v45, 0.0  ;;  %v3182_v53 = vpop.f32.mrf.mxu1  ;;  %v1433_v58 = vmul.f32 0.1, %v1137_v45  ;;  %v3683_v59 = vadd.f32 %v3613_v8, %v1128_v50  ;;  %v1555_v62 = vsel %vm1299_vm4, %v1113_v18, %v1427_v43 }
 0x1ea   :  { %v2521_v54 = vsel %vm2265_vm7, %v1785_v41, %v2393_v48  ;;  %vm2263_vm10 = vcmp.gt.f32.partialorder %v1777_v49, 0.0  ;;  %v2391_v55 = vmul.f32 0.1, %v1777_v49  ;;  %v1788_v56 = vadd.f32 %v3182_v53, %v3638_v31  ;;  %v3142_v57 = vpop.f32.mrf.mxu0 }
 0x1eb   :  { %2649 = vst [vmem:[#allocation8 + $0x50] sm:$0xff] %v2521_v54  ;;  %v1140_v60 = vadd.f32 %v3613_v8, %v3142_v57  ;;  %v1779_v61 = vpop.f32.mrf.mxu1  ;;  %v1556_v6 = vsel %vm1300_vm8, %v1116_v36, %v1428_v52  ;;  %v3691_v12 = vsel %vm1305_vm9, %v1137_v45, %v1433_v58  ;;  %vm1303_vm14 = vcmp.gt.f32.partialorder %v3683_v59, 0.0 }
 0x1ec   :  { %v2519_v63 = vsel %vm2263_vm10, %v1777_v49, %v2391_v55  ;;  %vm2266_vm11 = vcmp.gt.f32.partialorder %v1788_v56, 0.0  ;;  %v2394_v0 = vmul.f32 0.1, %v1788_v56  ;;  %v1780_v1 = vadd.f32 %v3638_v31, %v1779_v61  ;;  %v1131_v2 = vpop.f32.mrf.mxu0 }
 0x1ed   :  { %2647 = vst [vmem:[#allocation8 + $0x40] sm:$0xff] %v2519_v63  ;;  %vm1306_vm12 = vcmp.gt.f32.partialorder %v1140_v60, 0.0  ;;  %v1434_v3 = vmul.f32 0.1, %v1140_v60  ;;  %v1132_v5 = vadd.f32 %v3613_v8, %v1131_v2  ;;  %v3185_v7 = vpop.f32.mrf.mxu1  ;;  %v1629_v11 = vpack.c.bf16 %v1556_v6, %v1555_v62 }
 0x1ee   :  { %v2522_v9 = vsel %vm2266_vm11, %v1788_v56, %v2394_v0  ;;  %vm2264_vm13 = vcmp.gt.f32.partialorder %v1780_v1, 0.0  ;;  %v2392_v10 = vmul.f32 0.1, %v1780_v1  ;;  %v3145_v4 = vpop.f32.mrf.mxu0  ;;  %v1801_v13 = vadd.f32 %v3185_v7, %v3638_v31 }
 0x1ef   :  { %2650 = vst [vmem:[#allocation8 + $0x58] sm:$0xff] %v2522_v9  ;;  %v1792_v14 = vpop.f32.mrf.mxu1  ;;  %v3695_v15 = vsel %vm1306_vm12, %v1140_v60, %v1434_v3  ;;  %3279 = vmatprep.mubr.bf16.mxu1 %v1629_v11  ;;  %v1557_v18 = vsel %vm1301_vm3, %v3658_v17, %v3672_v35  ;;  %v1558_v19 = vsel %vm1302_vm6, %v3664_v26, %v1430_v51  ;;  %v1431_v25 = vmul.f32 0.1, %v3683_v59 }
 0x1f0   :  { %v2520_v16 = vsel %vm2264_vm13, %v1780_v1, %v2392_v10  ;;  %v1144_v20 = vpop.f32.mrf.mxu0  ;;  %vm2269_vm15 = vcmp.gt.f32.partialorder %v1801_v13, 0.0  ;;  %v2397_v21 = vmul.f32 0.1, %v1801_v13  ;;  %v1630_v22 = vpack.c.bf16 %v1558_v19, %v1557_v18 }
 0x1f1   :  { %2648 = vst [vmem:[#allocation8 + $0x48] sm:$0xff] %v2520_v16  ;;  %v1153_v23 = vadd.f32 %v3613_v8, %v3145_v4  ;;  %v3186_v24 = vpop.f32.mrf.mxu1  ;;  %vm1304_vm0 = vcmp.gt.f32.partialorder %v1132_v5, 0.0  ;;  %v1793_v27 = vadd.f32 %v3638_v31, %v1792_v14  ;;  %v1632_v29 = vpack.c.bf16 %v3695_v15, %v3691_v12 }
 0x1f2   :  { %v1804_v28 = vadd.f32 %v3186_v24, %v3638_v31  ;;  %v3146_v17 = vpop.f32.mrf.mxu0  ;;  %v1432_v26 = vmul.f32 0.1, %v1132_v5  ;;  %v2525_v30 = vsel %vm2269_vm15, %v1801_v13, %v2397_v21  ;;  %3280 = vmatmul.mubr.bf16.gmra.mxu1 %v1630_v22  ;;  %v3712_v35 = vadd.f32 %v3613_v8, %v1144_v20 }
 0x1f3   :  { %v1156_v32 = vadd.f32 %v3613_v8, %v3146_v17  ;;  %v1795_v33 = vpop.f32.mrf.mxu1  ;;  %2653 = vst [vmem:[#allocation8 + $0x70] sm:$0xff] %v2525_v30  ;;  %vm1309_vm1 = vcmp.gt.f32.partialorder %v1153_v23, 0.0  ;;  %vm2267_vm2 = vcmp.gt.f32.partialorder %v1793_v27, 0.0  ;;  %v2395_v34 = vmul.f32 0.1, %v1793_v27 }
 0x1f4   :  { %v1147_v36 = vpop.f32.mrf.mxu0  ;;  %v1437_v37 = vmul.f32 0.1, %v1153_v23  ;;  %vm2270_vm3 = vcmp.gt.f32.partialorder %v1804_v28, 0.0  ;;  %v2398_v38 = vmul.f32 0.1, %v1804_v28  ;;  %v1796_v42 = vadd.f32 %v3638_v31, %v1795_v33 }
 0x1f5   :  { %vm1310_vm4 = vcmp.gt.f32.partialorder %v1156_v32, 0.0  ;;  %v3189_v39 = vpop.f32.mrf.mxu1  ;;  %v2523_v40 = vsel %vm2267_vm2, %v1793_v27, %v2395_v34  ;;  %v1438_v41 = vmul.f32 0.1, %v1156_v32  ;;  %v1148_v43 = vadd.f32 %v3613_v8, %v1147_v36 }
 0x1f6   :  { %v3149_v44 = vpop.f32.mrf.mxu0  ;;  %2651 = vst [vmem:[#allocation8 + $0x60] sm:$0xff] %v2523_v40  ;;  %v2526_v45 = vsel %vm2270_vm3, %v1804_v28, %v2398_v38  ;;  %v1560_v46 = vsel %vm1304_vm0, %v1132_v5, %v1432_v26  ;;  %v1817_v47 = vadd.f32 %v3189_v39, %v3638_v31  ;;  %vm1307_vm5 = vcmp.gt.f32.partialorder %v3712_v35, 0.0 }
 0x1f7   :  { %v1169_v48 = vadd.f32 %v3613_v8, %v3149_v44  ;;  %v1808_v49 = vpop.f32.mrf.mxu1  ;;  %2654 = vst [vmem:[#allocation8 + $0x78] sm:$0xff] %v2526_v45  ;;  %vm2268_vm6 = vcmp.gt.f32.partialorder %v1796_v42, 0.0  ;;  %v2396_v50 = vmul.f32 0.1, %v1796_v42  ;;  %v1559_v51 = vsel %vm1303_vm14, %v3683_v59, %v1431_v25 }
 0x1f8   :  { %v1160_v52 = vpop.f32.mrf.mxu0  ;;  %v3724_v53 = vsel %vm1309_vm1, %v1153_v23, %v1437_v37  ;;  %v1435_v54 = vmul.f32 0.1, %v3712_v35  ;;  %v1631_v55 = vpack.c.bf16 %v1560_v46, %v1559_v51  ;;  %vm2273_vm7 = vcmp.gt.f32.partialorder %v1817_v47, 0.0 }
 0x1f9   :  { %v3190_v56 = vpop.f32.mrf.mxu1  ;;  %v3728_v57 = vsel %vm1310_vm4, %v1156_v32, %v1438_v41  ;;  %v2524_v58 = vsel %vm2268_vm6, %v1796_v42, %v2396_v50  ;;  %vm1308_vm8 = vcmp.gt.f32.partialorder %v1148_v43, 0.0  ;;  %v2401_v60 = vmul.f32 0.1, %v1817_v47 }
 0x1fa   :  { %v3150_v61 = vpop.f32.mrf.mxu0  ;;  %2652 = vst [vmem:[#allocation8 + $0x68] sm:$0xff] %v2524_v58  ;;  %3283 = vmatprep.mubr.bf16.mxu1 %v1631_v55  ;;  %v1441_v62 = vmul.f32 0.1, %v1169_v48  ;;  %v1809_v59 = vadd.f32 %v3638_v31, %v1808_v49  ;;  %v1820_v63 = vadd.f32 %v3190_v56, %v3638_v31  ;;  %v1436_v2 = vmul.f32 0.1, %v1148_v43 }
 0x1fb   :  { %v1172_v0 = vadd.f32 %v3613_v8, %v3150_v61  ;;  %v1811_v1 = vpop.f32.mrf.mxu1  ;;  %v2529_v3 = vsel %vm2273_vm7, %v1817_v47, %v2401_v60  ;;  %3284 = vmatmul.mubr.bf16.gmra.mxu1 %v1632_v29  ;;  %vm1313_vm9 = vcmp.gt.f32.partialorder %v1169_v48, 0.0  ;;  %v1634_v7 = vpack.c.bf16 %v3728_v57, %v3724_v53 }
 0x1fc   :  { %v1812_v5 = vadd.f32 %v3638_v31, %v1811_v1  ;;  %v1163_v6 = vpop.f32.mrf.mxu0  ;;  %2657 = vst [vmem:[#allocation8 + $0x90] sm:$0xff] %v2529_v3  ;;  %vm2271_vm10 = vcmp.gt.f32.partialorder %v1809_v59, 0.0  ;;  %v2399_v9 = vmul.f32 0.1, %v1809_v59  ;;  %v1161_v10 = vadd.f32 %v3613_v8, %v1160_v52 }
 0x1fd   :  { %v3193_v11 = vpop.f32.mrf.mxu1  ;;  %vm2274_vm11 = vcmp.gt.f32.partialorder %v1820_v63, 0.0  ;;  %v2402_v4 = vmul.f32 0.1, %v1820_v63  ;;  %vm1314_vm12 = vcmp.gt.f32.partialorder %v1172_v0, 0.0  ;;  %v1442_v12 = vmul.f32 0.1, %v1172_v0 }
 0x1fe   :  { %v3153_v13 = vpop.f32.mrf.mxu0  ;;  %v3737_v14 = vsel %vm1313_vm9, %v1169_v48, %v1441_v62  ;;  %v2527_v15 = vsel %vm2271_vm10, %v1809_v59, %v2399_v9  ;;  %vm2272_vm13 = vcmp.gt.f32.partialorder %v1812_v5, 0.0  ;;  %v2400_v16 = vmul.f32 0.1, %v1812_v5 }
 0x1ff   :  { %v1824_v18 = vpop.f32.mrf.mxu1  ;;  %2655 = vst [vmem:[#allocation8 + $0x80] sm:$0xff] %v2527_v15  ;;  %v2530_v19 = vsel %vm2274_vm11, %v1820_v63, %v2402_v4  ;;  %v1164_v20 = vadd.f32 %v3613_v8, %v1163_v6  ;;  %v1564_v21 = vsel %vm1308_vm8, %v1148_v43, %v1436_v2  ;;  %v1833_v22 = vadd.f32 %v3193_v11, %v3638_v31 }
 0x200   :  { %v1176_v23 = vpop.f32.mrf.mxu0  ;;  %vm1311_vm14 = vcmp.gt.f32.partialorder %v1161_v10, 0.0  ;;  %2658 = vst [vmem:[#allocation8 + $0x98] sm:$0xff] %v2530_v19  ;;  %v3743_v24 = vsel %vm1314_vm12, %v1172_v0, %v1442_v12  ;;  %v2528_v25 = vsel %vm2272_vm13, %v1812_v5, %v2400_v16  ;;  %v1563_v27 = vsel %vm1307_vm5, %v3712_v35, %v1435_v54 }
 0x201   :  { %v3194_v28 = vpop.f32.mrf.mxu1  ;;  %2656 = vst [vmem:[#allocation8 + $0x88] sm:$0xff] %v2528_v25  ;;  %v1633_v17 = vpack.c.bf16 %v1564_v21, %v1563_v27  ;;  %vm2277_vm15 = vcmp.gt.f32.partialorder %v1833_v22, 0.0  ;;  %v2405_v29 = vmul.f32 0.1, %v1833_v22  ;;  %v3749_v26 = vadd.f32 %v3613_v8, %v3153_v13 }
 0x202   :  { %v3154_v30 = vpop.f32.mrf.mxu0  ;;  %v1439_v32 = vmul.f32 0.1, %v1161_v10  ;;  %v1825_v33 = vadd.f32 %v3638_v31, %v1824_v18  ;;  %v1177_v34 = vadd.f32 %v3613_v8, %v1176_v23  ;;  %v1836_v36 = vadd.f32 %v3194_v28, %v3638_v31 }
 0x203   :  { %v1827_v37 = vpop.f32.mrf.mxu1  ;;  %v1636_v35 = vpack.c.bf16 %v3743_v24, %v3737_v14  ;;  %v1440_v38 = vmul.f32 0.1, %v1164_v20  ;;  %3287 = vmatprep.mubr.bf16.mxu1 %v1633_v17  ;;  %v2533_v39 = vsel %vm2277_vm15, %v1833_v22, %v2405_v29  ;;  %vm1312_vm0 = vcmp.gt.f32.partialorder %v1164_v20, 0.0 }
 0x204   :  { %v1828_v40 = vadd.f32 %v3638_v31, %v1827_v37  ;;  %2661 = vst [vmem:[#allocation8 + $0xb0] sm:$0xff] %v2533_v39  ;;  %3288 = vmatmul.mubr.bf16.gmra.mxu1 %v1634_v7  ;;  %vm2275_vm1 = vcmp.gt.f32.partialorder %v1825_v33, 0.0  ;;  %v2403_v41 = vmul.f32 0.1, %v1825_v33  ;;  %v1188_v42 = vadd.f32 %v3613_v8, %v3154_v30  ;;  %v1179_v43 = vpop.f32.mrf.mxu0 }
 0x205   :  { %v3197_v44 = vpop.f32.mrf.mxu1  ;;  %vm1317_vm2 = vcmp.gt.f32.partialorder %v3749_v26, 0.0  ;;  %v1445_v45 = vmul.f32 0.1, %v3749_v26  ;;  %vm1315_vm3 = vcmp.gt.f32.partialorder %v1177_v34, 0.0  ;;  %vm2278_vm4 = vcmp.gt.f32.partialorder %v1836_v36, 0.0 }
 0x206   :  { %v2406_v46 = vmul.f32 0.1, %v1836_v36  ;;  %v2531_v47 = vsel %vm2275_vm1, %v1825_v33, %v2403_v41  ;;  %v1443_v48 = vmul.f32 0.1, %v1177_v34  ;;  %vm2276_vm5 = vcmp.gt.f32.partialorder %v1828_v40, 0.0 }
 0x207   :  { %v2404_v49 = vmul.f32 0.1, %v1828_v40  ;;  %v1840_v50 = vpop.f32.mrf.mxu1  ;;  %2659 = vst [vmem:[#allocation8 + $0xa0] sm:$0xff] %v2531_v47  ;;  %v1180_v52 = vadd.f32 %v3613_v8, %v1179_v43  ;;  %v1567_v53 = vsel %vm1311_vm14, %v1161_v10, %v1439_v32  ;;  %v1568_v54 = vsel %vm1312_vm0, %v1164_v20, %v1440_v38 }
 0x208   :  { %v2534_v51 = vsel %vm2278_vm4, %v1836_v36, %v2406_v46  ;;  %vm1318_vm6 = vcmp.gt.f32.partialorder %v1188_v42, 0.0  ;;  %v1635_v56 = vpack.c.bf16 %v1568_v54, %v1567_v53  ;;  %v1849_v57 = vadd.f32 %v3197_v44, %v3638_v31 }
 0x209   :  { %2662 = vst [vmem:[#allocation8 + $0xb8] sm:$0xff] %v2534_v51  ;;  %v2532_v55 = vsel %vm2276_vm5, %v1828_v40, %v2404_v49  ;;  %v3198_v58 = vpop.f32.mrf.mxu1  ;;  %v1446_v60 = vmul.f32 0.1, %v1188_v42  ;;  %vm1316_vm7 = vcmp.gt.f32.partialorder %v1180_v52, 0.0  ;;  %v1444_v61 = vmul.f32 0.1, %v1180_v52 }
 0x20a   :  { %2660 = vst [vmem:[#allocation8 + $0xa8] sm:$0xff] %v2532_v55  ;;  %v1841_v62 = vadd.f32 %v3638_v31, %v1840_v50  ;;  %3291 = vmatprep.mubr.bf16.mxu1 %v1635_v56  ;;  %vm2281_vm8 = vcmp.gt.f32.partialorder %v1849_v57, 0.0  ;;  %v2409_v8 = vmul.f32 0.1, %v1849_v57  ;;  %v1852_v59 = vadd.f32 %v3198_v58, %v3638_v31 }
 0x20b   :  { %v1843_v63 = vpop.f32.mrf.mxu1  ;;  %v1571_v0 = vsel %vm1315_vm3, %v1177_v34, %v1443_v48  ;;  %v1572_v3 = vsel %vm1316_vm7, %v1180_v52, %v1444_v61  ;;  %v1574_v12 = vsel %vm1318_vm6, %v1188_v42, %v1446_v60  ;;  %v1573_v19 = vsel %vm1317_vm2, %v3749_v26, %v1445_v45 }
 0x20c   :  { %vm2279_vm9 = vcmp.gt.f32.partialorder %v1841_v62, 0.0  ;;  %v2407_v1 = vmul.f32 0.1, %v1841_v62  ;;  %v1844_v2 = vadd.f32 %v3638_v31, %v1843_v63  ;;  %v2537_v5 = vsel %vm2281_vm8, %v1849_v57, %v2409_v8  ;;  %3292 = vmatmul.mubr.bf16.gmra.mxu1 %v1636_v35 }
 0x20d   :  { %vm2282_vm10 = vcmp.gt.f32.partialorder %v1852_v59, 0.0  ;;  %v2410_v6 = vmul.f32 0.1, %v1852_v59  ;;  %v1637_v7 = vpack.c.bf16 %v1572_v3, %v1571_v0  ;;  %v3201_v9 = vpop.f32.mrf.mxu1  ;;  %2665 = vst [vmem:[#allocation8 + $0xd0] sm:$0xff] %v2537_v5  ;;  %v1638_v24 = vpack.c.bf16 %v1574_v12, %v1573_v19 }
 0x20e   :  { %v2535_v10 = vsel %vm2279_vm9, %v1841_v62, %v2407_v1  ;;  %vm2280_vm11 = vcmp.gt.f32.partialorder %v1844_v2, 0.0  ;;  %v2408_v11 = vmul.f32 0.1, %v1844_v2  ;;  %v1865_v4 = vadd.f32 %v3201_v9, %v3638_v31 }
 0x20f   :  { %2663 = vst [vmem:[#allocation8 + $0xc0] sm:$0xff] %v2535_v10  ;;  %v2538_v13 = vsel %vm2282_vm10, %v1852_v59, %v2410_v6  ;;  %3295 = vmatprep.mubr.bf16.mxu1 %v1637_v7  ;;  %v1856_v14 = vpop.f32.mrf.mxu1 }
 0x210   :  { %2666 = vst [vmem:[#allocation8 + $0xd8] sm:$0xff] %v2538_v13  ;;  %v2536_v15 = vsel %vm2280_vm11, %v1844_v2, %v2408_v11  ;;  %vm2285_vm12 = vcmp.gt.f32.partialorder %v1865_v4, 0.0  ;;  %v2413_v16 = vmul.f32 0.1, %v1865_v4  ;;  %v1857_v18 = vadd.f32 %v3638_v31, %v1856_v14 }
 0x211   :  { %2664 = vst [vmem:[#allocation8 + $0xc8] sm:$0xff] %v2536_v15  ;;  %v3202_v20 = vpop.f32.mrf.mxu1 }
 0x212   :  { %v2541_v21 = vsel %vm2285_vm12, %v1865_v4, %v2413_v16  ;;  %vm2283_vm13 = vcmp.gt.f32.partialorder %v1857_v18, 0.0  ;;  %v2411_v22 = vmul.f32 0.1, %v1857_v18  ;;  %v1868_v23 = vadd.f32 %v3202_v20, %v3638_v31 }
 0x213   :  { %2669 = vst [vmem:[#allocation8 + $0xf0] sm:$0xff] %v2541_v21  ;;  %v1859_v25 = vpop.f32.mrf.mxu1 }
 0x214   :  { %v2539_v27 = vsel %vm2283_vm13, %v1857_v18, %v2411_v22  ;;  %vm2286_vm14 = vcmp.gt.f32.partialorder %v1868_v23, 0.0  ;;  %v2414_v28 = vmul.f32 0.1, %v1868_v23  ;;  %v1860_v17 = vadd.f32 %v3638_v31, %v1859_v25  ;;  %3296 = vmatmul.mubr.bf16.gmra.mxu1 %v1638_v24 }
 0x215   :  { %2667 = vst [vmem:[#allocation8 + $0xe0] sm:$0xff] %v2539_v27  ;;  %v3205_v29 = vpop.f32.mrf.mxu1 }
 0x216   :  { %v2542_v30 = vsel %vm2286_vm14, %v1868_v23, %v2414_v28  ;;  %vm2284_vm15 = vcmp.gt.f32.partialorder %v1860_v17, 0.0  ;;  %v2412_v26 = vmul.f32 0.1, %v1860_v17  ;;  %v1881_v32 = vadd.f32 %v3205_v29, %v3638_v31 }
 0x217   :  { %2670 = vst [vmem:[#allocation8 + $0xf8] sm:$0xff] %v2542_v30  ;;  %v1872_v33 = vpop.f32.mrf.mxu1 }
 0x218   :  { %v2540_v34 = vsel %vm2284_vm15, %v1860_v17, %v2412_v26  ;;  %vm2289_vm0 = vcmp.gt.f32.partialorder %v1881_v32, 0.0  ;;  %v2417_v36 = vmul.f32 0.1, %v1881_v32  ;;  %v1873_v37 = vadd.f32 %v3638_v31, %v1872_v33 }
 0x219   :  { %2668 = vst [vmem:[#allocation8 + $0xe8] sm:$0xff] %v2540_v34  ;;  %v3206_v35 = vpop.f32.mrf.mxu1 }
 0x21a   :  { %v2545_v38 = vsel %vm2289_vm0, %v1881_v32, %v2417_v36  ;;  %vm2287_vm1 = vcmp.gt.f32.partialorder %v1873_v37, 0.0  ;;  %v2415_v39 = vmul.f32 0.1, %v1873_v37  ;;  %v1884_v40 = vadd.f32 %v3206_v35, %v3638_v31 }
 0x21b   :  { %2673 = vst [vmem:[#allocation8 + $0x110] sm:$0xff] %v2545_v38  ;;  %v1875_v41 = vpop.f32.mrf.mxu1 }
 0x21c   :  { %v2543_v42 = vsel %vm2287_vm1, %v1873_v37, %v2415_v39  ;;  %vm2290_vm2 = vcmp.gt.f32.partialorder %v1884_v40, 0.0  ;;  %v2418_v43 = vmul.f32 0.1, %v1884_v40  ;;  %v1876_v44 = vadd.f32 %v3638_v31, %v1875_v41 }
 0x21d   :  { %2671 = vst [vmem:[#allocation8 + $0x100] sm:$0xff] %v2543_v42  ;;  %v3209_v45 = vpop.f32.mrf.mxu1 }
 0x21e   :  { %v2546_v46 = vsel %vm2290_vm2, %v1884_v40, %v2418_v43  ;;  %vm2288_vm3 = vcmp.gt.f32.partialorder %v1876_v44, 0.0  ;;  %v2416_v47 = vmul.f32 0.1, %v1876_v44  ;;  %v1897_v48 = vadd.f32 %v3209_v45, %v3638_v31 }
 0x21f   :  { %2674 = vst [vmem:[#allocation8 + $0x118] sm:$0xff] %v2546_v46  ;;  %v1888_v49 = vpop.f32.mrf.mxu1 }
 0x220   :  { %v2544_v50 = vsel %vm2288_vm3, %v1876_v44, %v2416_v47  ;;  %vm2293_vm4 = vcmp.gt.f32.partialorder %v1897_v48, 0.0  ;;  %v2421_v51 = vmul.f32 0.1, %v1897_v48  ;;  %v1889_v52 = vadd.f32 %v3638_v31, %v1888_v49 }
 0x221   :  { %2672 = vst [vmem:[#allocation8 + $0x108] sm:$0xff] %v2544_v50  ;;  %v3210_v53 = vpop.f32.mrf.mxu1 }
 0x222   :  { %v2549_v54 = vsel %vm2293_vm4, %v1897_v48, %v2421_v51  ;;  %vm2291_vm5 = vcmp.gt.f32.partialorder %v1889_v52, 0.0  ;;  %v2419_v55 = vmul.f32 0.1, %v1889_v52  ;;  %v1900_v56 = vadd.f32 %v3210_v53, %v3638_v31 }
 0x223   :  { %2677 = vst [vmem:[#allocation8 + $0x130] sm:$0xff] %v2549_v54  ;;  %v1891_v57 = vpop.f32.mrf.mxu1 }
 0x224   :  { %v2547_v58 = vsel %vm2291_vm5, %v1889_v52, %v2419_v55  ;;  %vm2294_vm6 = vcmp.gt.f32.partialorder %v1900_v56, 0.0  ;;  %v2422_v60 = vmul.f32 0.1, %v1900_v56  ;;  %v1892_v61 = vadd.f32 %v3638_v31, %v1891_v57 }
 0x225   :  { %2675 = vst [vmem:[#allocation8 + $0x120] sm:$0xff] %v2547_v58  ;;  %v3213_v62 = vpop.f32.mrf.mxu1 }
 0x226   :  { %v2550_v8 = vsel %vm2294_vm6, %v1900_v56, %v2422_v60  ;;  %vm2292_vm7 = vcmp.gt.f32.partialorder %v1892_v61, 0.0  ;;  %v2420_v59 = vmul.f32 0.1, %v1892_v61  ;;  %v1913_v63 = vadd.f32 %v3213_v62, %v3638_v31 }
 0x227   :  { %2678 = vst [vmem:[#allocation8 + $0x138] sm:$0xff] %v2550_v8  ;;  %v1904_v0 = vpop.f32.mrf.mxu1 }
 0x228   :  { %v2548_v1 = vsel %vm2292_vm7, %v1892_v61, %v2420_v59  ;;  %vm2297_vm8 = vcmp.gt.f32.partialorder %v1913_v63, 0.0  ;;  %v2425_v2 = vmul.f32 0.1, %v1913_v63  ;;  %v1905_v3 = vadd.f32 %v3638_v31, %v1904_v0 }
 0x229   :  { %2676 = vst [vmem:[#allocation8 + $0x128] sm:$0xff] %v2548_v1  ;;  %v3214_v5 = vpop.f32.mrf.mxu1 }
 0x22a   :  { %v2553_v6 = vsel %vm2297_vm8, %v1913_v63, %v2425_v2  ;;  %vm2295_vm9 = vcmp.gt.f32.partialorder %v1905_v3, 0.0  ;;  %v2423_v7 = vmul.f32 0.1, %v1905_v3  ;;  %v1916_v9 = vadd.f32 %v3214_v5, %v3638_v31 }
 0x22b   :  { %2681 = vst [vmem:[#allocation8 + $0x150] sm:$0xff] %v2553_v6  ;;  %v1907_v10 = vpop.f32.mrf.mxu1 }
 0x22c   :  { %v2551_v11 = vsel %vm2295_vm9, %v1905_v3, %v2423_v7  ;;  %vm2298_vm10 = vcmp.gt.f32.partialorder %v1916_v9, 0.0  ;;  %v2426_v4 = vmul.f32 0.1, %v1916_v9  ;;  %v1908_v12 = vadd.f32 %v3638_v31, %v1907_v10  ;;  %v3805_v10 = vld [vmem:[%s3884_s4] ss:$0 sm:$0xff]  ;;  %s3480_s4 = smov [#allocation8]  }
 0x22d   :  { %2679 = vst [vmem:[#allocation8 + $0x140] sm:$0xff] %v2551_v11  ;;  %v3217_v13 = vpop.f32.mrf.mxu1  ;;  %s2772_s14 = sshll.u32 %s3480_s4, 4  ;;  %s2773_s14 = int_to_ptr.vmem [resolvable:$true] %s2772_s14 }
 0x22e   :  { %v2554_v14 = vsel %vm2298_vm10, %v1916_v9, %v2426_v4  ;;  %vm2296_vm11 = vcmp.gt.f32.partialorder %v1908_v12, 0.0  ;;  %v2424_v15 = vmul.f32 0.1, %v1908_v12  ;;  %v1929_v16 = vadd.f32 %v3217_v13, %v3638_v31  ;;  %s3449_s15 = scalar_lea.vmem %s2773_s14, 16384  ;;  %p3454_p2 = scmp.lt.s32.totalorder %s2773_s14, %s2773_s14 }
 0x22f   :  { %2682 = vst [vmem:[#allocation8 + $0x158] sm:$0xff] %v2554_v14  ;;  %v1920_v18 = vpop.f32.mrf.mxu1  ;;  %p3450_p1 = scmp.ne.s32.totalorder %s2773_s14, %s3449_s15  ;;  %p3455_p3 = scmp.lt.s32.totalorder %s3449_s15, %s3449_s15 }
 0x230   :  { %v2552_v19 = vsel %vm2296_vm11, %v1908_v12, %v2424_v15  ;;  %vm2301_vm12 = vcmp.gt.f32.partialorder %v1929_v16, 0.0  ;;  %v2429_v20 = vmul.f32 0.1, %v1929_v16  ;;  %v1921_v21 = vadd.f32 %v3638_v31, %v1920_v18 }
 0x231   :  { %2680 = vst [vmem:[#allocation8 + $0x148] sm:$0xff] %v2552_v19  ;;  %v3218_v22 = vpop.f32.mrf.mxu1  ;;  %p3456_p4 = por %p3455_p3, %p3454_p2 }
 0x232   :  { %v2557_v23 = vsel %vm2301_vm12, %v1929_v16, %v2429_v20  ;;  %vm2299_vm13 = vcmp.gt.f32.partialorder %v1921_v21, 0.0  ;;  %v2427_v24 = vmul.f32 0.1, %v1921_v21  ;;  %v1932_v25 = vadd.f32 %v3218_v22, %v3638_v31 }
 0x233   :  { %2685 = vst [vmem:[#allocation8 + $0x170] sm:$0xff] %v2557_v23  ;;  %v1923_v27 = vpop.f32.mrf.mxu1  ;;  %p3457_p5 = pnand %p3456_p4, %p3450_p1 }
 0x234   :  { %v2555_v28 = vsel %vm2299_vm13, %v1921_v21, %v2427_v24  ;;  %vm2302_vm14 = vcmp.gt.f32.partialorder %v1932_v25, 0.0  ;;  %v2430_v17 = vmul.f32 0.1, %v1932_v25  ;;  %v1924_v29 = vadd.f32 %v3638_v31, %v1923_v27 }
 0x235   :  { %2683 = vst [vmem:[#allocation8 + $0x160] sm:$0xff] %v2555_v28  ;;  %v3221_v30 = vpop.f32.mrf.mxu1 }
 0x236   :  { %v2558_v26 = vsel %vm2302_vm14, %v1932_v25, %v2430_v17  ;;  %vm2300_vm15 = vcmp.gt.f32.partialorder %v1924_v29, 0.0  ;;  %v2428_v32 = vmul.f32 0.1, %v1924_v29  ;;  %v1945_v33 = vadd.f32 %v3221_v30, %v3638_v31 }
 0x237   :  { %2686 = vst [vmem:[#allocation8 + $0x178] sm:$0xff] %v2558_v26  ;;  %v1936_v34 = vpop.f32.mrf.mxu1 }
 0x238   :  { %v2556_v36 = vsel %vm2300_vm15, %v1924_v29, %v2428_v32  ;;  %vm2305_vm0 = vcmp.gt.f32.partialorder %v1945_v33, 0.0  ;;  %v2433_v37 = vmul.f32 0.1, %v1945_v33  ;;  %v1937_v35 = vadd.f32 %v3638_v31, %v1936_v34 }
 0x239   :  { %2684 = vst [vmem:[#allocation8 + $0x168] sm:$0xff] %v2556_v36  ;;  %v3222_v38 = vpop.f32.mrf.mxu1 }
 0x23a   :  { %v2561_v39 = vsel %vm2305_vm0, %v1945_v33, %v2433_v37  ;;  %vm2303_vm1 = vcmp.gt.f32.partialorder %v1937_v35, 0.0  ;;  %v2431_v40 = vmul.f32 0.1, %v1937_v35  ;;  %v1948_v41 = vadd.f32 %v3222_v38, %v3638_v31 }
 0x23b   :  { %2689 = vst [vmem:[#allocation8 + $0x190] sm:$0xff] %v2561_v39  ;;  %v1939_v42 = vpop.f32.mrf.mxu1 }
 0x23c   :  { %v2559_v43 = vsel %vm2303_vm1, %v1937_v35, %v2431_v40  ;;  %vm2306_vm2 = vcmp.gt.f32.partialorder %v1948_v41, 0.0  ;;  %v2434_v44 = vmul.f32 0.1, %v1948_v41  ;;  %v1940_v45 = vadd.f32 %v3638_v31, %v1939_v42 }
 0x23d   :  { %2687 = vst [vmem:[#allocation8 + $0x180] sm:$0xff] %v2559_v43  ;;  %v3225_v46 = vpop.f32.mrf.mxu1 }
 0x23e   :  { %v2562_v47 = vsel %vm2306_vm2, %v1948_v41, %v2434_v44  ;;  %vm2304_vm3 = vcmp.gt.f32.partialorder %v1940_v45, 0.0  ;;  %v2432_v48 = vmul.f32 0.1, %v1940_v45  ;;  %v1961_v49 = vadd.f32 %v3225_v46, %v3638_v31 }
 0x23f   :  { %2690 = vst [vmem:[#allocation8 + $0x198] sm:$0xff] %v2562_v47  ;;  %v1952_v50 = vpop.f32.mrf.mxu1 }
 0x240   :  { %v2560_v51 = vsel %vm2304_vm3, %v1940_v45, %v2432_v48  ;;  %vm2309_vm4 = vcmp.gt.f32.partialorder %v1961_v49, 0.0  ;;  %v2437_v52 = vmul.f32 0.1, %v1961_v49  ;;  %v1953_v53 = vadd.f32 %v3638_v31, %v1952_v50 }
 0x241   :  { %2688 = vst [vmem:[#allocation8 + $0x188] sm:$0xff] %v2560_v51  ;;  %v3226_v54 = vpop.f32.mrf.mxu1 }
 0x242   :  { %v2565_v55 = vsel %vm2309_vm4, %v1961_v49, %v2437_v52  ;;  %vm2307_vm5 = vcmp.gt.f32.partialorder %v1953_v53, 0.0  ;;  %v2435_v56 = vmul.f32 0.1, %v1953_v53  ;;  %v1964_v57 = vadd.f32 %v3226_v54, %v3638_v31 }
 0x243   :  { %2693 = vst [vmem:[#allocation8 + $0x1b0] sm:$0xff] %v2565_v55  ;;  %v1955_v58 = vpop.f32.mrf.mxu1 }
 0x244   :  { %v2563_v60 = vsel %vm2307_vm5, %v1953_v53, %v2435_v56  ;;  %vm2310_vm6 = vcmp.gt.f32.partialorder %v1964_v57, 0.0  ;;  %v2438_v61 = vmul.f32 0.1, %v1964_v57  ;;  %v1956_v62 = vadd.f32 %v3638_v31, %v1955_v58 }
 0x245   :  { %2691 = vst [vmem:[#allocation8 + $0x1a0] sm:$0xff] %v2563_v60  ;;  %v3229_v8 = vpop.f32.mrf.mxu1 }
 0x246   :  { %v2566_v59 = vsel %vm2310_vm6, %v1964_v57, %v2438_v61  ;;  %vm2308_vm7 = vcmp.gt.f32.partialorder %v1956_v62, 0.0  ;;  %v2436_v63 = vmul.f32 0.1, %v1956_v62  ;;  %v1977_v0 = vadd.f32 %v3229_v8, %v3638_v31 }
 0x247   :  { %2694 = vst [vmem:[#allocation8 + $0x1b8] sm:$0xff] %v2566_v59  ;;  %v1968_v1 = vpop.f32.mrf.mxu1 }
 0x248   :  { %v2564_v2 = vsel %vm2308_vm7, %v1956_v62, %v2436_v63  ;;  %vm2313_vm8 = vcmp.gt.f32.partialorder %v1977_v0, 0.0  ;;  %v2441_v3 = vmul.f32 0.1, %v1977_v0  ;;  %v1969_v5 = vadd.f32 %v3638_v31, %v1968_v1 }
 0x249   :  { %2692 = vst [vmem:[#allocation8 + $0x1a8] sm:$0xff] %v2564_v2  ;;  %v3230_v6 = vpop.f32.mrf.mxu1 }
 0x24a   :  { %v2569_v7 = vsel %vm2313_vm8, %v1977_v0, %v2441_v3  ;;  %vm2311_vm9 = vcmp.gt.f32.partialorder %v1969_v5, 0.0  ;;  %v2439_v9 = vmul.f32 0.1, %v1969_v5  ;;  %v1980_v11 = vadd.f32 %v3805_v10, %v3230_v6 }
 0x24b   :  { %2697 = vst [vmem:[#allocation8 + $0x1d0] sm:$0xff] %v2569_v7  ;;  %v1971_v4 = vpop.f32.mrf.mxu1 }
 0x24c   :  { %v2567_v12 = vsel %vm2311_vm9, %v1969_v5, %v2439_v9  ;;  %vm2314_vm10 = vcmp.gt.f32.partialorder %v1980_v11, 0.0  ;;  %v2442_v13 = vmul.f32 0.1, %v1980_v11  ;;  %v1972_v14 = vadd.f32 %v3805_v10, %v1971_v4 }
 0x24d   :  { %2695 = vst [vmem:[#allocation8 + $0x1c0] sm:$0xff] %v2567_v12  ;;  %v3233_v31 = vpop.f32.mrf.mxu1 }
 0x24e   :  { %v2570_v15 = vsel %vm2314_vm10, %v1980_v11, %v2442_v13  ;;  %vm2312_vm11 = vcmp.gt.f32.partialorder %v1972_v14, 0.0  ;;  %v2440_v16 = vmul.f32 0.1, %v1972_v14  ;;  %v1993_v18 = vadd.f32 %v3805_v10, %v3233_v31 }
 0x24f   :  { %2698 = vst [vmem:[#allocation8 + $0x1d8] sm:$0xff] %v2570_v15  ;;  %v1984_v19 = vpop.f32.mrf.mxu1 }
 0x250   :  { %v2568_v20 = vsel %vm2312_vm11, %v1972_v14, %v2440_v16  ;;  %vm2317_vm12 = vcmp.gt.f32.partialorder %v1993_v18, 0.0  ;;  %v2445_v21 = vmul.f32 0.1, %v1993_v18  ;;  %v1985_v22 = vadd.f32 %v3805_v10, %v1984_v19 }
 0x251   :  { %2696 = vst [vmem:[#allocation8 + $0x1c8] sm:$0xff] %v2568_v20  ;;  %v3234_v23 = vpop.f32.mrf.mxu1 }
 0x252   :  { %v2573_v24 = vsel %vm2317_vm12, %v1993_v18, %v2445_v21  ;;  %vm2315_vm13 = vcmp.gt.f32.partialorder %v1985_v22, 0.0  ;;  %v2443_v25 = vmul.f32 0.1, %v1985_v22  ;;  %v1996_v27 = vadd.f32 %v3805_v10, %v3234_v23 }
 0x253   :  { %2701 = vst [vmem:[#allocation8 + $0x1f0] sm:$0xff] %v2573_v24  ;;  %v1987_v28 = vpop.f32.mrf.mxu1 }
 0x254   :  { %v2571_v17 = vsel %vm2315_vm13, %v1985_v22, %v2443_v25  ;;  %vm2318_vm14 = vcmp.gt.f32.partialorder %v1996_v27, 0.0  ;;  %v2446_v29 = vmul.f32 0.1, %v1996_v27  ;;  %v1988_v30 = vadd.f32 %v3805_v10, %v1987_v28 }
 0x255   :  { %2699 = vst [vmem:[#allocation8 + $0x1e0] sm:$0xff] %v2571_v17  ;;  %v3237_v26 = vpop.f32.mrf.mxu1 }
 0x256   :  { %v2574_v32 = vsel %vm2318_vm14, %v1996_v27, %v2446_v29  ;;  %vm2316_vm15 = vcmp.gt.f32.partialorder %v1988_v30, 0.0  ;;  %v2444_v33 = vmul.f32 0.1, %v1988_v30  ;;  %v2009_v34 = vadd.f32 %v3805_v10, %v3237_v26 }
 0x257   :  { %2702 = vst [vmem:[#allocation8 + $0x1f8] sm:$0xff] %v2574_v32  ;;  %v2000_v36 = vpop.f32.mrf.mxu1 }
 0x258   :  { %v2572_v37 = vsel %vm2316_vm15, %v1988_v30, %v2444_v33  ;;  %vm2321_vm0 = vcmp.gt.f32.partialorder %v2009_v34, 0.0  ;;  %v2449_v35 = vmul.f32 0.1, %v2009_v34  ;;  %v2001_v38 = vadd.f32 %v3805_v10, %v2000_v36 }
 0x259   :  { %2700 = vst [vmem:[#allocation8 + $0x1e8] sm:$0xff] %v2572_v37  ;;  %v3238_v39 = vpop.f32.mrf.mxu1 }
 0x25a   :  { %v2577_v40 = vsel %vm2321_vm0, %v2009_v34, %v2449_v35  ;;  %vm2319_vm1 = vcmp.gt.f32.partialorder %v2001_v38, 0.0  ;;  %v2447_v41 = vmul.f32 0.1, %v2001_v38  ;;  %v2012_v42 = vadd.f32 %v3805_v10, %v3238_v39 }
 0x25b   :  { %2705 = vst [vmem:[#allocation8 + $0x210] sm:$0xff] %v2577_v40  ;;  %v2003_v43 = vpop.f32.mrf.mxu1 }
 0x25c   :  { %v2575_v44 = vsel %vm2319_vm1, %v2001_v38, %v2447_v41  ;;  %vm2322_vm2 = vcmp.gt.f32.partialorder %v2012_v42, 0.0  ;;  %v2450_v45 = vmul.f32 0.1, %v2012_v42  ;;  %v2004_v46 = vadd.f32 %v3805_v10, %v2003_v43 }
 0x25d   :  { %2703 = vst [vmem:[#allocation8 + $0x200] sm:$0xff] %v2575_v44  ;;  %v3241_v47 = vpop.f32.mrf.mxu1 }
 0x25e   :  { %v2578_v48 = vsel %vm2322_vm2, %v2012_v42, %v2450_v45  ;;  %vm2320_vm3 = vcmp.gt.f32.partialorder %v2004_v46, 0.0  ;;  %v2448_v49 = vmul.f32 0.1, %v2004_v46  ;;  %v2025_v50 = vadd.f32 %v3805_v10, %v3241_v47 }
 0x25f   :  { %2706 = vst [vmem:[#allocation8 + $0x218] sm:$0xff] %v2578_v48  ;;  %v2016_v51 = vpop.f32.mrf.mxu1 }
 0x260   :  { %v2576_v52 = vsel %vm2320_vm3, %v2004_v46, %v2448_v49  ;;  %vm2325_vm4 = vcmp.gt.f32.partialorder %v2025_v50, 0.0  ;;  %v2453_v53 = vmul.f32 0.1, %v2025_v50  ;;  %v2017_v54 = vadd.f32 %v3805_v10, %v2016_v51 }
 0x261   :  { %2704 = vst [vmem:[#allocation8 + $0x208] sm:$0xff] %v2576_v52  ;;  %v3242_v55 = vpop.f32.mrf.mxu1 }
 0x262   :  { %v2581_v56 = vsel %vm2325_vm4, %v2025_v50, %v2453_v53  ;;  %vm2323_vm5 = vcmp.gt.f32.partialorder %v2017_v54, 0.0  ;;  %v2451_v57 = vmul.f32 0.1, %v2017_v54  ;;  %v2028_v58 = vadd.f32 %v3805_v10, %v3242_v55 }
 0x263   :  { %2709 = vst [vmem:[#allocation8 + $0x230] sm:$0xff] %v2581_v56  ;;  %v2019_v60 = vpop.f32.mrf.mxu1 }
 0x264   :  { %v2579_v61 = vsel %vm2323_vm5, %v2017_v54, %v2451_v57  ;;  %vm2326_vm6 = vcmp.gt.f32.partialorder %v2028_v58, 0.0  ;;  %v2454_v62 = vmul.f32 0.1, %v2028_v58  ;;  %v2020_v8 = vadd.f32 %v3805_v10, %v2019_v60 }
 0x265   :  { %2707 = vst [vmem:[#allocation8 + $0x220] sm:$0xff] %v2579_v61  ;;  %v3245_v59 = vpop.f32.mrf.mxu1 }
 0x266   :  { %v2582_v63 = vsel %vm2326_vm6, %v2028_v58, %v2454_v62  ;;  %vm2324_vm7 = vcmp.gt.f32.partialorder %v2020_v8, 0.0  ;;  %v2452_v0 = vmul.f32 0.1, %v2020_v8  ;;  %v2041_v1 = vadd.f32 %v3805_v10, %v3245_v59 }
 0x267   :  { %2710 = vst [vmem:[#allocation8 + $0x238] sm:$0xff] %v2582_v63  ;;  %v2032_v2 = vpop.f32.mrf.mxu1 }
 0x268   :  { %v2580_v3 = vsel %vm2324_vm7, %v2020_v8, %v2452_v0  ;;  %vm2329_vm8 = vcmp.gt.f32.partialorder %v2041_v1, 0.0  ;;  %v2457_v5 = vmul.f32 0.1, %v2041_v1  ;;  %v2033_v6 = vadd.f32 %v3805_v10, %v2032_v2 }
 0x269   :  { %2708 = vst [vmem:[#allocation8 + $0x228] sm:$0xff] %v2580_v3  ;;  %v3246_v7 = vpop.f32.mrf.mxu1 }
 0x26a   :  { %v2585_v9 = vsel %vm2329_vm8, %v2041_v1, %v2457_v5  ;;  %vm2327_vm9 = vcmp.gt.f32.partialorder %v2033_v6, 0.0  ;;  %v2455_v11 = vmul.f32 0.1, %v2033_v6  ;;  %v2044_v4 = vadd.f32 %v3805_v10, %v3246_v7 }
 0x26b   :  { %2713 = vst [vmem:[#allocation8 + $0x250] sm:$0xff] %v2585_v9  ;;  %v2035_v12 = vpop.f32.mrf.mxu1 }
 0x26c   :  { %v2583_v13 = vsel %vm2327_vm9, %v2033_v6, %v2455_v11  ;;  %vm2330_vm10 = vcmp.gt.f32.partialorder %v2044_v4, 0.0  ;;  %v2458_v14 = vmul.f32 0.1, %v2044_v4  ;;  %v2036_v31 = vadd.f32 %v3805_v10, %v2035_v12 }
 0x26d   :  { %2711 = vst [vmem:[#allocation8 + $0x240] sm:$0xff] %v2583_v13  ;;  %v3249_v15 = vpop.f32.mrf.mxu1 }
 0x26e   :  { %v2586_v16 = vsel %vm2330_vm10, %v2044_v4, %v2458_v14  ;;  %vm2328_vm11 = vcmp.gt.f32.partialorder %v2036_v31, 0.0  ;;  %v2456_v18 = vmul.f32 0.1, %v2036_v31  ;;  %v2057_v19 = vadd.f32 %v3805_v10, %v3249_v15 }
 0x26f   :  { %2714 = vst [vmem:[#allocation8 + $0x258] sm:$0xff] %v2586_v16  ;;  %v2048_v20 = vpop.f32.mrf.mxu1 }
 0x270   :  { %v2584_v21 = vsel %vm2328_vm11, %v2036_v31, %v2456_v18  ;;  %vm2333_vm12 = vcmp.gt.f32.partialorder %v2057_v19, 0.0  ;;  %v2461_v22 = vmul.f32 0.1, %v2057_v19  ;;  %v2049_v23 = vadd.f32 %v3805_v10, %v2048_v20 }
 0x271   :  { %2712 = vst [vmem:[#allocation8 + $0x248] sm:$0xff] %v2584_v21  ;;  %v3250_v24 = vpop.f32.mrf.mxu1 }
 0x272   :  { %v2589_v25 = vsel %vm2333_vm12, %v2057_v19, %v2461_v22  ;;  %vm2331_vm13 = vcmp.gt.f32.partialorder %v2049_v23, 0.0  ;;  %v2459_v27 = vmul.f32 0.1, %v2049_v23  ;;  %v2060_v28 = vadd.f32 %v3805_v10, %v3250_v24 }
 0x273   :  { %2717 = vst [vmem:[#allocation8 + $0x270] sm:$0xff] %v2589_v25  ;;  %v2051_v17 = vpop.f32.mrf.mxu1 }
 0x274   :  { %v2587_v29 = vsel %vm2331_vm13, %v2049_v23, %v2459_v27  ;;  %vm2334_vm14 = vcmp.gt.f32.partialorder %v2060_v28, 0.0  ;;  %v2462_v30 = vmul.f32 0.1, %v2060_v28  ;;  %v2052_v26 = vadd.f32 %v3805_v10, %v2051_v17 }
 0x275   :  { %2715 = vst [vmem:[#allocation8 + $0x260] sm:$0xff] %v2587_v29  ;;  %v3253_v32 = vpop.f32.mrf.mxu1 }
 0x276   :  { %v2590_v33 = vsel %vm2334_vm14, %v2060_v28, %v2462_v30  ;;  %vm2332_vm15 = vcmp.gt.f32.partialorder %v2052_v26, 0.0  ;;  %v2460_v34 = vmul.f32 0.1, %v2052_v26  ;;  %v2073_v36 = vadd.f32 %v3805_v10, %v3253_v32 }
 0x277   :  { %2718 = vst [vmem:[#allocation8 + $0x278] sm:$0xff] %v2590_v33  ;;  %v2064_v37 = vpop.f32.mrf.mxu1 }
 0x278   :  { %v2588_v35 = vsel %vm2332_vm15, %v2052_v26, %v2460_v34  ;;  %vm2337_vm0 = vcmp.gt.f32.partialorder %v2073_v36, 0.0  ;;  %v2465_v38 = vmul.f32 0.1, %v2073_v36  ;;  %v2065_v39 = vadd.f32 %v3805_v10, %v2064_v37 }
 0x279   :  { %2716 = vst [vmem:[#allocation8 + $0x268] sm:$0xff] %v2588_v35  ;;  %v3254_v40 = vpop.f32.mrf.mxu1 }
 0x27a   :  { %v2593_v41 = vsel %vm2337_vm0, %v2073_v36, %v2465_v38  ;;  %vm2335_vm1 = vcmp.gt.f32.partialorder %v2065_v39, 0.0  ;;  %v2463_v42 = vmul.f32 0.1, %v2065_v39  ;;  %v2076_v43 = vadd.f32 %v3805_v10, %v3254_v40 }
 0x27b   :  { %2721 = vst [vmem:[#allocation8 + $0x290] sm:$0xff] %v2593_v41  ;;  %v2067_v44 = vpop.f32.mrf.mxu1 }
 0x27c   :  { %v2591_v45 = vsel %vm2335_vm1, %v2065_v39, %v2463_v42  ;;  %vm2338_vm2 = vcmp.gt.f32.partialorder %v2076_v43, 0.0  ;;  %v2466_v46 = vmul.f32 0.1, %v2076_v43  ;;  %v2068_v47 = vadd.f32 %v3805_v10, %v2067_v44 }
 0x27d   :  { %2719 = vst [vmem:[#allocation8 + $0x280] sm:$0xff] %v2591_v45  ;;  %v3257_v48 = vpop.f32.mrf.mxu1 }
 0x27e   :  { %v2594_v49 = vsel %vm2338_vm2, %v2076_v43, %v2466_v46  ;;  %vm2336_vm3 = vcmp.gt.f32.partialorder %v2068_v47, 0.0  ;;  %v2464_v50 = vmul.f32 0.1, %v2068_v47  ;;  %v2089_v51 = vadd.f32 %v3805_v10, %v3257_v48 }
 0x27f   :  { %2722 = vst [vmem:[#allocation8 + $0x298] sm:$0xff] %v2594_v49  ;;  %v2080_v52 = vpop.f32.mrf.mxu1 }
 0x280   :  { %v2592_v53 = vsel %vm2336_vm3, %v2068_v47, %v2464_v50  ;;  %vm2341_vm4 = vcmp.gt.f32.partialorder %v2089_v51, 0.0  ;;  %v2469_v54 = vmul.f32 0.1, %v2089_v51  ;;  %v2081_v55 = vadd.f32 %v3805_v10, %v2080_v52 }
 0x281   :  { %2720 = vst [vmem:[#allocation8 + $0x288] sm:$0xff] %v2592_v53  ;;  %v3258_v56 = vpop.f32.mrf.mxu1 }
 0x282   :  { %v2597_v57 = vsel %vm2341_vm4, %v2089_v51, %v2469_v54  ;;  %vm2339_vm5 = vcmp.gt.f32.partialorder %v2081_v55, 0.0  ;;  %v2467_v58 = vmul.f32 0.1, %v2081_v55  ;;  %v2092_v60 = vadd.f32 %v3805_v10, %v3258_v56 }
 0x283   :  { %2725 = vst [vmem:[#allocation8 + $0x2b0] sm:$0xff] %v2597_v57  ;;  %v2083_v61 = vpop.f32.mrf.mxu1 }
 0x284   :  { %v2595_v62 = vsel %vm2339_vm5, %v2081_v55, %v2467_v58  ;;  %vm2342_vm6 = vcmp.gt.f32.partialorder %v2092_v60, 0.0  ;;  %v2470_v8 = vmul.f32 0.1, %v2092_v60  ;;  %v2084_v59 = vadd.f32 %v3805_v10, %v2083_v61 }
 0x285   :  { %2723 = vst [vmem:[#allocation8 + $0x2a0] sm:$0xff] %v2595_v62  ;;  %v3261_v63 = vpop.f32.mrf.mxu1 }
 0x286   :  { %v2598_v0 = vsel %vm2342_vm6, %v2092_v60, %v2470_v8  ;;  %vm2340_vm7 = vcmp.gt.f32.partialorder %v2084_v59, 0.0  ;;  %v2468_v1 = vmul.f32 0.1, %v2084_v59  ;;  %v2105_v2 = vadd.f32 %v3805_v10, %v3261_v63 }
 0x287   :  { %2726 = vst [vmem:[#allocation8 + $0x2b8] sm:$0xff] %v2598_v0  ;;  %v2096_v3 = vpop.f32.mrf.mxu1 }
 0x288   :  { %v2596_v5 = vsel %vm2340_vm7, %v2084_v59, %v2468_v1  ;;  %vm2345_vm8 = vcmp.gt.f32.partialorder %v2105_v2, 0.0  ;;  %v2473_v6 = vmul.f32 0.1, %v2105_v2  ;;  %v2097_v7 = vadd.f32 %v3805_v10, %v2096_v3 }
 0x289   :  { %2724 = vst [vmem:[#allocation8 + $0x2a8] sm:$0xff] %v2596_v5  ;;  %v3262_v9 = vpop.f32.mrf.mxu1 }
 0x28a   :  { %v2601_v11 = vsel %vm2345_vm8, %v2105_v2, %v2473_v6  ;;  %vm2343_vm9 = vcmp.gt.f32.partialorder %v2097_v7, 0.0  ;;  %v2471_v4 = vmul.f32 0.1, %v2097_v7  ;;  %v2108_v12 = vadd.f32 %v3805_v10, %v3262_v9 }
 0x28b   :  { %2729 = vst [vmem:[#allocation8 + $0x2d0] sm:$0xff] %v2601_v11  ;;  %v2099_v13 = vpop.f32.mrf.mxu1 }
 0x28c   :  { %v2599_v14 = vsel %vm2343_vm9, %v2097_v7, %v2471_v4  ;;  %vm2346_vm10 = vcmp.gt.f32.partialorder %v2108_v12, 0.0  ;;  %v2474_v31 = vmul.f32 0.1, %v2108_v12  ;;  %v2100_v15 = vadd.f32 %v3805_v10, %v2099_v13 }
 0x28d   :  { %2727 = vst [vmem:[#allocation8 + $0x2c0] sm:$0xff] %v2599_v14  ;;  %v3265_v16 = vpop.f32.mrf.mxu1 }
 0x28e   :  { %v2602_v18 = vsel %vm2346_vm10, %v2108_v12, %v2474_v31  ;;  %vm2344_vm11 = vcmp.gt.f32.partialorder %v2100_v15, 0.0  ;;  %v2472_v19 = vmul.f32 0.1, %v2100_v15  ;;  %v2121_v20 = vadd.f32 %v3805_v10, %v3265_v16 }
 0x28f   :  { %2730 = vst [vmem:[#allocation8 + $0x2d8] sm:$0xff] %v2602_v18  ;;  %v2112_v21 = vpop.f32.mrf.mxu1 }
 0x290   :  { %v2600_v22 = vsel %vm2344_vm11, %v2100_v15, %v2472_v19  ;;  %vm2349_vm12 = vcmp.gt.f32.partialorder %v2121_v20, 0.0  ;;  %v2477_v23 = vmul.f32 0.1, %v2121_v20  ;;  %v2113_v24 = vadd.f32 %v3805_v10, %v2112_v21 }
 0x291   :  { %2728 = vst [vmem:[#allocation8 + $0x2c8] sm:$0xff] %v2600_v22  ;;  %v3266_v25 = vpop.f32.mrf.mxu1 }
 0x292   :  { %v2605_v27 = vsel %vm2349_vm12, %v2121_v20, %v2477_v23  ;;  %vm2347_vm13 = vcmp.gt.f32.partialorder %v2113_v24, 0.0  ;;  %v2475_v28 = vmul.f32 0.1, %v2113_v24  ;;  %v2124_v17 = vadd.f32 %v3805_v10, %v3266_v25 }
 0x293   :  { %2733 = vst [vmem:[#allocation8 + $0x2f0] sm:$0xff] %v2605_v27  ;;  %v2115_v29 = vpop.f32.mrf.mxu1 }
 0x294   :  { %v2603_v30 = vsel %vm2347_vm13, %v2113_v24, %v2475_v28  ;;  %vm2350_vm14 = vcmp.gt.f32.partialorder %v2124_v17, 0.0  ;;  %v2478_v26 = vmul.f32 0.1, %v2124_v17  ;;  %v2116_v32 = vadd.f32 %v3805_v10, %v2115_v29 }
 0x295   :  { %2731 = vst [vmem:[#allocation8 + $0x2e0] sm:$0xff] %v2603_v30  ;;  %v3269_v33 = vpop.f32.mrf.mxu1 }
 0x296   :  { %v2606_v34 = vsel %vm2350_vm14, %v2124_v17, %v2478_v26  ;;  %vm2348_vm15 = vcmp.gt.f32.partialorder %v2116_v32, 0.0  ;;  %v2476_v36 = vmul.f32 0.1, %v2116_v32  ;;  %v2137_v37 = vadd.f32 %v3805_v10, %v3269_v33 }
 0x297   :  { %2734 = vst [vmem:[#allocation8 + $0x2f8] sm:$0xff] %v2606_v34  ;;  %v2128_v35 = vpop.f32.mrf.mxu1 }
 0x298   :  { %v2604_v38 = vsel %vm2348_vm15, %v2116_v32, %v2476_v36  ;;  %vm2353_vm0 = vcmp.gt.f32.partialorder %v2137_v37, 0.0  ;;  %v2481_v39 = vmul.f32 0.1, %v2137_v37  ;;  %v2129_v40 = vadd.f32 %v3805_v10, %v2128_v35 }
 0x299   :  { %2732 = vst [vmem:[#allocation8 + $0x2e8] sm:$0xff] %v2604_v38  ;;  %v3270_v41 = vpop.f32.mrf.mxu1 }
 0x29a   :  { %v2609_v42 = vsel %vm2353_vm0, %v2137_v37, %v2481_v39  ;;  %vm2351_vm1 = vcmp.gt.f32.partialorder %v2129_v40, 0.0  ;;  %v2479_v43 = vmul.f32 0.1, %v2129_v40  ;;  %v2140_v44 = vadd.f32 %v3805_v10, %v3270_v41 }
 0x29b   :  { %2737 = vst [vmem:[#allocation8 + $0x310] sm:$0xff] %v2609_v42  ;;  %v2131_v45 = vpop.f32.mrf.mxu1 }
 0x29c   :  { %v2607_v46 = vsel %vm2351_vm1, %v2129_v40, %v2479_v43  ;;  %vm2354_vm2 = vcmp.gt.f32.partialorder %v2140_v44, 0.0  ;;  %v2482_v47 = vmul.f32 0.1, %v2140_v44  ;;  %v2132_v48 = vadd.f32 %v3805_v10, %v2131_v45 }
 0x29d   :  { %2735 = vst [vmem:[#allocation8 + $0x300] sm:$0xff] %v2607_v46 }
 0x29e   :  { %v2610_v49 = vsel %vm2354_vm2, %v2140_v44, %v2482_v47  ;;  %vm2352_vm3 = vcmp.gt.f32.partialorder %v2132_v48, 0.0  ;;  %v2480_v50 = vmul.f32 0.1, %v2132_v48  ;;  %v3273_v51 = vpop.f32.mrf.mxu1 }
 0x29f   :  { %2738 = vst [vmem:[#allocation8 + $0x318] sm:$0xff] %v2610_v49  ;;  %v2153_v52 = vadd.f32 %v3805_v10, %v3273_v51 }
 0x2a0   :  { %v2608_v53 = vsel %vm2352_vm3, %v2132_v48, %v2480_v50  ;;  %v2144_v54 = vpop.f32.mrf.mxu1 }
 0x2a1   :  { %2736 = vst [vmem:[#allocation8 + $0x308] sm:$0xff] %v2608_v53  ;;  %vm2357_vm4 = vcmp.gt.f32.partialorder %v2153_v52, 0.0  ;;  %v2485_v55 = vmul.f32 0.1, %v2153_v52  ;;  %v2145_v56 = vadd.f32 %v3805_v10, %v2144_v54 }
 0x2a2   :  { %v3274_v57 = vpop.f32.mrf.mxu1 }
 0x2a3   :  { %v2613_v58 = vsel %vm2357_vm4, %v2153_v52, %v2485_v55  ;;  %vm2355_vm5 = vcmp.gt.f32.partialorder %v2145_v56, 0.0  ;;  %v2483_v60 = vmul.f32 0.1, %v2145_v56  ;;  %v2156_v61 = vadd.f32 %v3805_v10, %v3274_v57 }
 0x2a4   :  { %2741 = vst [vmem:[#allocation8 + $0x330] sm:$0xff] %v2613_v58  ;;  %v2147_v62 = vpop.f32.mrf.mxu1 }
 0x2a5   :  { %v2611_v8 = vsel %vm2355_vm5, %v2145_v56, %v2483_v60  ;;  %vm2358_vm6 = vcmp.gt.f32.partialorder %v2156_v61, 0.0  ;;  %v2486_v59 = vmul.f32 0.1, %v2156_v61  ;;  %v2148_v63 = vadd.f32 %v3805_v10, %v2147_v62 }
 0x2a6   :  { %2739 = vst [vmem:[#allocation8 + $0x320] sm:$0xff] %v2611_v8 }
 0x2a7   :  { %v2614_v0 = vsel %vm2358_vm6, %v2156_v61, %v2486_v59  ;;  %vm2356_vm7 = vcmp.gt.f32.partialorder %v2148_v63, 0.0  ;;  %v2484_v1 = vmul.f32 0.1, %v2148_v63  ;;  %v3277_v3 = vpop.f32.mrf.mxu1 }
 0x2a8   :  { %2742 = vst [vmem:[#allocation8 + $0x338] sm:$0xff] %v2614_v0  ;;  %v2169_v5 = vadd.f32 %v3805_v10, %v3277_v3 }
 0x2a9   :  { %v2612_v2 = vsel %vm2356_vm7, %v2148_v63, %v2484_v1  ;;  %v2160_v6 = vpop.f32.mrf.mxu1 }
 0x2aa   :  { %2740 = vst [vmem:[#allocation8 + $0x328] sm:$0xff] %v2612_v2  ;;  %vm2361_vm8 = vcmp.gt.f32.partialorder %v2169_v5, 0.0  ;;  %v2489_v7 = vmul.f32 0.1, %v2169_v5  ;;  %v2161_v9 = vadd.f32 %v3805_v10, %v2160_v6 }
 0x2ab   :  { %v3278_v11 = vpop.f32.mrf.mxu1 }
 0x2ac   :  { %v2617_v4 = vsel %vm2361_vm8, %v2169_v5, %v2489_v7  ;;  %vm2359_vm9 = vcmp.gt.f32.partialorder %v2161_v9, 0.0  ;;  %v2487_v12 = vmul.f32 0.1, %v2161_v9  ;;  %v2172_v13 = vadd.f32 %v3805_v10, %v3278_v11 }
 0x2ad   :  { %2745 = vst [vmem:[#allocation8 + $0x350] sm:$0xff] %v2617_v4  ;;  %v2163_v14 = vpop.f32.mrf.mxu1 }
 0x2ae   :  { %v2615_v31 = vsel %vm2359_vm9, %v2161_v9, %v2487_v12  ;;  %vm2362_vm10 = vcmp.gt.f32.partialorder %v2172_v13, 0.0  ;;  %v2490_v15 = vmul.f32 0.1, %v2172_v13  ;;  %v2164_v16 = vadd.f32 %v3805_v10, %v2163_v14 }
 0x2af   :  { %2743 = vst [vmem:[#allocation8 + $0x340] sm:$0xff] %v2615_v31 }
 0x2b0   :  { %v2618_v18 = vsel %vm2362_vm10, %v2172_v13, %v2490_v15  ;;  %vm2360_vm11 = vcmp.gt.f32.partialorder %v2164_v16, 0.0  ;;  %v2488_v19 = vmul.f32 0.1, %v2164_v16 }
 0x2b1   :  { %2746 = vst [vmem:[#allocation8 + $0x358] sm:$0xff] %v2618_v18 }
 0x2b2   :  { %v3281_v20 = vpop.f32.mrf.mxu1  ;;  %v2616_v21 = vsel %vm2360_vm11, %v2164_v16, %v2488_v19 }
 0x2b3   :  { %v2185_v22 = vadd.f32 %v3805_v10, %v3281_v20  ;;  %2744 = vst [vmem:[#allocation8 + $0x348] sm:$0xff] %v2616_v21 }
 0x2b4   :  { %v2176_v23 = vpop.f32.mrf.mxu1 }
 0x2b5   :  { %vm2365_vm12 = vcmp.gt.f32.partialorder %v2185_v22, 0.0  ;;  %v2493_v24 = vmul.f32 0.1, %v2185_v22  ;;  %v2177_v25 = vadd.f32 %v3805_v10, %v2176_v23 }
 0x2b6   :  { %v3282_v27 = vpop.f32.mrf.mxu1 }
 0x2b7   :  { %v2621_v28 = vsel %vm2365_vm12, %v2185_v22, %v2493_v24  ;;  %vm2363_vm13 = vcmp.gt.f32.partialorder %v2177_v25, 0.0  ;;  %v2491_v17 = vmul.f32 0.1, %v2177_v25  ;;  %v2188_v29 = vadd.f32 %v3805_v10, %v3282_v27 }
 0x2b8   :  { %2749 = vst [vmem:[#allocation8 + $0x370] sm:$0xff] %v2621_v28  ;;  %v2179_v30 = vpop.f32.mrf.mxu1 }
 0x2b9   :  { %v2619_v26 = vsel %vm2363_vm13, %v2177_v25, %v2491_v17  ;;  %vm2366_vm14 = vcmp.gt.f32.partialorder %v2188_v29, 0.0  ;;  %v2494_v32 = vmul.f32 0.1, %v2188_v29  ;;  %v2180_v33 = vadd.f32 %v3805_v10, %v2179_v30 }
 0x2ba   :  { %2747 = vst [vmem:[#allocation8 + $0x360] sm:$0xff] %v2619_v26 }
 0x2bb   :  { %v2622_v34 = vsel %vm2366_vm14, %v2188_v29, %v2494_v32  ;;  %vm2364_vm15 = vcmp.gt.f32.partialorder %v2180_v33, 0.0  ;;  %v2492_v36 = vmul.f32 0.1, %v2180_v33  ;;  %v3285_v37 = vpop.f32.mrf.mxu1 }
 0x2bc   :  { %2750 = vst [vmem:[#allocation8 + $0x378] sm:$0xff] %v2622_v34  ;;  %v2201_v35 = vadd.f32 %v3805_v10, %v3285_v37 }
 0x2bd   :  { %v2620_v38 = vsel %vm2364_vm15, %v2180_v33, %v2492_v36  ;;  %v2192_v39 = vpop.f32.mrf.mxu1 }
 0x2be   :  { %2748 = vst [vmem:[#allocation8 + $0x368] sm:$0xff] %v2620_v38  ;;  %vm2369_vm0 = vcmp.gt.f32.partialorder %v2201_v35, 0.0  ;;  %v2497_v40 = vmul.f32 0.1, %v2201_v35  ;;  %v2193_v41 = vadd.f32 %v3805_v10, %v2192_v39 }
 0x2bf   :  { %v3286_v42 = vpop.f32.mrf.mxu1 }
 0x2c0   :  { %v2625_v43 = vsel %vm2369_vm0, %v2201_v35, %v2497_v40  ;;  %vm2367_vm1 = vcmp.gt.f32.partialorder %v2193_v41, 0.0  ;;  %v2495_v44 = vmul.f32 0.1, %v2193_v41  ;;  %v2204_v45 = vadd.f32 %v3805_v10, %v3286_v42 }
 0x2c1   :  { %2753 = vst [vmem:[#allocation8 + $0x390] sm:$0xff] %v2625_v43  ;;  %v2195_v46 = vpop.f32.mrf.mxu1 }
 0x2c2   :  { %v2623_v47 = vsel %vm2367_vm1, %v2193_v41, %v2495_v44  ;;  %vm2370_vm2 = vcmp.gt.f32.partialorder %v2204_v45, 0.0  ;;  %v2498_v48 = vmul.f32 0.1, %v2204_v45  ;;  %v2196_v49 = vadd.f32 %v3805_v10, %v2195_v46 }
 0x2c3   :  { %2751 = vst [vmem:[#allocation8 + $0x380] sm:$0xff] %v2623_v47 }
 0x2c4   :  { %v2626_v50 = vsel %vm2370_vm2, %v2204_v45, %v2498_v48  ;;  %vm2368_vm3 = vcmp.gt.f32.partialorder %v2196_v49, 0.0  ;;  %v2496_v51 = vmul.f32 0.1, %v2196_v49  ;;  %v3289_v52 = vpop.f32.mrf.mxu1 }
 0x2c5   :  { %2754 = vst [vmem:[#allocation8 + $0x398] sm:$0xff] %v2626_v50  ;;  %v2217_v53 = vadd.f32 %v3805_v10, %v3289_v52 }
 0x2c6   :  { %v2624_v54 = vsel %vm2368_vm3, %v2196_v49, %v2496_v51  ;;  %v2208_v55 = vpop.f32.mrf.mxu1 }
 0x2c7   :  { %2752 = vst [vmem:[#allocation8 + $0x388] sm:$0xff] %v2624_v54  ;;  %vm2373_vm4 = vcmp.gt.f32.partialorder %v2217_v53, 0.0  ;;  %v2501_v56 = vmul.f32 0.1, %v2217_v53  ;;  %v2209_v57 = vadd.f32 %v3805_v10, %v2208_v55 }
 0x2c8   :  { %v3290_v58 = vpop.f32.mrf.mxu1 }
 0x2c9   :  { %v2629_v60 = vsel %vm2373_vm4, %v2217_v53, %v2501_v56  ;;  %vm2371_vm5 = vcmp.gt.f32.partialorder %v2209_v57, 0.0  ;;  %v2499_v61 = vmul.f32 0.1, %v2209_v57  ;;  %v2220_v62 = vadd.f32 %v3805_v10, %v3290_v58 }
 0x2ca   :  { %2757 = vst [vmem:[#allocation8 + $0x3b0] sm:$0xff] %v2629_v60  ;;  %v2211_v8 = vpop.f32.mrf.mxu1 }
 0x2cb   :  { %v2627_v59 = vsel %vm2371_vm5, %v2209_v57, %v2499_v61  ;;  %vm2374_vm6 = vcmp.gt.f32.partialorder %v2220_v62, 0.0  ;;  %v2502_v63 = vmul.f32 0.1, %v2220_v62  ;;  %v2212_v0 = vadd.f32 %v3805_v10, %v2211_v8 }
 0x2cc   :  { %2755 = vst [vmem:[#allocation8 + $0x3a0] sm:$0xff] %v2627_v59  ;;  %v3293_v1 = vpop.f32.mrf.mxu1 }
 0x2cd   :  { %v2630_v2 = vsel %vm2374_vm6, %v2220_v62, %v2502_v63  ;;  %vm2372_vm7 = vcmp.gt.f32.partialorder %v2212_v0, 0.0  ;;  %v2500_v3 = vmul.f32 0.1, %v2212_v0  ;;  %v2233_v5 = vadd.f32 %v3805_v10, %v3293_v1 }
 0x2ce   :  { %2758 = vst [vmem:[#allocation8 + $0x3b8] sm:$0xff] %v2630_v2  ;;  %v2224_v6 = vpop.f32.mrf.mxu1 }
 0x2cf   :  { %v2628_v7 = vsel %vm2372_vm7, %v2212_v0, %v2500_v3  ;;  %vm2377_vm8 = vcmp.gt.f32.partialorder %v2233_v5, 0.0  ;;  %v2505_v9 = vmul.f32 0.1, %v2233_v5  ;;  %v2225_v11 = vadd.f32 %v3805_v10, %v2224_v6 }
 0x2d0   :  { %2756 = vst [vmem:[#allocation8 + $0x3a8] sm:$0xff] %v2628_v7  ;;  %v3294_v4 = vpop.f32.mrf.mxu1 }
 0x2d1   :  { %v2633_v12 = vsel %vm2377_vm8, %v2233_v5, %v2505_v9  ;;  %vm2375_vm9 = vcmp.gt.f32.partialorder %v2225_v11, 0.0  ;;  %v2503_v13 = vmul.f32 0.1, %v2225_v11  ;;  %v2236_v14 = vadd.f32 %v3805_v10, %v3294_v4 }
 0x2d2   :  { %2761 = vst [vmem:[#allocation8 + $0x3d0] sm:$0xff] %v2633_v12  ;;  %v2227_v31 = vpop.f32.mrf.mxu1 }
 0x2d3   :  { %v2631_v15 = vsel %vm2375_vm9, %v2225_v11, %v2503_v13  ;;  %vm2378_vm10 = vcmp.gt.f32.partialorder %v2236_v14, 0.0  ;;  %v2506_v16 = vmul.f32 0.1, %v2236_v14  ;;  %v2228_v18 = vadd.f32 %v3805_v10, %v2227_v31 }
 0x2d4   :  { %2759 = vst [vmem:[#allocation8 + $0x3c0] sm:$0xff] %v2631_v15  ;;  %v3297_v19 = vpop.f32.mrf.mxu1 }
 0x2d5   :  { %v2634_v20 = vsel %vm2378_vm10, %v2236_v14, %v2506_v16  ;;  %vm2376_vm11 = vcmp.gt.f32.partialorder %v2228_v18, 0.0  ;;  %v2504_v21 = vmul.f32 0.1, %v2228_v18  ;;  %v2249_v22 = vadd.f32 %v3805_v10, %v3297_v19 }
 0x2d6   :  { %2762 = vst [vmem:[#allocation8 + $0x3d8] sm:$0xff] %v2634_v20  ;;  %v2240_v23 = vpop.f32.mrf.mxu1 }
 0x2d7   :  { %v2632_v24 = vsel %vm2376_vm11, %v2228_v18, %v2504_v21  ;;  %vm2381_vm12 = vcmp.gt.f32.partialorder %v2249_v22, 0.0  ;;  %v2509_v25 = vmul.f32 0.1, %v2249_v22  ;;  %v2241_v27 = vadd.f32 %v3805_v10, %v2240_v23 }
 0x2d8   :  { %2760 = vst [vmem:[#allocation8 + $0x3c8] sm:$0xff] %v2632_v24  ;;  %v3298_v28 = vpop.f32.mrf.mxu1 }
 0x2d9   :  { %v2637_v17 = vsel %vm2381_vm12, %v2249_v22, %v2509_v25  ;;  %vm2379_vm13 = vcmp.gt.f32.partialorder %v2241_v27, 0.0  ;;  %v2507_v29 = vmul.f32 0.1, %v2241_v27  ;;  %v2252_v30 = vadd.f32 %v3805_v10, %v3298_v28 }
 0x2da   :  { %2765 = vst [vmem:[#allocation8 + $0x3f0] sm:$0xff] %v2637_v17  ;;  %v2243_v26 = vpop.f32.mrf.mxu1 }
 0x2db   :  { %v2635_v32 = vsel %vm2379_vm13, %v2241_v27, %v2507_v29  ;;  %vm2382_vm14 = vcmp.gt.f32.partialorder %v2252_v30, 0.0  ;;  %v2510_v33 = vmul.f32 0.1, %v2252_v30  ;;  %v2244_v34 = vadd.f32 %v3805_v10, %v2243_v26 }
 0x2dc   :  { %2763 = vst [vmem:[#allocation8 + $0x3e0] sm:$0xff] %v2635_v32 }
 0x2dd   :  { %v2638_v36 = vsel %vm2382_vm14, %v2252_v30, %v2510_v33  ;;  %vm2380_vm15 = vcmp.gt.f32.partialorder %v2244_v34, 0.0  ;;  %v2508_v37 = vmul.f32 0.1, %v2244_v34 }
 0x2de   :  { %2766 = vst [vmem:[#allocation8 + $0x3f8] sm:$0xff] %v2638_v36 }
 0x2df   :  { %v2636_v35 = vsel %vm2380_vm15, %v2244_v34, %v2508_v37 }
 0x2e0   :  { %2764 = vst [vmem:[#allocation8 + $0x3e8] sm:$0xff] %v2636_v35 }
 0x2e1   :  { %3460 = shalt.err (!%p3457_p5)
}
 0x2e2   :  { %s3481_s16 = smov 128   ;;  %s3482_s17 = smov 8  }
 0x2e3   :  { %2778 = dma.vmem_to_hbm [thread:$0]  %s2773_s14, 16384, %s3885_s5, [#allocation4], %s3481_s16, %s3481_s16, %s3482_s17  }
 0x2e4   :  { %3473 = dma.done.wait [#allocation4], 16384  }
 0x2e5   :  { %3474 = vsyncadd [#allocation4], 4294950912 }
 0x2e6   :  { %2782 = vsyncpa [#allocation3], 1 }
 0x2e7   :  { %2783 = vsyncpa [#allocation6], 1 }
 0x2e8   :  { %2784 = vsyncpa [#allocation4], 1 }

</bundles_post_ra>
